<compile_context>
chip_gen: v5e
topology: v5e:2x2
jax: 0.10.0
libtpu: 0.0.40
codegen_flags: <defaults>
</compile_context>

<pallas_src>
import functools
import math

import jax
import jax.numpy as jnp
from jax import lax
from jax.experimental import pallas as pl
from jax.experimental.pallas import tpu as pltpu


# ---------------------------------------------------------------------------
# Fused conv-as-matmul kernel
#   wide layout: a[r, i*K + k] = patches[r*f + i, k]
#                out[r, i*C + c] = conv_out[r*f + i, c]
# ---------------------------------------------------------------------------
def _fused_conv_kernel(*refs, f, c_out, m_true, tmw, has_prologue, epilogue,
                       with_stats, mask_needed):
    it = iter(refs)
    a_ref = next(it)                       # (tmw, f*K)  bf16 patches (wide)
    w_ref = next(it)                       # (f*K, f*C)  bf16 block-diagonal weight
    s_ref = next(it) if has_prologue else None   # (1, f*K) f32 BN scale (prev layer)
    b_ref = next(it) if has_prologue else None   # (1, f*K) f32 BN bias  (prev layer)
    o_ref = next(it)                       # (tmw, f*C)
    st_ref = next(it) if with_stats else None    # (1, 2, f*C) partial sum / sumsq

    a = a_ref[...]
    if has_prologue:
        # Previous layer's BatchNorm affine + LeakyReLU applied to its pre-BN
        # patches: f32 on the VPU, downcast to bf16 only for the MXU operand.
        af = a.astype(jnp.float32) * s_ref[...] + b_ref[...]
        af = jnp.where(af > 0, af, 0.2 * af)
        a = af.astype(jnp.bfloat16)

    acc = jnp.dot(a, w_ref[...], preferred_element_type=jnp.float32)

    if epilogue == "leaky":
        y = jnp.where(acc > 0, acc, 0.2 * acc)
    elif epilogue == "sigmoid":
        y = 0.5 * (jnp.tanh(0.5 * acc) + 1.0)   # stable sigmoid (no exp overflow)
    else:
        y = acc
    o_ref[...] = y.astype(o_ref.dtype)

    if with_stats:
        ys = acc  # BatchNorm statistics are of the raw conv output
        if mask_needed:
            rows = lax.broadcasted_iota(jnp.int32, acc.shape, 0)
            cols = lax.broadcasted_iota(jnp.int32, acc.shape, 1)
            narrow = (pl.program_id(0) * tmw + rows) * f + cols // c_out
            ys = jnp.where(narrow < m_true, ys, 0.0)
        st_ref[0, 0:1, :] = jnp.sum(ys, axis=0, keepdims=True)
        st_ref[0, 1:2, :] = jnp.sum(ys * ys, axis=0, keepdims=True)


# ---------------------------------------------------------------------------
# Glue: im2col (XLA side) + layer wrapper
# ---------------------------------------------------------------------------
def im2col(x_nhwc, kh, kw, stride, pad):
    # TODO(synk): tap accumulation with strided in-kernel reads would avoid the
    # kh*kw patch blow-up in HBM entirely; kept in XLA here for robustness.
    N, H, W, C = x_nhwc.shape
    xp = jnp.pad(x_nhwc, ((0, 0), (pad, pad), (pad, pad), (0, 0)))
    Ho = (H + 2 * pad - kh) // stride + 1
    Wo = (W + 2 * pad - kw) // stride + 1
    cols = []
    for i in range(kh):
        for j in range(kw):
            cols.append(xp[:, i:i + stride * Ho:stride, j:j + stride * Wo:stride, :])
    patches = jnp.stack(cols, axis=3)  # (N, Ho, Wo, kh*kw, C)
    return patches.reshape(N * Ho * Wo, kh * kw * C), Ho, Wo


def conv_layer(x_nhwc, w_oihw, stride, pad, *, prologue=None, epilogue="none",
               with_stats=False, out_dtype=jnp.bfloat16, tile_rows=256):
    """One bias-free Conv2d as a tiled Pallas matmul (optionally fused BN I/O)."""
    cout, cin, kh, kw = w_oihw.shape
    n = x_nhwc.shape[0]
    patches, ho, wo = im2col(x_nhwc.astype(jnp.bfloat16), kh, kw, stride, pad)
    m, k = patches.shape

    # widening factor so the output last dim is a multiple of 128 (lane-dense)
    f = 128 // math.gcd(cout, 128)
    f = max(1, min(f, max(1, 4096 // k)))
    fk, fc = f * k, f * cout

    mw = -(-m // f)
    mw8 = max(8, -(-mw // 8) * 8)
    tmw = min(tile_rows, mw8)
    num_tiles = -(-mw8 // tmw)
    mw_pad = num_tiles * tmw
    m_pad = mw_pad * f
    if m_pad > m:
        patches = jnp.pad(patches, ((0, m_pad - m), (0, 0)))
    a_wide = patches.reshape(mw_pad, fk)            # free row-major reshape

    # PyTorch weight (Cout, Cin, kh, kw) -> (kh*kw*Cin, Cout) matching patch order,
    # then block-diagonal for the wide layout.
    w_mat = jnp.transpose(w_oihw, (2, 3, 1, 0)).reshape(k, cout).astype(jnp.float32)
    w_big = jnp.kron(jnp.eye(f, dtype=jnp.float32), w_mat).astype(jnp.bfloat16)

    inputs = [a_wide, w_big]
    in_specs = [pl.BlockSpec((tmw, fk), lambda i: (i, 0)),
                pl.BlockSpec((fk, fc), lambda i: (0, 0))]
    if prologue is not None:
        scale_c, bias_c = prologue                  # per input-channel (f32)
        scale = jnp.tile(jnp.tile(scale_c.astype(jnp.float32), kh * kw), f)
        bias = jnp.tile(jnp.tile(bias_c.astype(jnp.float32), kh * kw), f)
        inputs += [scale.reshape(1, fk), bias.reshape(1, fk)]
        in_specs += [pl.BlockSpec((1, fk), lambda i: (0, 0)),
                     pl.BlockSpec((1, fk), lambda i: (0, 0))]

    main_shape = jax.ShapeDtypeStruct((mw_pad, fc), out_dtype)
    main_spec = pl.BlockSpec((tmw, fc), lambda i: (i, 0))
    if with_stats:
        out_shape = (main_shape,
                     jax.ShapeDtypeStruct((num_tiles, 2, fc), jnp.float32))
        out_specs = (main_spec, pl.BlockSpec((1, 2, fc), lambda i: (i, 0, 0)))
    else:
        out_shape = main_shape
        out_specs = main_spec

    kernel = functools.partial(
        _fused_conv_kernel, f=f, c_out=cout, m_true=m, tmw=tmw,
        has_prologue=prologue is not None, epilogue=epilogue,
        with_stats=with_stats, mask_needed=(m_pad != m))

    res = pl.pallas_call(
        kernel,
        out_shape=out_shape,
        grid=(num_tiles,),
        in_specs=in_specs,
        out_specs=out_specs,
        compiler_params=pltpu.CompilerParams(
            dimension_semantics=("parallel",),
            vmem_limit_bytes=32 * 1024 * 1024),
    )(*inputs)

    if with_stats:
        y_wide, st = res
    else:
        y_wide, st = res, None

    y = y_wide.reshape(m_pad, cout)[:m].reshape(n, ho, wo, cout)
    stats = None
    if with_stats:
        tot = st.sum(axis=0).reshape(2, f, cout).sum(axis=1)   # (2, Cout) f32
        stats = (tot[0], tot[1], m)
    return y, stats


def bn_scale_bias(stats, gamma, beta, eps=1e-5):
    # train-mode BatchNorm2d: biased batch statistics over (N, H, W)
    s1, s2, m = stats
    mean = s1 / m
    var = jnp.maximum(s2 / m - mean * mean, 0.0)
    scale = gamma * lax.rsqrt(var + eps)
    bias = beta - mean * scale
    return scale, bias
    # TODO(synk): running_mean / running_var buffer updates (stateful side effect)
    # are not replicated; only the forward output is reproduced.


def discriminator_forward(x_nchw, params):
    x = jnp.transpose(x_nchw, (0, 2, 3, 1)).astype(jnp.float32)   # NCHW -> NHWC

    # Conv(nc, ndf, 4, 2, 1) + LeakyReLU (fused epilogue)
    x, _ = conv_layer(x, params["w1"], 2, 1, epilogue="leaky")

    # Conv(ndf, 2ndf, 4, 2, 1) -> pre-BN output + fused batch stats
    y, st2 = conv_layer(x, params["w2"], 2, 1, with_stats=True)
    sb2 = bn_scale_bias(st2, params["g2"], params["b2"])

    # Conv(2ndf, 4ndf, 4, 2, 1); BN2 + LeakyReLU fused as prologue
    y, st3 = conv_layer(y, params["w3"], 2, 1, prologue=sb2, with_stats=True)
    sb3 = bn_scale_bias(st3, params["g3"], params["b3"])

    # Conv(4ndf, 8ndf, 3, 2, 1); BN3 + LeakyReLU fused as prologue
    y, st4 = conv_layer(y, params["w4"], 2, 1, prologue=sb3, with_stats=True)
    sb4 = bn_scale_bias(st4, params["g4"], params["b4"])

    # Conv(8ndf, 1, 4, 1, 0) + Sigmoid; BN4 + LeakyReLU fused as prologue
    y, _ = conv_layer(y, params["w5"], 1, 0, prologue=sb4, epilogue="sigmoid",
                      out_dtype=jnp.float32)
    return jnp.transpose(y, (0, 3, 1, 2))   # back to NCHW, (N, 1, 1, 1)


def init_params(key, nc, ndf):
    ks = jax.random.split(key, 5)

    def w(k, cout, cin, kh, kw):
        return 0.02 * jax.random.normal(k, (cout, cin, kh, kw), jnp.float32)

    return {
        "w1": w(ks[0], ndf, nc, 4, 4),
        "w2": w(ks[1], ndf * 2, ndf, 4, 4),
        "g2": jnp.ones((ndf * 2,), jnp.float32),
        "b2": jnp.zeros((ndf * 2,), jnp.float32),
        "w3": w(ks[2], ndf * 4, ndf * 2, 4, 4),
        "g3": jnp.ones((ndf * 4,), jnp.float32),
        "b3": jnp.zeros((ndf * 4,), jnp.float32),
        "w4": w(ks[3], ndf * 8, ndf * 4, 3, 3),
        "g4": jnp.ones((ndf * 8,), jnp.float32),
        "b4": jnp.zeros((ndf * 8,), jnp.float32),
        "w5": w(ks[4], 1, ndf * 8, 4, 4),
    }


if __name__ == "__main__":
    nc, ndf = 3, 8
    key = jax.random.PRNGKey(0)
    kx, kp = jax.random.split(key)
    # The architecture (4 stride-2 convs then a valid 4x4 conv) requires 64x64 input.
    x = jax.random.normal(kx, (2, nc, 64, 64), jnp.float32)  # NCHW like PyTorch
    params = init_params(kp, nc, ndf)

    out = jax.jit(discriminator_forward)(x, params)
    out = jax.block_until_ready(out)
    assert out.shape == (2, 1, 1, 1)
    assert bool(jnp.all(jnp.isfinite(out)))
    assert bool(jnp.all((out >= 0.0) & (out <= 1.0)))
    print("KERNEL_OK")
</pallas_src>

<mosaic_0001>
module attributes {stable_mosaic.version = 11 : i64} {
  func.func @_fused_conv_kernel(%arg0: i32, %arg1: memref<128x768xbf16, #tpu.memory_space<vmem>>, %arg2: memref<768x128xbf16, #tpu.memory_space<vmem>>, %arg3: memref<128x128xbf16, #tpu.memory_space<vmem>>) attributes {dimension_semantics = [#tpu.dimension_semantics<parallel>], iteration_bounds = array<i64: 1>, scalar_prefetch = 0 : i64, scratch_operands = 0 : i64, tpu.core_type = #tpu.core_type<tc>, window_params = [{transform_indices = @transform_0, window_bounds = array<i64: 128, 768>}, {pipeline_mode = #tpu.pipeline_mode<synchronous>, transform_indices = @transform_1, window_bounds = array<i64: 768, 128>}, {transform_indices = @transform_2, window_bounds = array<i64: 128, 128>}]} {
    %c0 = arith.constant 0 : index
    %c0_0 = arith.constant 0 : index
    %0 = vector.load %arg1[%c0, %c0_0] : memref<128x768xbf16, #tpu.memory_space<vmem>>, vector<128x768xbf16>
    %c0_1 = arith.constant 0 : index
    %c0_2 = arith.constant 0 : index
    %1 = vector.load %arg2[%c0_1, %c0_2] : memref<768x128xbf16, #tpu.memory_space<vmem>>, vector<768x128xbf16>
    %cst = arith.constant dense<0.000000e+00> : vector<128x128xf32>
    %2 = tpu.matmul %0, %1, %cst {dimension_numbers = #tpu.dot_dimension_numbers<[1], [0], [0], [1], [0, 0, 1, 1], [], []>} : vector<128x768xbf16>, vector<768x128xbf16>, vector<128x128xf32> -> vector<128x128xf32>
    %cst_3 = arith.constant 0.000000e+00 : f32
    %3 = vector.broadcast %cst_3 : f32 to vector<128x128xf32>
    %4 = arith.cmpf ogt, %2, %3 : vector<128x128xf32>
    %cst_4 = arith.constant 2.000000e-01 : f32
    %5 = vector.broadcast %cst_4 : f32 to vector<128x128xf32>
    %6 = arith.mulf %5, %2 : vector<128x128xf32>
    %7 = arith.select %4, %2, %6 : vector<128x128xi1>, vector<128x128xf32>
    %8 = arith.truncf %7 : vector<128x128xf32> to vector<128x128xbf16>
    %c0_5 = arith.constant 0 : index
    %c0_6 = arith.constant 0 : index
    %9 = vector.load %arg3[%c0_5, %c0_6] : memref<128x128xbf16, #tpu.memory_space<vmem>>, vector<128x128xbf16>
    tpu.vector_store %arg3[%c0_5, %c0_6], %8 {strides = array<i32>} : memref<128x128xbf16, #tpu.memory_space<vmem>>, vector<128x128xbf16>,
    return
  }
  func.func @transform_0(%arg0: i32) -> (i32, i32) {
    %c0_i32 = arith.constant 0 : i32
    %c0_i32_0 = arith.constant 0 : i32
    return %arg0, %c0_i32 : i32, i32
  }
  func.func @transform_1(%arg0: i32) -> (i32, i32) {
    %c0_i32 = arith.constant 0 : i32
    %c0_i32_0 = arith.constant 0 : i32
    %c0_i32_1 = arith.constant 0 : i32
    return %c0_i32, %c0_i32_0 : i32, i32
  }
  func.func @transform_2(%arg0: i32) -> (i32, i32) {
    %c0_i32 = arith.constant 0 : i32
    %c0_i32_0 = arith.constant 0 : i32
    return %arg0, %c0_i32 : i32, i32
  }
}

module attributes {stable_mosaic.version = 11 : i64} {
  func.func @_fused_conv_kernel(%arg0: i32, %arg1: memref<64x1024xbf16, #tpu.memory_space<vmem>>, %arg2: memref<1024x128xbf16, #tpu.memory_space<vmem>>, %arg3: memref<64x128xbf16, #tpu.memory_space<vmem>>, %arg4: memref<1x2x128xf32, #tpu.memory_space<vmem>>) attributes {dimension_semantics = [#tpu.dimension_semantics<parallel>], iteration_bounds = array<i64: 1>, scalar_prefetch = 0 : i64, scratch_operands = 0 : i64, tpu.core_type = #tpu.core_type<tc>, window_params = [{transform_indices = @transform_0, window_bounds = array<i64: 64, 1024>}, {pipeline_mode = #tpu.pipeline_mode<synchronous>, transform_indices = @transform_1, window_bounds = array<i64: 1024, 128>}, {transform_indices = @transform_2, window_bounds = array<i64: 64, 128>}, {transform_indices = @transform_3, window_bounds = array<i64: 1, 2, 128>}]} {
    %c0 = arith.constant 0 : index
    %c0_0 = arith.constant 0 : index
    %0 = vector.load %arg1[%c0, %c0_0] : memref<64x1024xbf16, #tpu.memory_space<vmem>>, vector<64x1024xbf16>
    %c0_1 = arith.constant 0 : index
    %c0_2 = arith.constant 0 : index
    %1 = vector.load %arg2[%c0_1, %c0_2] : memref<1024x128xbf16, #tpu.memory_space<vmem>>, vector<1024x128xbf16>
    %cst = arith.constant dense<0.000000e+00> : vector<64x128xf32>
    %2 = tpu.matmul %0, %1, %cst {dimension_numbers = #tpu.dot_dimension_numbers<[1], [0], [0], [1], [0, 0, 1, 1], [], []>} : vector<64x1024xbf16>, vector<1024x128xbf16>, vector<64x128xf32> -> vector<64x128xf32>
    %3 = arith.truncf %2 : vector<64x128xf32> to vector<64x128xbf16>
    %c0_3 = arith.constant 0 : index
    %c0_4 = arith.constant 0 : index
    %4 = vector.load %arg3[%c0_3, %c0_4] : memref<64x128xbf16, #tpu.memory_space<vmem>>, vector<64x128xbf16>
    tpu.vector_store %arg3[%c0_3, %c0_4], %3 {strides = array<i32>} : memref<64x128xbf16, #tpu.memory_space<vmem>>, vector<64x128xbf16>,
    %cst_5 = arith.constant dense<0.000000e+00> : vector<128xf32>
    %5 = vector.multi_reduction <add>, %2, %cst_5 [0] : vector<64x128xf32> to vector<128xf32>
    %6 = vector.shape_cast %5 : vector<128xf32> to vector<1x128xf32>
    %c0_6 = arith.constant 0 : index
    %c0_7 = arith.constant 0 : index
    %c0_8 = arith.constant 0 : index
    %7 = vector.load %arg4[%c0_6, %c0_7, %c0_8] : memref<1x2x128xf32, #tpu.memory_space<vmem>>, vector<1x1x128xf32>
    %8 = vector.shape_cast %7 : vector<1x1x128xf32> to vector<1x128xf32>
    %9 = vector.shape_cast %6 : vector<1x128xf32> to vector<1x1x128xf32>
    tpu.vector_store %arg4[%c0_6, %c0_7, %c0_8], %9 {strides = array<i32>} : memref<1x2x128xf32, #tpu.memory_space<vmem>>, vector<1x1x128xf32>,
    %10 = arith.mulf %2, %2 : vector<64x128xf32>
    %cst_9 = arith.constant dense<0.000000e+00> : vector<128xf32>
    %11 = vector.multi_reduction <add>, %10, %cst_9 [0] : vector<64x128xf32> to vector<128xf32>
    %12 = vector.shape_cast %11 : vector<128xf32> to vector<1x128xf32>
    %c0_10 = arith.constant 0 : index
    %c1 = arith.constant 1 : index
    %c0_11 = arith.constant 0 : index
    %13 = vector.load %arg4[%c0_10, %c1, %c0_11] : memref<1x2x128xf32, #tpu.memory_space<vmem>>, vector<1x1x128xf32>
    %14 = vector.shape_cast %13 : vector<1x1x128xf32> to vector<1x128xf32>
    %15 = vector.shape_cast %12 : vector<1x128xf32> to vector<1x1x128xf32>
    tpu.vector_store %arg4[%c0_10, %c1, %c0_11], %15 {strides = array<i32>} : memref<1x2x128xf32, #tpu.memory_space<vmem>>, vector<1x1x128xf32>,
    return
  }
  func.func @transform_0(%arg0: i32) -> (i32, i32) {
    %c0_i32 = arith.constant 0 : i32
    %c0_i32_0 = arith.constant 0 : i32
    return %arg0, %c0_i32 : i32, i32
  }
  func.func @transform_1(%arg0: i32) -> (i32, i32) {
    %c0_i32 = arith.constant 0 : i32
    %c0_i32_0 = arith.constant 0 : i32
    %c0_i32_1 = arith.constant 0 : i32
    return %c0_i32, %c0_i32_0 : i32, i32
  }
  func.func @transform_2(%arg0: i32) -> (i32, i32) {
    %c0_i32 = arith.constant 0 : i32
    %c0_i32_0 = arith.constant 0 : i32
    return %arg0, %c0_i32 : i32, i32
  }
  func.func @transform_3(%arg0: i32) -> (i32, i32, i32) {
    %c0_i32 = arith.constant 0 : i32
    %c0_i32_0 = arith.constant 0 : i32
    %c0_i32_1 = arith.constant 0 : i32
    return %arg0, %c0_i32, %c0_i32_0 : i32, i32, i32
  }
}

module attributes {stable_mosaic.version = 11 : i64} {
  func.func @_fused_conv_kernel(%arg0: i32, %arg1: memref<32x1024xbf16, #tpu.memory_space<vmem>>, %arg2: memref<1024x128xbf16, #tpu.memory_space<vmem>>, %arg3: memref<1x1024xf32, #tpu.memory_space<vmem>>, %arg4: memref<1x1024xf32, #tpu.memory_space<vmem>>, %arg5: memref<32x128xbf16, #tpu.memory_space<vmem>>, %arg6: memref<1x2x128xf32, #tpu.memory_space<vmem>>) attributes {dimension_semantics = [#tpu.dimension_semantics<parallel>], iteration_bounds = array<i64: 1>, scalar_prefetch = 0 : i64, scratch_operands = 0 : i64, tpu.core_type = #tpu.core_type<tc>, window_params = [{transform_indices = @transform_0, window_bounds = array<i64: 32, 1024>}, {pipeline_mode = #tpu.pipeline_mode<synchronous>, transform_indices = @transform_1, window_bounds = array<i64: 1024, 128>}, {pipeline_mode = #tpu.pipeline_mode<synchronous>, transform_indices = @transform_2, window_bounds = array<i64: 1, 1024>}, {pipeline_mode = #tpu.pipeline_mode<synchronous>, transform_indices = @transform_3, window_bounds = array<i64: 1, 1024>}, {transform_indices = @transform_4, window_bounds = array<i64: 32, 128>}, {transform_indices = @transform_5, window_bounds = array<i64: 1, 2, 128>}]} {
    %c0 = arith.constant 0 : index
    %c0_0 = arith.constant 0 : index
    %0 = vector.load %arg1[%c0, %c0_0] : memref<32x1024xbf16, #tpu.memory_space<vmem>>, vector<32x1024xbf16>
    %1 = arith.extf %0 : vector<32x1024xbf16> to vector<32x1024xf32>
    %c0_1 = arith.constant 0 : index
    %c0_2 = arith.constant 0 : index
    %2 = vector.load %arg3[%c0_1, %c0_2] : memref<1x1024xf32, #tpu.memory_space<vmem>>, vector<1x1024xf32>
    %3 = vector.broadcast %2 : vector<1x1024xf32> to vector<32x1024xf32>
    %4 = arith.mulf %1, %3 : vector<32x1024xf32>
    %c0_3 = arith.constant 0 : index
    %c0_4 = arith.constant 0 : index
    %5 = vector.load %arg4[%c0_3, %c0_4] : memref<1x1024xf32, #tpu.memory_space<vmem>>, vector<1x1024xf32>
    %6 = vector.broadcast %5 : vector<1x1024xf32> to vector<32x1024xf32>
    %7 = arith.addf %4, %6 : vector<32x1024xf32>
    %cst = arith.constant 0.000000e+00 : f32
    %8 = vector.broadcast %cst : f32 to vector<32x1024xf32>
    %9 = arith.cmpf ogt, %7, %8 : vector<32x1024xf32>
    %cst_5 = arith.constant 2.000000e-01 : f32
    %10 = vector.broadcast %cst_5 : f32 to vector<32x1024xf32>
    %11 = arith.mulf %10, %7 : vector<32x1024xf32>
    %12 = arith.select %9, %7, %11 : vector<32x1024xi1>, vector<32x1024xf32>
    %13 = arith.truncf %12 : vector<32x1024xf32> to vector<32x1024xbf16>
    %c0_6 = arith.constant 0 : index
    %c0_7 = arith.constant 0 : index
    %14 = vector.load %arg2[%c0_6, %c0_7] : memref<1024x128xbf16, #tpu.memory_space<vmem>>, vector<1024x128xbf16>
    %cst_8 = arith.constant dense<0.000000e+00> : vector<32x128xf32>
    %15 = tpu.matmul %13, %14, %cst_8 {dimension_numbers = #tpu.dot_dimension_numbers<[1], [0], [0], [1], [0, 0, 1, 1], [], []>} : vector<32x1024xbf16>, vector<1024x128xbf16>, vector<32x128xf32> -> vector<32x128xf32>
    %16 = arith.truncf %15 : vector<32x128xf32> to vector<32x128xbf16>
    %c0_9 = arith.constant 0 : index
    %c0_10 = arith.constant 0 : index
    %17 = vector.load %arg5[%c0_9, %c0_10] : memref<32x128xbf16, #tpu.memory_space<vmem>>, vector<32x128xbf16>
    tpu.vector_store %arg5[%c0_9, %c0_10], %16 {strides = array<i32>} : memref<32x128xbf16, #tpu.memory_space<vmem>>, vector<32x128xbf16>,
    %cst_11 = arith.constant dense<0.000000e+00> : vector<128xf32>
    %18 = vector.multi_reduction <add>, %15, %cst_11 [0] : vector<32x128xf32> to vector<128xf32>
    %19 = vector.shape_cast %18 : vector<128xf32> to vector<1x128xf32>
    %c0_12 = arith.constant 0 : index
    %c0_13 = arith.constant 0 : index
    %c0_14 = arith.constant 0 : index
    %20 = vector.load %arg6[%c0_12, %c0_13, %c0_14] : memref<1x2x128xf32, #tpu.memory_space<vmem>>, vector<1x1x128xf32>
    %21 = vector.shape_cast %20 : vector<1x1x128xf32> to vector<1x128xf32>
    %22 = vector.shape_cast %19 : vector<1x128xf32> to vector<1x1x128xf32>
    tpu.vector_store %arg6[%c0_12, %c0_13, %c0_14], %22 {strides = array<i32>} : memref<1x2x128xf32, #tpu.memory_space<vmem>>, vector<1x1x128xf32>,
    %23 = arith.mulf %15, %15 : vector<32x128xf32>
    %cst_15 = arith.constant dense<0.000000e+00> : vector<128xf32>
    %24 = vector.multi_reduction <add>, %23, %cst_15 [0] : vector<32x128xf32> to vector<128xf32>
    %25 = vector.shape_cast %24 : vector<128xf32> to vector<1x128xf32>
    %c0_16 = arith.constant 0 : index
    %c1 = arith.constant 1 : index
    %c0_17 = arith.constant 0 : index
    %26 = vector.load %arg6[%c0_16, %c1, %c0_17] : memref<1x2x128xf32, #tpu.memory_space<vmem>>, vector<1x1x128xf32>
    %27 = vector.shape_cast %26 : vector<1x1x128xf32> to vector<1x128xf32>
    %28 = vector.shape_cast %25 : vector<1x128xf32> to vector<1x1x128xf32>
    tpu.vector_store %arg6[%c0_16, %c1, %c0_17], %28 {strides = array<i32>} : memref<1x2x128xf32, #tpu.memory_space<vmem>>, vector<1x1x128xf32>,
    return
  }
  func.func @transform_0(%arg0: i32) -> (i32, i32) {
    %c0_i32 = arith.constant 0 : i32
    %c0_i32_0 = arith.constant 0 : i32
    return %arg0, %c0_i32 : i32, i32
  }
  func.func @transform_1(%arg0: i32) -> (i32, i32) {
    %c0_i32 = arith.constant 0 : i32
    %c0_i32_0 = arith.constant 0 : i32
    %c0_i32_1 = arith.constant 0 : i32
    return %c0_i32, %c0_i32_0 : i32, i32
  }
  func.func @transform_2(%arg0: i32) -> (i32, i32) {
    %c0_i32 = arith.constant 0 : i32
    %c0_i32_0 = arith.constant 0 : i32
    %c0_i32_1 = arith.constant 0 : i32
    return %c0_i32, %c0_i32_0 : i32, i32
  }
  func.func @transform_3(%arg0: i32) -> (i32, i32) {
    %c0_i32 = arith.constant 0 : i32
    %c0_i32_0 = arith.constant 0 : i32
    %c0_i32_1 = arith.constant 0 : i32
    return %c0_i32, %c0_i32_0 : i32, i32
  }
  func.func @transform_4(%arg0: i32) -> (i32, i32) {
    %c0_i32 = arith.constant 0 : i32
    %c0_i32_0 = arith.constant 0 : i32
    return %arg0, %c0_i32 : i32, i32
  }
  func.func @transform_5(%arg0: i32) -> (i32, i32, i32) {
    %c0_i32 = arith.constant 0 : i32
    %c0_i32_0 = arith.constant 0 : i32
    %c0_i32_1 = arith.constant 0 : i32
    return %arg0, %c0_i32, %c0_i32_0 : i32, i32, i32
  }
}

module attributes {stable_mosaic.version = 11 : i64} {
  func.func @_fused_conv_kernel(%arg0: i32, %arg1: memref<16x576xbf16, #tpu.memory_space<vmem>>, %arg2: memref<576x128xbf16, #tpu.memory_space<vmem>>, %arg3: memref<1x576xf32, #tpu.memory_space<vmem>>, %arg4: memref<1x576xf32, #tpu.memory_space<vmem>>, %arg5: memref<16x128xbf16, #tpu.memory_space<vmem>>, %arg6: memref<1x2x128xf32, #tpu.memory_space<vmem>>) attributes {dimension_semantics = [#tpu.dimension_semantics<parallel>], iteration_bounds = array<i64: 1>, scalar_prefetch = 0 : i64, scratch_operands = 0 : i64, tpu.core_type = #tpu.core_type<tc>, window_params = [{transform_indices = @transform_0, window_bounds = array<i64: 16, 576>}, {pipeline_mode = #tpu.pipeline_mode<synchronous>, transform_indices = @transform_1, window_bounds = array<i64: 576, 128>}, {pipeline_mode = #tpu.pipeline_mode<synchronous>, transform_indices = @transform_2, window_bounds = array<i64: 1, 576>}, {pipeline_mode = #tpu.pipeline_mode<synchronous>, transform_indices = @transform_3, window_bounds = array<i64: 1, 576>}, {transform_indices = @transform_4, window_bounds = array<i64: 16, 128>}, {transform_indices = @transform_5, window_bounds = array<i64: 1, 2, 128>}]} {
    %c0 = arith.constant 0 : index
    %c0_0 = arith.constant 0 : index
    %0 = vector.load %arg1[%c0, %c0_0] : memref<16x576xbf16, #tpu.memory_space<vmem>>, vector<16x576xbf16>
    %1 = arith.extf %0 : vector<16x576xbf16> to vector<16x576xf32>
    %c0_1 = arith.constant 0 : index
    %c0_2 = arith.constant 0 : index
    %2 = vector.load %arg3[%c0_1, %c0_2] : memref<1x576xf32, #tpu.memory_space<vmem>>, vector<1x576xf32>
    %3 = vector.broadcast %2 : vector<1x576xf32> to vector<16x576xf32>
    %4 = arith.mulf %1, %3 : vector<16x576xf32>
    %c0_3 = arith.constant 0 : index
    %c0_4 = arith.constant 0 : index
    %5 = vector.load %arg4[%c0_3, %c0_4] : memref<1x576xf32, #tpu.memory_space<vmem>>, vector<1x576xf32>
    %6 = vector.broadcast %5 : vector<1x576xf32> to vector<16x576xf32>
    %7 = arith.addf %4, %6 : vector<16x576xf32>
    %cst = arith.constant 0.000000e+00 : f32
    %8 = vector.broadcast %cst : f32 to vector<16x576xf32>
    %9 = arith.cmpf ogt, %7, %8 : vector<16x576xf32>
    %cst_5 = arith.constant 2.000000e-01 : f32
    %10 = vector.broadcast %cst_5 : f32 to vector<16x576xf32>
    %11 = arith.mulf %10, %7 : vector<16x576xf32>
    %12 = arith.select %9, %7, %11 : vector<16x576xi1>, vector<16x576xf32>
    %13 = arith.truncf %12 : vector<16x576xf32> to vector<16x576xbf16>
    %c0_6 = arith.constant 0 : index
    %c0_7 = arith.constant 0 : index
    %14 = vector.load %arg2[%c0_6, %c0_7] : memref<576x128xbf16, #tpu.memory_space<vmem>>, vector<576x128xbf16>
    %cst_8 = arith.constant dense<0.000000e+00> : vector<16x128xf32>
    %15 = tpu.matmul %13, %14, %cst_8 {dimension_numbers = #tpu.dot_dimension_numbers<[1], [0], [0], [1], [0, 0, 1, 1], [], []>} : vector<16x576xbf16>, vector<576x128xbf16>, vector<16x128xf32> -> vector<16x128xf32>
    %16 = arith.truncf %15 : vector<16x128xf32> to vector<16x128xbf16>
    %c0_9 = arith.constant 0 : index
    %c0_10 = arith.constant 0 : index
    %17 = vector.load %arg5[%c0_9, %c0_10] : memref<16x128xbf16, #tpu.memory_space<vmem>>, vector<16x128xbf16>
    tpu.vector_store %arg5[%c0_9, %c0_10], %16 {strides = array<i32>} : memref<16x128xbf16, #tpu.memory_space<vmem>>, vector<16x128xbf16>,
    %cst_11 = arith.constant dense<0.000000e+00> : vector<128xf32>
    %18 = vector.multi_reduction <add>, %15, %cst_11 [0] : vector<16x128xf32> to vector<128xf32>
    %19 = vector.shape_cast %18 : vector<128xf32> to vector<1x128xf32>
    %c0_12 = arith.constant 0 : index
    %c0_13 = arith.constant 0 : index
    %c0_14 = arith.constant 0 : index
    %20 = vector.load %arg6[%c0_12, %c0_13, %c0_14] : memref<1x2x128xf32, #tpu.memory_space<vmem>>, vector<1x1x128xf32>
    %21 = vector.shape_cast %20 : vector<1x1x128xf32> to vector<1x128xf32>
    %22 = vector.shape_cast %19 : vector<1x128xf32> to vector<1x1x128xf32>
    tpu.vector_store %arg6[%c0_12, %c0_13, %c0_14], %22 {strides = array<i32>} : memref<1x2x128xf32, #tpu.memory_space<vmem>>, vector<1x1x128xf32>,
    %23 = arith.mulf %15, %15 : vector<16x128xf32>
    %cst_15 = arith.constant dense<0.000000e+00> : vector<128xf32>
    %24 = vector.multi_reduction <add>, %23, %cst_15 [0] : vector<16x128xf32> to vector<128xf32>
    %25 = vector.shape_cast %24 : vector<128xf32> to vector<1x128xf32>
    %c0_16 = arith.constant 0 : index
    %c1 = arith.constant 1 : index
    %c0_17 = arith.constant 0 : index
    %26 = vector.load %arg6[%c0_16, %c1, %c0_17] : memref<1x2x128xf32, #tpu.memory_space<vmem>>, vector<1x1x128xf32>
    %27 = vector.shape_cast %26 : vector<1x1x128xf32> to vector<1x128xf32>
    %28 = vector.shape_cast %25 : vector<1x128xf32> to vector<1x1x128xf32>
    tpu.vector_store %arg6[%c0_16, %c1, %c0_17], %28 {strides = array<i32>} : memref<1x2x128xf32, #tpu.memory_space<vmem>>, vector<1x1x128xf32>,
    return
  }
  func.func @transform_0(%arg0: i32) -> (i32, i32) {
    %c0_i32 = arith.constant 0 : i32
    %c0_i32_0 = arith.constant 0 : i32
    return %arg0, %c0_i32 : i32, i32
  }
  func.func @transform_1(%arg0: i32) -> (i32, i32) {
    %c0_i32 = arith.constant 0 : i32
    %c0_i32_0 = arith.constant 0 : i32
    %c0_i32_1 = arith.constant 0 : i32
    return %c0_i32, %c0_i32_0 : i32, i32
  }
  func.func @transform_2(%arg0: i32) -> (i32, i32) {
    %c0_i32 = arith.constant 0 : i32
    %c0_i32_0 = arith.constant 0 : i32
    %c0_i32_1 = arith.constant 0 : i32
    return %c0_i32, %c0_i32_0 : i32, i32
  }
  func.func @transform_3(%arg0: i32) -> (i32, i32) {
    %c0_i32 = arith.constant 0 : i32
    %c0_i32_0 = arith.constant 0 : i32
    %c0_i32_1 = arith.constant 0 : i32
    return %c0_i32, %c0_i32_0 : i32, i32
  }
  func.func @transform_4(%arg0: i32) -> (i32, i32) {
    %c0_i32 = arith.constant 0 : i32
    %c0_i32_0 = arith.constant 0 : i32
    return %arg0, %c0_i32 : i32, i32
  }
  func.func @transform_5(%arg0: i32) -> (i32, i32, i32) {
    %c0_i32 = arith.constant 0 : i32
    %c0_i32_0 = arith.constant 0 : i32
    %c0_i32_1 = arith.constant 0 : i32
    return %arg0, %c0_i32, %c0_i32_0 : i32, i32, i32
  }
}

module attributes {stable_mosaic.version = 11 : i64} {
  func.func @_fused_conv_kernel(%arg0: i32, %arg1: memref<8x4096xbf16, #tpu.memory_space<vmem>>, %arg2: memref<4096x4xbf16, #tpu.memory_space<vmem>>, %arg3: memref<1x4096xf32, #tpu.memory_space<vmem>>, %arg4: memref<1x4096xf32, #tpu.memory_space<vmem>>, %arg5: memref<8x4xf32, #tpu.memory_space<vmem>>) attributes {dimension_semantics = [#tpu.dimension_semantics<parallel>], iteration_bounds = array<i64: 1>, scalar_prefetch = 0 : i64, scratch_operands = 0 : i64, tpu.core_type = #tpu.core_type<tc>, window_params = [{transform_indices = @transform_0, window_bounds = array<i64: 8, 4096>}, {pipeline_mode = #tpu.pipeline_mode<synchronous>, transform_indices = @transform_1, window_bounds = array<i64: 4096, 4>}, {pipeline_mode = #tpu.pipeline_mode<synchronous>, transform_indices = @transform_2, window_bounds = array<i64: 1, 4096>}, {pipeline_mode = #tpu.pipeline_mode<synchronous>, transform_indices = @transform_3, window_bounds = array<i64: 1, 4096>}, {transform_indices = @transform_4, window_bounds = array<i64: 8, 4>}]} {
    %c0 = arith.constant 0 : index
    %c0_0 = arith.constant 0 : index
    %0 = vector.load %arg1[%c0, %c0_0] : memref<8x4096xbf16, #tpu.memory_space<vmem>>, vector<8x4096xbf16>
    %1 = arith.extf %0 : vector<8x4096xbf16> to vector<8x4096xf32>
    %c0_1 = arith.constant 0 : index
    %c0_2 = arith.constant 0 : index
    %2 = vector.load %arg3[%c0_1, %c0_2] : memref<1x4096xf32, #tpu.memory_space<vmem>>, vector<1x4096xf32>
    %3 = vector.broadcast %2 : vector<1x4096xf32> to vector<8x4096xf32>
    %4 = arith.mulf %1, %3 : vector<8x4096xf32>
    %c0_3 = arith.constant 0 : index
    %c0_4 = arith.constant 0 : index
    %5 = vector.load %arg4[%c0_3, %c0_4] : memref<1x4096xf32, #tpu.memory_space<vmem>>, vector<1x4096xf32>
    %6 = vector.broadcast %5 : vector<1x4096xf32> to vector<8x4096xf32>
    %7 = arith.addf %4, %6 : vector<8x4096xf32>
    %cst = arith.constant 0.000000e+00 : f32
    %8 = vector.broadcast %cst : f32 to vector<8x4096xf32>
    %9 = arith.cmpf ogt, %7, %8 : vector<8x4096xf32>
    %cst_5 = arith.constant 2.000000e-01 : f32
    %10 = vector.broadcast %cst_5 : f32 to vector<8x4096xf32>
    %11 = arith.mulf %10, %7 : vector<8x4096xf32>
    %12 = arith.select %9, %7, %11 : vector<8x4096xi1>, vector<8x4096xf32>
    %13 = arith.truncf %12 : vector<8x4096xf32> to vector<8x4096xbf16>
    %c0_6 = arith.constant 0 : index
    %c0_7 = arith.constant 0 : index
    %14 = vector.load %arg2[%c0_6, %c0_7] : memref<4096x4xbf16, #tpu.memory_space<vmem>>, vector<4096x4xbf16>
    %cst_8 = arith.constant dense<0.000000e+00> : vector<8x4xf32>
    %15 = tpu.matmul %13, %14, %cst_8 {dimension_numbers = #tpu.dot_dimension_numbers<[1], [0], [0], [1], [0, 0, 1, 1], [], []>} : vector<8x4096xbf16>, vector<4096x4xbf16>, vector<8x4xf32> -> vector<8x4xf32>
    %cst_9 = arith.constant 5.000000e-01 : f32
    %16 = vector.broadcast %cst_9 : f32 to vector<8x4xf32>
    %17 = arith.mulf %16, %15 : vector<8x4xf32>
    %18 = math.tanh %17 : vector<8x4xf32>
    %cst_10 = arith.constant 1.000000e+00 : f32
    %19 = vector.broadcast %cst_10 : f32 to vector<8x4xf32>
    %20 = arith.addf %18, %19 : vector<8x4xf32>
    %cst_11 = arith.constant 5.000000e-01 : f32
    %21 = vector.broadcast %cst_11 : f32 to vector<8x4xf32>
    %22 = arith.mulf %21, %20 : vector<8x4xf32>
    %c0_12 = arith.constant 0 : index
    %c0_13 = arith.constant 0 : index
    %23 = vector.load %arg5[%c0_12, %c0_13] : memref<8x4xf32, #tpu.memory_space<vmem>>, vector<8x4xf32>
    tpu.vector_store %arg5[%c0_12, %c0_13], %22 {strides = array<i32>} : memref<8x4xf32, #tpu.memory_space<vmem>>, vector<8x4xf32>,
    return
  }
  func.func @transform_0(%arg0: i32) -> (i32, i32) {
    %c0_i32 = arith.constant 0 : i32
    %c0_i32_0 = arith.constant 0 : i32
    return %arg0, %c0_i32 : i32, i32
  }
  func.func @transform_1(%arg0: i32) -> (i32, i32) {
    %c0_i32 = arith.constant 0 : i32
    %c0_i32_0 = arith.constant 0 : i32
    %c0_i32_1 = arith.constant 0 : i32
    return %c0_i32, %c0_i32_0 : i32, i32
  }
  func.func @transform_2(%arg0: i32) -> (i32, i32) {
    %c0_i32 = arith.constant 0 : i32
    %c0_i32_0 = arith.constant 0 : i32
    %c0_i32_1 = arith.constant 0 : i32
    return %c0_i32, %c0_i32_0 : i32, i32
  }
  func.func @transform_3(%arg0: i32) -> (i32, i32) {
    %c0_i32 = arith.constant 0 : i32
    %c0_i32_0 = arith.constant 0 : i32
    %c0_i32_1 = arith.constant 0 : i32
    return %c0_i32, %c0_i32_0 : i32, i32
  }
  func.func @transform_4(%arg0: i32) -> (i32, i32) {
    %c0_i32 = arith.constant 0 : i32
    %c0_i32_0 = arith.constant 0 : i32
    return %arg0, %c0_i32 : i32, i32
  }
}

</mosaic_0001>

<bundles_post_ra>
// kernel: mul.4
= control target key start
LH: loop header
LB: loop body
LE: loop exit
PB: predicated region body
PF: predicated region fallthrough
CT: control target
= control target key end

     0   :  { %vm67_vm0 = vcmask 64512   ;;  %s296_s0 = inlined_call_operand.vmem [shape: f32[4,4,3,8], index: 0, kind: input, shape index: {}]   ;;  %s297_s1 = inlined_call_operand.vmem [shape: f32[48,8], index: 1, kind: output, shape index: {}]  }
   0x1   :  { %v144_v0 = vld [vmem:[%s296_s0 + $0x3c] sm:$0xf]  ;;  %v145_v1 = vld [vmem:[%s296_s0 + $0x38] sm:$0xf]  ;;  %v146_v2 = vld [vmem:[%s296_s0 + $0x34] sm:$0xf] }
   0x2   :  { %7 = vst [vmem:[#allocation0 + $0x48] sm:$0xf] %v144_v0  ;;  %v147_v3 = vld [vmem:[%s296_s0 + $0x30] sm:$0xf]  ;;  %v148_v4 = vld [vmem:[%s296_s0 + $0x2c] sm:$0xf] }
   0x3   :  { %11 = vst [vmem:[#allocation0 + $0x78] sm:$0xf] %v145_v1  ;;  %v149_v5 = vld [vmem:[%s296_s0 + $0x28] sm:$0xf]  ;;  %v150_v6 = vld [vmem:[%s296_s0 + $0x24] sm:$0xf] }
   0x4   :  { %15 = vst [vmem:[#allocation0 + $0x20] sm:$0xf] %v146_v2  ;;  %v151_v7 = vld [vmem:[%s296_s0 + $0x20] sm:$0xf]  ;;  %v152_v8 = vld [vmem:[%s296_s0 + $0x1c] sm:$0xf] }
   0x5   :  { %19 = vst [vmem:[#allocation0 + $0x60] sm:$0xf] %v147_v3  ;;  %v153_v9 = vld [vmem:[%s296_s0 + $0x18] sm:$0xf]  ;;  %v154_v10 = vld [vmem:[%s296_s0 + $0x14] sm:$0xf] }
   0x6   :  { %23 = vst [vmem:[#allocation0 + $0x28] sm:$0xf] %v148_v4  ;;  %v155_v11 = vld [vmem:[%s296_s0 + $0x10] sm:$0xf]  ;;  %v156_v12 = vld [vmem:[%s296_s0 + $0xc] sm:$0xf] }
   0x7   :  { %27 = vst [vmem:[#allocation0 + $0x10] sm:$0xf] %v149_v5  ;;  %v157_v13 = vld [vmem:[%s296_s0 + $0x8] sm:$0xf]  ;;  %v158_v14 = vld [vmem:[%s296_s0 + $0x4] sm:$0xf] }
   0x8   :  { %31 = vst [vmem:[#allocation0 + $0x70] sm:$0xf] %v150_v6  ;;  %v64_v15 = vld [vmem:[%s296_s0] sm:$0xf] }
   0x9   :  { %35 = vst [vmem:[#allocation0 + $0x30] sm:$0xf] %v151_v7  ;;  %v140_v31 = vld [vmem:[#allocation0 + $0x48] sm:$0x7]  }
   0xa   :  { %39 = vst [vmem:[#allocation0 + $0x38] sm:$0xf] %v152_v8  ;;  %v135_v30 = vld [vmem:[#allocation0 + $0x78] sm:$0x7]  }
   0xb   :  { %43 = vst [vmem:[#allocation0 + $0x58] sm:$0xf] %v153_v9  ;;  %v130_v29 = vld [vmem:[#allocation0 + $0x20] sm:$0x7]  }
   0xc   :  { %47 = vst [vmem:[#allocation0 + $0x68] sm:$0xf] %v154_v10  ;;  %v125_v28 = vld [vmem:[#allocation0 + $0x60] sm:$0x7]  }
   0xd   :  { %51 = vst [vmem:[#allocation0 + $0x40] sm:$0xf] %v155_v11  ;;  %v120_v27 = vld [vmem:[#allocation0 + $0x28] sm:$0x7]  }
   0xe   :  { %55 = vst [vmem:[#allocation0 + $0x18] sm:$0xf] %v156_v12  ;;  %v115_v26 = vld [vmem:[#allocation0 + $0x10] sm:$0x7]  }
   0xf   :  { %59 = vst [vmem:[#allocation0 + $0x8] sm:$0xf] %v157_v13  ;;  %v110_v25 = vld [vmem:[#allocation0 + $0x70] sm:$0x7]  }
  0x10   :  { %63 = vst [vmem:[#allocation0] sm:$0xf] %v158_v14  ;;  %v105_v23 = vld [vmem:[#allocation0 + $0x30] sm:$0x7]  }
  0x11   :  { %65 = vst [vmem:[#allocation0 + $0x50] sm:$0xf] %v64_v15  ;;  %v100_v16 = vld [vmem:[#allocation0 + $0x38] sm:$0x7]  }
  0x12   :  { %v95_v17 = vld [vmem:[#allocation0 + $0x58] sm:$0x7]   ;;  %165 = vst.msk [vmem:[%s297_s1 + $0x15] sm:$0x7] %vm67_vm0, %v100_v16  }
  0x13   :  { %v90_v18 = vld [vmem:[#allocation0 + $0x68] sm:$0x7]   ;;  %164 = vst.msk [vmem:[%s297_s1 + $0x12] sm:$0x7] %vm67_vm0, %v95_v17  }
  0x14   :  { %v85_v19 = vld [vmem:[#allocation0 + $0x40] sm:$0x7]   ;;  %163 = vst.msk [vmem:[%s297_s1 + $0xf] sm:$0x7] %vm67_vm0, %v90_v18  }
  0x15   :  { %v80_v20 = vld [vmem:[#allocation0 + $0x18] sm:$0x7]   ;;  %162 = vst.msk [vmem:[%s297_s1 + $0xc] sm:$0x7] %vm67_vm0, %v85_v19  }
  0x16   :  { %v75_v21 = vld [vmem:[#allocation0 + $0x8] sm:$0x7]   ;;  %161 = vst.msk [vmem:[%s297_s1 + $0x9] sm:$0x7] %vm67_vm0, %v80_v20  }
  0x17   :  { %v70_v22 = vld [vmem:[#allocation0] sm:$0x7]   ;;  %160 = vst.msk [vmem:[%s297_s1 + $0x6] sm:$0x7] %vm67_vm0, %v75_v21  }
  0x18   :  { %v66_v24 = vld [vmem:[#allocation0 + $0x50] sm:$0x7]   ;;  %159 = vst.msk [vmem:[%s297_s1 + $0x3] sm:$0x7] %vm67_vm0, %v70_v22  }
  0x19   :  { %68 = vst.msk [vmem:[%s297_s1] sm:$0x7] %vm67_vm0, %v66_v24  }
  0x1a   :  { %166 = vst.msk [vmem:[%s297_s1 + $0x18] sm:$0x7] %vm67_vm0, %v105_v23  }
  0x1b   :  { %167 = vst.msk [vmem:[%s297_s1 + $0x1b] sm:$0x7] %vm67_vm0, %v110_v25  }
  0x1c   :  { %168 = vst.msk [vmem:[%s297_s1 + $0x1e] sm:$0x7] %vm67_vm0, %v115_v26  }
  0x1d   :  { %169 = vst.msk [vmem:[%s297_s1 + $0x21] sm:$0x7] %vm67_vm0, %v120_v27  }
  0x1e   :  { %170 = vst.msk [vmem:[%s297_s1 + $0x24] sm:$0x7] %vm67_vm0, %v125_v28  }
  0x1f   :  { %171 = vst.msk [vmem:[%s297_s1 + $0x27] sm:$0x7] %vm67_vm0, %v130_v29  }
  0x20   :  { %172 = vst.msk [vmem:[%s297_s1 + $0x2a] sm:$0x7] %vm67_vm0, %v135_v30  }
  0x21   :  { %173 = vst.msk [vmem:[%s297_s1 + $0x2d] sm:$0x7] %vm67_vm0, %v140_v31  }

// kernel: discriminator_forward.5
= control target key start
LH: loop header
LB: loop body
LE: loop exit
PB: predicated region body
PF: predicated region fallthrough
CT: control target
= control target key end

     0   :  { %s2135_s1 = inlined_call_operand.vmem [shape: bf16[768,128], index: 1, kind: input, shape index: {}]   ;;  %s2136_s0 = inlined_call_operand.vmem [shape: bf16[128,768], index: 0, kind: input, shape index: {}]   ;;  %s2137_s2 = inlined_call_operand.vmem [shape: bf16[128,128], index: 2, kind: output, shape index: {}]  }
   0x1   :  { %v1500_v0 = vld [vmem:[%s2135_s1 + $0x38] sm:$0xff]  ;;  %v1499_v2 = vld [vmem:[%s2135_s1 + $0x30] sm:$0xff]  ;;  %v1498_v4 = vld [vmem:[%s2135_s1 + $0x28] sm:$0xff] }
   0x2   :  { %v1508_v1 = vld [vmem:[%s2135_s1 + $0x78] sm:$0xff]  ;;  %1588 = vmatpush.bf16.msra.mxu2 %v1500_v0  ;;  %v1507_v3 = vld [vmem:[%s2135_s1 + $0x70] sm:$0xff]  ;;  %683 = vmatpush.bf16.msra.mxu0 %v1500_v0  ;;  %v1506_v5 = vld [vmem:[%s2135_s1 + $0x68] sm:$0xff] }
   0x3   :  { %1596 = vmatpush.bf16.msra.mxu3 %v1508_v1  ;;  %732 = vmatpush.bf16.msra.mxu1 %v1508_v1  ;;  %v1497_v6 = vld [vmem:[%s2135_s1 + $0x20] sm:$0xff]  ;;  %v1496_v8 = vld [vmem:[%s2135_s1 + $0x18] sm:$0xff]  ;;  %v1495_v10 = vld [vmem:[%s2135_s1 + $0x10] sm:$0xff] }
   0x4   :  { %v1505_v7 = vld [vmem:[%s2135_s1 + $0x60] sm:$0xff]  ;;  %v1504_v9 = vld [vmem:[%s2135_s1 + $0x58] sm:$0xff]  ;;  %v1503_v11 = vld [vmem:[%s2135_s1 + $0x50] sm:$0xff] }
   0x5   :  { %v1494_v12 = vld [vmem:[%s2135_s1 + $0x8] sm:$0xff]  ;;  %v1493_v14 = vld [vmem:[%s2135_s1] sm:$0xff]  ;;  %v1472_v17 = vld [vmem:[%s2136_s0 + $0xd4] sm:$0xf0] }
   0x6   :  { %1589 = vmatpush.bf16.msra.mxu2 %v1499_v2  ;;  %684 = vmatpush.bf16.msra.mxu0 %v1499_v2  ;;  %v1502_v13 = vld [vmem:[%s2135_s1 + $0x48] sm:$0xff]  ;;  %v1501_v15 = vld [vmem:[%s2135_s1 + $0x40] sm:$0xff]  ;;  %v1161_v19 = vld [vmem:[%s2136_s0 + $0xd8] sm:$0xf0] }
   0x7   :  { %1597 = vmatpush.bf16.msra.mxu3 %v1507_v3  ;;  %733 = vmatpush.bf16.msra.mxu1 %v1507_v3  ;;  %v1159_v16 = vld [vmem:[%s2136_s0 + $0xc0] sm:$0xf]  ;;  %v1469_v18 = vld [vmem:[%s2136_s0 + $0xc4] sm:$0xf]  ;;  %v1448_v21 = vld [vmem:[%s2136_s0 + $0x14] sm:$0xf0] }
   0x8   :  { %v1063_v20 = vld [vmem:[%s2136_s0] sm:$0xf]  ;;  %v1445_v22 = vld [vmem:[%s2136_s0 + $0x4] sm:$0xf]  ;;  %v1065_v23 = vld [vmem:[%s2136_s0 + $0x18] sm:$0xf0]  ;;  %v1160_v26 = vor.u32 %v1472_v17, %v1159_v16  ;;  %v1164_v27 = vor.u32 %v1469_v18, %v1161_v19 }
   0x9   :  { %v1516_v24 = vld [vmem:[%s2135_s1 + $0xb8] sm:$0xff]  ;;  %v1064_v28 = vor.u32 %v1448_v21, %v1063_v20  ;;  %v1068_v29 = vor.u32 %v1445_v22, %v1065_v23  ;;  %v1515_v32 = vld [vmem:[%s2135_s1 + $0xb0] sm:$0xff]  ;;  %v1514_v36 = vld [vmem:[%s2135_s1 + $0xa8] sm:$0xff] }
   0xa   :  { %1590 = vmatpush.bf16.msra.mxu2 %v1498_v4  ;;  %685 = vmatpush.bf16.msra.mxu0 %v1498_v4  ;;  %v1524_v25 = vld [vmem:[%s2135_s1 + $0xf8] sm:$0xff]  ;;  %v1523_v33 = vld [vmem:[%s2135_s1 + $0xf0] sm:$0xff]  ;;  %v1522_v37 = vld [vmem:[%s2135_s1 + $0xe8] sm:$0xff] }
   0xb   :  { %1598 = vmatpush.bf16.msra.mxu3 %v1506_v5  ;;  %734 = vmatpush.bf16.msra.mxu1 %v1506_v5  ;;  %v1532_v30 = vld [vmem:[%s2135_s1 + $0x138] sm:$0xff]  ;;  %v1531_v34 = vld [vmem:[%s2135_s1 + $0x130] sm:$0xff]  ;;  %v1530_v38 = vld [vmem:[%s2135_s1 + $0x128] sm:$0xff] }
   0xc   :  { %v1540_v31 = vld [vmem:[%s2135_s1 + $0x178] sm:$0xff]  ;;  %v1539_v35 = vld [vmem:[%s2135_s1 + $0x170] sm:$0xff]  ;;  %v1538_v39 = vld [vmem:[%s2135_s1 + $0x168] sm:$0xff] }
   0xd   :  { %v1183_v40 = vld [vmem:[%s2136_s0 + $0xf0] sm:$0xf]  ;;  %v1513_v41 = vld [vmem:[%s2135_s1 + $0xa0] sm:$0xff]  ;;  %v1478_v43 = vld [vmem:[%s2136_s0 + $0x104] sm:$0xf0] }
   0xe   :  { %1591 = vmatpush.bf16.msra.mxu2 %v1497_v6  ;;  %686 = vmatpush.bf16.msra.mxu0 %v1497_v6  ;;  %v1521_v42 = vld [vmem:[%s2135_s1 + $0xe0] sm:$0xff]  ;;  %v1475_v44 = vld [vmem:[%s2136_s0 + $0xf4] sm:$0xf]  ;;  %v1185_v45 = vld [vmem:[%s2136_s0 + $0x108] sm:$0xf0]  ;;  %v1184_v54 = vor.u32 %v1478_v43, %v1183_v40 }
   0xf   :  { %1599 = vmatpush.bf16.msra.mxu3 %v1505_v7  ;;  %735 = vmatpush.bf16.msra.mxu1 %v1505_v7  ;;  %v1087_v46 = vld [vmem:[%s2136_s0 + $0x30] sm:$0xf]  ;;  %v1454_v47 = vld [vmem:[%s2136_s0 + $0x44] sm:$0xf0]  ;;  %v1451_v48 = vld [vmem:[%s2136_s0 + $0x34] sm:$0xf]  ;;  %v1188_v55 = vor.u32 %v1475_v44, %v1185_v45 }
  0x10   :  { %v1089_v49 = vld [vmem:[%s2136_s0 + $0x48] sm:$0xf0]  ;;  %v1529_v50 = vld [vmem:[%s2135_s1 + $0x120] sm:$0xff]  ;;  %v1512_v52 = vld [vmem:[%s2135_s1 + $0x98] sm:$0xff]  ;;  %v1088_v56 = vor.u32 %v1454_v47, %v1087_v46 }
  0x11   :  { %v1537_v51 = vld [vmem:[%s2135_s1 + $0x160] sm:$0xff]  ;;  %v1520_v53 = vld [vmem:[%s2135_s1 + $0xd8] sm:$0xff]  ;;  %v1092_v57 = vor.u32 %v1451_v48, %v1089_v49  ;;  %v1511_v60 = vld [vmem:[%s2135_s1 + $0x90] sm:$0xff] }
  0x12   :  { %1592 = vmatpush.bf16.msra.mxu2 %v1496_v8  ;;  %687 = vmatpush.bf16.msra.mxu0 %v1496_v8  ;;  %v1528_v58 = vld [vmem:[%s2135_s1 + $0x118] sm:$0xff]  ;;  %v1519_v61 = vld [vmem:[%s2135_s1 + $0xd0] sm:$0xff]  ;;  %v1510_v0 = vld [vmem:[%s2135_s1 + $0x88] sm:$0xff] }
  0x13   :  { %1600 = vmatpush.bf16.msra.mxu3 %v1504_v9  ;;  %736 = vmatpush.bf16.msra.mxu1 %v1504_v9  ;;  %v1536_v59 = vld [vmem:[%s2135_s1 + $0x158] sm:$0xff]  ;;  %v1527_v62 = vld [vmem:[%s2135_s1 + $0x110] sm:$0xff]  ;;  %v1518_v1 = vld [vmem:[%s2135_s1 + $0xc8] sm:$0xff] }
  0x14   :  { %v1535_v63 = vld [vmem:[%s2135_s1 + $0x150] sm:$0xff]  ;;  %v1526_v2 = vld [vmem:[%s2135_s1 + $0x108] sm:$0xff]  ;;  %v1509_v4 = vld [vmem:[%s2135_s1 + $0x80] sm:$0xff] }
  0x15   :  { %v1534_v3 = vld [vmem:[%s2135_s1 + $0x148] sm:$0xff]  ;;  %v1517_v5 = vld [vmem:[%s2135_s1 + $0xc0] sm:$0xff]  ;;  %v1484_v7 = vld [vmem:[%s2136_s0 + $0x134] sm:$0xf0] }
  0x16   :  { %1593 = vmatpush.bf16.msra.mxu2 %v1495_v10  ;;  %688 = vmatpush.bf16.msra.mxu0 %v1495_v10  ;;  %v1207_v6 = vld [vmem:[%s2136_s0 + $0x120] sm:$0xf]  ;;  %v1481_v8 = vld [vmem:[%s2136_s0 + $0x124] sm:$0xf]  ;;  %v1209_v9 = vld [vmem:[%s2136_s0 + $0x138] sm:$0xf0] }
  0x17   :  { %1601 = vmatpush.bf16.msra.mxu3 %v1503_v11  ;;  %737 = vmatpush.bf16.msra.mxu1 %v1503_v11  ;;  %v1111_v10 = vld [vmem:[%s2136_s0 + $0x60] sm:$0xf]  ;;  %v1460_v11 = vld [vmem:[%s2136_s0 + $0x74] sm:$0xf0]  ;;  %v1212_v16 = vor.u32 %v1481_v8, %v1209_v9  ;;  %v1231_v20 = vld [vmem:[%s2136_s0 + $0x150] sm:$0xf] }
  0x18   :  { %v1112_v17 = vor.u32 %v1460_v11, %v1111_v10  ;;  %v1533_v19 = vld [vmem:[%s2135_s1 + $0x140] sm:$0xff]  ;;  %v1490_v21 = vld [vmem:[%s2136_s0 + $0x164] sm:$0xf0]  ;;  %v1487_v22 = vld [vmem:[%s2136_s0 + $0x154] sm:$0xf] }
  0x19   :  { %v1233_v23 = vld [vmem:[%s2136_s0 + $0x168] sm:$0xf0]  ;;  %v1095_v44 = vld [vmem:[%s2136_s0 + $0x38] sm:$0xf]  ;;  %v1455_v45 = vld [vmem:[%s2136_s0 + $0x4c] sm:$0xf0] }
  0x1a   :  { %1594 = vmatpush.bf16.msra.mxu2 %v1494_v12  ;;  %689 = vmatpush.bf16.msra.mxu0 %v1494_v12  ;;  %v1457_v12 = vld [vmem:[%s2136_s0 + $0x64] sm:$0xf]  ;;  %v1452_v46 = vld [vmem:[%s2136_s0 + $0x3c] sm:$0xf]  ;;  %v1097_v47 = vld [vmem:[%s2136_s0 + $0x50] sm:$0xf0] }
  0x1b   :  { %1602 = vmatpush.bf16.msra.mxu3 %v1502_v13  ;;  %738 = vmatpush.bf16.msra.mxu1 %v1502_v13  ;;  %v1113_v13 = vld [vmem:[%s2136_s0 + $0x78] sm:$0xf0]  ;;  %v1103_v48 = vld [vmem:[%s2136_s0 + $0x40] sm:$0xf]  ;;  %v1456_v49 = vld [vmem:[%s2136_s0 + $0x54] sm:$0xf0] }
  0x1c   :  { %v1116_v18 = vor.u32 %v1457_v12, %v1113_v13  ;;  %v1151_v8 = vld [vmem:[%s2136_s0 + $0xa0] sm:$0xf]  ;;  %v1468_v9 = vld [vmem:[%s2136_s0 + $0xb4] sm:$0xf0]  ;;  %v1465_v10 = vld [vmem:[%s2136_s0 + $0xa4] sm:$0xf] }
  0x1d   :  { %v1153_v11 = vld [vmem:[%s2136_s0 + $0xb8] sm:$0xf0] }
  0x1e   :  { %1595 = vmatpush.bf16.msra.mxu2 %v1493_v14  ;;  %690 = vmatpush.bf16.msra.mxu0 %v1493_v14  ;;  %v1525_v14 = vld [vmem:[%s2135_s1 + $0x100] sm:$0xff] }
  0x1f   :  { %1603 = vmatpush.bf16.msra.mxu3 %v1501_v15  ;;  %739 = vmatpush.bf16.msra.mxu1 %v1501_v15  ;;  %v1208_v15 = vor.u32 %v1484_v7, %v1207_v6  ;;  %v1464_v6 = vld [vmem:[%s2136_s0 + $0x9c] sm:$0xf]  ;;  %v1145_v7 = vld [vmem:[%s2136_s0 + $0xb0] sm:$0xf0] }
  0x20   :  { %v1148_v13 = vor.u32 %v1464_v6, %v1145_v7 }
  0x21   :  { %711 = vmatmul.bf16.vlgmr.msra.gmra.mxu2 %v1160_v26  ;;  %691 = vmatmul.bf16.vlgmr.msra.gmra.mxu0 %v1064_v28  ;;  %v1463_v26 = vld [vmem:[%s2136_s0 + $0x94] sm:$0xf]  ;;  %v1232_v28 = vor.u32 %v1490_v21, %v1231_v20  ;;  %v1175_v20 = vld [vmem:[%s2136_s0 + $0xd0] sm:$0xf]  ;;  %v1474_v21 = vld [vmem:[%s2136_s0 + $0xe4] sm:$0xf0] }
  0x22   :  { %781 = vmatpush.bf16.msrb.mxu2 %v1516_v24  ;;  %760 = vmatmul.bf16.vlgmr.msra.gmra.mxu3 %v1164_v27  ;;  %v1135_v24 = vld [vmem:[%s2136_s0 + $0x90] sm:$0xf]  ;;  %v1137_v27 = vld [vmem:[%s2136_s0 + $0xa8] sm:$0xf0] }
  0x23   :  { %830 = vmatpush.bf16.msrb.mxu3 %v1524_v25  ;;  %740 = vmatmul.bf16.vlgmr.msra.gmra.mxu1 %v1068_v29  ;;  %v1466_v25 = vld [vmem:[%s2136_s0 + $0xa4] sm:$0xf0]  ;;  %v1236_v29 = vor.u32 %v1487_v22, %v1233_v23  ;;  %v1471_v22 = vld [vmem:[%s2136_s0 + $0xd4] sm:$0xf]  ;;  %v1177_v23 = vld [vmem:[%s2136_s0 + $0xe8] sm:$0xf0] }
  0x24   :  { %879 = vmatpush.bf16.msrb.mxu0 %v1532_v30  ;;  %928 = vmatpush.bf16.msrb.mxu1 %v1540_v31  ;;  %v1136_v30 = vor.u32 %v1466_v25, %v1135_v24  ;;  %v1140_v31 = vor.u32 %v1463_v26, %v1137_v27  ;;  %v1176_v26 = vor.u32 %v1474_v21, %v1175_v20  ;;  %v1488_v20 = vld [vmem:[%s2136_s0 + $0x15c] sm:$0xf]  ;;  %v1241_v21 = vld [vmem:[%s2136_s0 + $0x170] sm:$0xf0] }
  0x25   :  { %v1180_v27 = vor.u32 %v1471_v22, %v1177_v23  ;;  %v1247_v22 = vld [vmem:[%s2136_s0 + $0x160] sm:$0xf]  ;;  %v1492_v23 = vld [vmem:[%s2136_s0 + $0x174] sm:$0xf0] }
  0x26   :  { %782 = vmatpush.bf16.msrb.mxu2 %v1515_v32  ;;  %v1071_v32 = vld [vmem:[%s2136_s0 + $0x8] sm:$0xf] }
  0x27   :  { %831 = vmatpush.bf16.msrb.mxu3 %v1523_v33  ;;  %v1449_v33 = vld [vmem:[%s2136_s0 + $0x1c] sm:$0xf0] }
  0x28   :  { %880 = vmatpush.bf16.msrb.mxu0 %v1531_v34  ;;  %929 = vmatpush.bf16.msrb.mxu1 %v1539_v35  ;;  %v1446_v34 = vld [vmem:[%s2136_s0 + $0xc] sm:$0xf]  ;;  %v1073_v35 = vld [vmem:[%s2136_s0 + $0x20] sm:$0xf0]  ;;  %v1072_v40 = vor.u32 %v1449_v33, %v1071_v32 }
  0x2a   :  { %783 = vmatpush.bf16.msrb.mxu2 %v1514_v36  ;;  %v1079_v36 = vld [vmem:[%s2136_s0 + $0x10] sm:$0xf] }
  0x2b   :  { %832 = vmatpush.bf16.msrb.mxu3 %v1522_v37  ;;  %v1450_v37 = vld [vmem:[%s2136_s0 + $0x24] sm:$0xf0] }
  0x2c   :  { %881 = vmatpush.bf16.msrb.mxu0 %v1530_v38  ;;  %930 = vmatpush.bf16.msrb.mxu1 %v1538_v39  ;;  %v1447_v38 = vld [vmem:[%s2136_s0 + $0x14] sm:$0xf]  ;;  %v1081_v39 = vld [vmem:[%s2136_s0 + $0x28] sm:$0xf0] }
  0x2d   :  { %v1084_v43 = vor.u32 %v1447_v38, %v1081_v39  ;;  %v1476_v38 = vld [vmem:[%s2136_s0 + $0xfc] sm:$0xf]  ;;  %v1193_v39 = vld [vmem:[%s2136_s0 + $0x110] sm:$0xf0] }
  0x2e   :  { %784 = vmatpush.bf16.msrb.mxu2 %v1513_v41  ;;  %v1076_v41 = vor.u32 %v1446_v34, %v1073_v35 }
  0x2f   :  { %833 = vmatpush.bf16.msrb.mxu3 %v1521_v42  ;;  %v1080_v42 = vor.u32 %v1450_v37, %v1079_v36  ;;  %v1191_v36 = vld [vmem:[%s2136_s0 + $0xf8] sm:$0xf]  ;;  %v1479_v37 = vld [vmem:[%s2136_s0 + $0x10c] sm:$0xf0] }
  0x30   :  { %882 = vmatpush.bf16.msrb.mxu0 %v1529_v50  ;;  %931 = vmatpush.bf16.msrb.mxu1 %v1537_v51  ;;  %v1453_v50 = vld [vmem:[%s2136_s0 + $0x44] sm:$0xf]  ;;  %v1105_v51 = vld [vmem:[%s2136_s0 + $0x58] sm:$0xf0] }
  0x31   :  { %716 = vmatmul.bf16.gmra.mxu2 %v1184_v54  ;;  %696 = vmatmul.bf16.gmra.mxu0 %v1088_v56  ;;  %v1104_v54 = vor.u32 %v1456_v49, %v1103_v48  ;;  %v1119_v56 = vld [vmem:[%s2136_s0 + $0x68] sm:$0xf]  ;;  %v1196_v48 = vor.u32 %v1476_v38, %v1193_v39 }
  0x32   :  { %785 = vmatpush.bf16.msrb.mxu2 %v1512_v52  ;;  %765 = vmatmul.bf16.gmra.mxu3 %v1188_v55  ;;  %v1096_v52 = vor.u32 %v1455_v45, %v1095_v44  ;;  %v1108_v55 = vor.u32 %v1453_v50, %v1105_v51 }
  0x33   :  { %834 = vmatpush.bf16.msrb.mxu3 %v1520_v53  ;;  %745 = vmatmul.bf16.gmra.mxu1 %v1092_v57  ;;  %v1100_v53 = vor.u32 %v1452_v46, %v1097_v47  ;;  %v1461_v57 = vld [vmem:[%s2136_s0 + $0x7c] sm:$0xf0]  ;;  %v1192_v47 = vor.u32 %v1479_v37, %v1191_v36 }
  0x34   :  { %883 = vmatpush.bf16.msrb.mxu0 %v1528_v58  ;;  %932 = vmatpush.bf16.msrb.mxu1 %v1536_v59  ;;  %v1458_v58 = vld [vmem:[%s2136_s0 + $0x6c] sm:$0xf]  ;;  %v1121_v59 = vld [vmem:[%s2136_s0 + $0x80] sm:$0xf0] }
  0x36   :  { %786 = vmatpush.bf16.msrb.mxu2 %v1511_v60  ;;  %v1127_v60 = vld [vmem:[%s2136_s0 + $0x70] sm:$0xf] }
  0x37   :  { %835 = vmatpush.bf16.msrb.mxu3 %v1519_v61  ;;  %v1462_v61 = vld [vmem:[%s2136_s0 + $0x84] sm:$0xf0] }
  0x38   :  { %884 = vmatpush.bf16.msrb.mxu0 %v1527_v62  ;;  %933 = vmatpush.bf16.msrb.mxu1 %v1535_v63  ;;  %v1459_v62 = vld [vmem:[%s2136_s0 + $0x74] sm:$0xf]  ;;  %v1129_v63 = vld [vmem:[%s2136_s0 + $0x88] sm:$0xf0] }
  0x3a   :  { %787 = vmatpush.bf16.msrb.mxu2 %v1510_v0  ;;  %v1120_v0 = vor.u32 %v1461_v57, %v1119_v56 }
  0x3b   :  { %836 = vmatpush.bf16.msrb.mxu3 %v1518_v1  ;;  %v1124_v1 = vor.u32 %v1458_v58, %v1121_v59  ;;  %v1215_v59 = vld [vmem:[%s2136_s0 + $0x128] sm:$0xf] }
  0x3c   :  { %885 = vmatpush.bf16.msrb.mxu0 %v1526_v2  ;;  %934 = vmatpush.bf16.msrb.mxu1 %v1534_v3  ;;  %v1128_v2 = vor.u32 %v1462_v61, %v1127_v60  ;;  %v1132_v3 = vor.u32 %v1459_v62, %v1129_v63  ;;  %v1485_v60 = vld [vmem:[%s2136_s0 + $0x13c] sm:$0xf0]  ;;  %v1482_v61 = vld [vmem:[%s2136_s0 + $0x12c] sm:$0xf]  ;;  %v1217_v62 = vld [vmem:[%s2136_s0 + $0x140] sm:$0xf0] }
  0x3d   :  { %v1223_v63 = vld [vmem:[%s2136_s0 + $0x130] sm:$0xf]  ;;  %v1216_v6 = vor.u32 %v1485_v60, %v1215_v59  ;;  %v1220_v7 = vor.u32 %v1482_v61, %v1217_v62 }
  0x3e   :  { %788 = vmatpush.bf16.msrb.mxu2 %v1509_v4  ;;  %v1143_v4 = vld [vmem:[%s2136_s0 + $0x98] sm:$0xf] }
  0x3f   :  { %837 = vmatpush.bf16.msrb.mxu3 %v1517_v5  ;;  %v1467_v5 = vld [vmem:[%s2136_s0 + $0xac] sm:$0xf0] }
  0x40   :  { %886 = vmatpush.bf16.msrb.mxu0 %v1525_v14  ;;  %935 = vmatpush.bf16.msrb.mxu1 %v1533_v19  ;;  %v1144_v12 = vor.u32 %v1467_v5, %v1143_v4  ;;  %v1152_v14 = vor.u32 %v1468_v9, %v1151_v8  ;;  %v1169_v19 = vld [vmem:[%s2136_s0 + $0xe0] sm:$0xf0] }
  0x41   :  { %721 = vmatmul.bf16.gmra.mxu2 %v1208_v15  ;;  %701 = vmatmul.bf16.gmra.mxu0 %v1112_v17  ;;  %v1156_v15 = vor.u32 %v1465_v10, %v1153_v11  ;;  %v1473_v17 = vld [vmem:[%s2136_s0 + $0xdc] sm:$0xf0] }
  0x42   :  { %770 = vmatmul.bf16.gmra.mxu3 %v1212_v16  ;;  %v1167_v16 = vld [vmem:[%s2136_s0 + $0xc8] sm:$0xf] }
  0x43   :  { %750 = vmatmul.bf16.gmra.mxu1 %v1116_v18  ;;  %v1470_v18 = vld [vmem:[%s2136_s0 + $0xcc] sm:$0xf]  ;;  %v1168_v24 = vor.u32 %v1473_v17, %v1167_v16 }
  0x44   :  { %v1172_v25 = vor.u32 %v1470_v18, %v1169_v19  ;;  %v1239_v18 = vld [vmem:[%s2136_s0 + $0x158] sm:$0xf]  ;;  %v1491_v19 = vld [vmem:[%s2136_s0 + $0x16c] sm:$0xf0] }
  0x51   :  { %726 = vmatmul.bf16.gmra.mxu2 %v1232_v28  ;;  %706 = vmatmul.bf16.gmra.mxu0 %v1136_v30 }
  0x52   :  { %775 = vmatmul.bf16.gmra.mxu3 %v1236_v29 }
  0x53   :  { %755 = vmatmul.bf16.gmra.mxu1 %v1140_v31 }
  0x61   :  { %789 = vmatmul.bf16.vlgmr.msrb.gmra.mxu2 %v1072_v40  ;;  %887 = vmatmul.bf16.vlgmr.msrb.gmra.mxu0 %v1080_v42  ;;  %v1199_v40 = vld [vmem:[%s2136_s0 + $0x100] sm:$0xf]  ;;  %v1477_v42 = vld [vmem:[%s2136_s0 + $0x104] sm:$0xf] }
  0x62   :  { %838 = vmatmul.bf16.vlgmr.msrb.gmra.mxu3 %v1076_v41  ;;  %v1480_v41 = vld [vmem:[%s2136_s0 + $0x114] sm:$0xf0] }
  0x63   :  { %936 = vmatmul.bf16.vlgmr.msrb.gmra.mxu1 %v1084_v43  ;;  %v1201_v43 = vld [vmem:[%s2136_s0 + $0x118] sm:$0xf0]  ;;  %v1200_v49 = vor.u32 %v1480_v41, %v1199_v40 }
  0x64   :  { %v1204_v50 = vor.u32 %v1477_v42, %v1201_v43 }
  0x71   :  { %794 = vmatmul.bf16.gmra.mxu2 %v1096_v52  ;;  %892 = vmatmul.bf16.gmra.mxu0 %v1104_v54 }
  0x72   :  { %843 = vmatmul.bf16.gmra.mxu3 %v1100_v53 }
  0x73   :  { %941 = vmatmul.bf16.gmra.mxu1 %v1108_v55 }
  0x81   :  { %799 = vmatmul.bf16.gmra.mxu2 %v1120_v0  ;;  %897 = vmatmul.bf16.gmra.mxu0 %v1128_v2  ;;  %v1486_v0 = vld [vmem:[%s2136_s0 + $0x144] sm:$0xf0]  ;;  %v1225_v2 = vld [vmem:[%s2136_s0 + $0x148] sm:$0xf0] }
  0x82   :  { %848 = vmatmul.bf16.gmra.mxu3 %v1124_v1  ;;  %v1483_v1 = vld [vmem:[%s2136_s0 + $0x134] sm:$0xf]  ;;  %v1224_v8 = vor.u32 %v1486_v0, %v1223_v63 }
  0x83   :  { %946 = vmatmul.bf16.gmra.mxu1 %v1132_v3  ;;  %v1228_v9 = vor.u32 %v1483_v1, %v1225_v2 }
  0x91   :  { %804 = vmatmul.bf16.gmra.mxu2 %v1144_v12  ;;  %902 = vmatmul.bf16.gmra.mxu0 %v1152_v14 }
  0x92   :  { %853 = vmatmul.bf16.gmra.mxu3 %v1148_v13 }
  0x93   :  { %951 = vmatmul.bf16.gmra.mxu1 %v1156_v15 }
  0x9e   :  { %v692_v28 = vpop.f32.mrf.mxu0 }
  0xa0   :  { %v741_v29 = vpop.f32.mrf.mxu1 }
  0xa1   :  { %v1979_v30 = vadd.f32 %v741_v29, %v692_v28  ;;  %809 = vmatmul.bf16.gmra.mxu2 %v1168_v24  ;;  %907 = vmatmul.bf16.gmra.mxu0 %v1176_v26  ;;  %v1489_v24 = vld [vmem:[%s2136_s0 + $0x164] sm:$0xf]  ;;  %v1240_v29 = vor.u32 %v1491_v19, %v1239_v18 }
  0xa2   :  { %858 = vmatmul.bf16.gmra.mxu3 %v1172_v25  ;;  %v1249_v25 = vld [vmem:[%s2136_s0 + $0x178] sm:$0xf0] }
  0xa3   :  { %956 = vmatmul.bf16.gmra.mxu1 %v1180_v27  ;;  %v1252_v36 = vor.u32 %v1489_v24, %v1249_v25 }
  0xa4   :  { %v712_v31 = vpop.f32.mrf.mxu2 }
  0xa5   :  { %v761_v32 = vpop.f32.mrf.mxu3 }
  0xa6   :  { %v1981_v33 = vadd.f32 %v761_v32, %v712_v31  ;;  %v1983_v34 = vpop.f32.mrf.mxu0  ;;  %v1244_v31 = vor.u32 %v1488_v20, %v1241_v21  ;;  %v1248_v32 = vor.u32 %v1492_v23, %v1247_v22 }
  0xa8   :  { %v1985_v35 = vpop.f32.mrf.mxu1 }
  0xa9   :  { %v744_v61 = vadd.f32 %v1985_v35, %v1983_v34 }
  0xac   :  { %v714_v44 = vpop.f32.mrf.mxu2 }
  0xad   :  { %v763_v45 = vpop.f32.mrf.mxu3 }
  0xae   :  { %v2011_v46 = vadd.f32 %v763_v45, %v714_v44  ;;  %v697_v51 = vpop.f32.mrf.mxu0 }
  0xb0   :  { %v746_v52 = vpop.f32.mrf.mxu1 }
  0xb1   :  { %v2013_v53 = vadd.f32 %v746_v52, %v697_v51  ;;  %814 = vmatmul.bf16.gmra.mxu2 %v1192_v47  ;;  %912 = vmatmul.bf16.gmra.mxu0 %v1200_v49 }
  0xb2   :  { %863 = vmatmul.bf16.gmra.mxu3 %v1196_v48 }
  0xb3   :  { %961 = vmatmul.bf16.gmra.mxu1 %v1204_v50 }
  0xb4   :  { %v717_v54 = vpop.f32.mrf.mxu2 }
  0xb5   :  { %v766_v55 = vpop.f32.mrf.mxu3 }
  0xb6   :  { %v2015_v56 = vadd.f32 %v766_v55, %v717_v54  ;;  %v2017_v57 = vpop.f32.mrf.mxu0 }
  0xb8   :  { %v2019_v58 = vpop.f32.mrf.mxu1 }
  0xb9   :  { %v749_v21 = vadd.f32 %v2019_v58, %v2017_v57 }
  0xbc   :  { %v719_v3 = vpop.f32.mrf.mxu2 }
  0xbd   :  { %v768_v4 = vpop.f32.mrf.mxu3 }
  0xbe   :  { %v2045_v5 = vadd.f32 %v768_v4, %v719_v3  ;;  %v702_v10 = vpop.f32.mrf.mxu0 }
  0xc0   :  { %v751_v11 = vpop.f32.mrf.mxu1 }
  0xc1   :  { %v2047_v12 = vadd.f32 %v751_v11, %v702_v10  ;;  %819 = vmatmul.bf16.gmra.mxu2 %v1216_v6  ;;  %917 = vmatmul.bf16.gmra.mxu0 %v1224_v8 }
  0xc2   :  { %868 = vmatmul.bf16.gmra.mxu3 %v1220_v7 }
  0xc3   :  { %966 = vmatmul.bf16.gmra.mxu1 %v1228_v9 }
  0xc4   :  { %v722_v13 = vpop.f32.mrf.mxu2 }
  0xc5   :  { %v771_v14 = vpop.f32.mrf.mxu3 }
  0xc6   :  { %v2049_v15 = vadd.f32 %v771_v14, %v722_v13  ;;  %v2051_v16 = vpop.f32.mrf.mxu0 }
  0xc8   :  { %v2053_v17 = vpop.f32.mrf.mxu1 }
  0xcc   :  { %v724_v26 = vpop.f32.mrf.mxu2 }
  0xcd   :  { %v773_v27 = vpop.f32.mrf.mxu3 }
  0xce   :  { %v2079_v28 = vadd.f32 %v773_v27, %v724_v26  ;;  %v707_v37 = vpop.f32.mrf.mxu0 }
  0xd0   :  { %v756_v38 = vpop.f32.mrf.mxu1 }
  0xd1   :  { %v2081_v39 = vadd.f32 %v756_v38, %v707_v37  ;;  %824 = vmatmul.bf16.gmra.mxu2 %v1240_v29  ;;  %922 = vmatmul.bf16.gmra.mxu0 %v1248_v32 }
  0xd2   :  { %873 = vmatmul.bf16.gmra.mxu3 %v1244_v31 }
  0xd3   :  { %971 = vmatmul.bf16.gmra.mxu1 %v1252_v36 }
  0xd4   :  { %v727_v40 = vpop.f32.mrf.mxu2 }
  0xd5   :  { %v776_v41 = vpop.f32.mrf.mxu3 }
  0xd6   :  { %v2083_v42 = vadd.f32 %v776_v41, %v727_v40  ;;  %v2085_v43 = vpop.f32.mrf.mxu0 }
  0xd8   :  { %v2087_v44 = vpop.f32.mrf.mxu1 }
  0xdc   :  { %v729_v45 = vpop.f32.mrf.mxu2 }
  0xdd   :  { %v778_v47 = vpop.f32.mrf.mxu3 }
  0xde   :  { %v2089_v48 = vadd.f32 %v778_v47, %v729_v45  ;;  %v888_v49 = vpop.f32.mrf.mxu0 }
  0xe0   :  { %v937_v50 = vpop.f32.mrf.mxu1 }
  0xe4   :  { %v790_v51 = vpop.f32.mrf.mxu2 }
  0xe5   :  { %v839_v52 = vpop.f32.mrf.mxu3  ;;  %v791_v54 = vadd.f32 %v790_v51, %v1979_v30  ;;  %v754_v51 = vadd.f32 %v2053_v17, %v2051_v16 }
  0xe6   :  { %v890_v59 = vpop.f32.mrf.mxu0 }
  0xe7   :  { %v840_v55 = vadd.f32 %v839_v52, %v791_v54 }
  0xe8   :  { %v939_v60 = vpop.f32.mrf.mxu1 }
  0xe9   :  { %v889_v62 = vadd.f32 %v888_v49, %v840_v55 }
  0xeb   :  { %v938_v2 = vadd.f32 %v937_v50, %v889_v62 }
  0xec   :  { %v792_v63 = vpop.f32.mrf.mxu2 }
  0xed   :  { %v841_v0 = vpop.f32.mrf.mxu3  ;;  %v793_v1 = vadd.f32 %v792_v63, %v744_v61  ;;  %v993_v8 = vmul.f32 0.2, %v938_v2  ;;  %vm977_vm0 = vcmp.gt.f32.partialorder %v938_v2, 0.0 }
  0xee   :  { %v893_v4 = vpop.f32.mrf.mxu0 }
  0xef   :  { %v842_v3 = vadd.f32 %v841_v0, %v793_v1  ;;  %v1009_v14 = vsel %vm977_vm0, %v938_v2, %v993_v8 }
  0xf0   :  { %v942_v6 = vpop.f32.mrf.mxu1 }
  0xf1   :  { %v891_v7 = vadd.f32 %v890_v59, %v842_v3 }
  0xf3   :  { %v940_v9 = vadd.f32 %v939_v60, %v891_v7 }
  0xf4   :  { %v795_v10 = vpop.f32.mrf.mxu2 }
  0xf5   :  { %v844_v30 = vpop.f32.mrf.mxu3  ;;  %vm978_vm1 = vcmp.gt.f32.partialorder %v940_v9, 0.0  ;;  %v994_v11 = vmul.f32 0.2, %v940_v9  ;;  %v796_v13 = vadd.f32 %v795_v10, %v2013_v53 }
  0xf6   :  { %v895_v18 = vpop.f32.mrf.mxu0 }
  0xf7   :  { %v1010_v34 = vsel %vm978_vm1, %v940_v9, %v994_v11  ;;  %v845_v35 = vadd.f32 %v844_v30, %v796_v13  ;;  %v759_v30 = vadd.f32 %v2087_v44, %v2085_v43 }
  0xf8   :  { %v944_v19 = vpop.f32.mrf.mxu1  ;;  %v1544_v20 = vpack.c.bf16 %v1010_v34, %v1009_v14 }
  0xf9   :  { %v894_v22 = vadd.f32 %v893_v4, %v845_v35 }
  0xfa   :  { %1545 = vst [vmem:[%s2137_s2] sm:$0xff] %v1544_v20  }
  0xfb   :  { %v943_v26 = vadd.f32 %v942_v6, %v894_v22 }
  0xfc   :  { %v797_v23 = vpop.f32.mrf.mxu2 }
  0xfd   :  { %v846_v24 = vpop.f32.mrf.mxu3  ;;  %v798_v25 = vadd.f32 %v797_v23, %v749_v21  ;;  %v995_v32 = vmul.f32 0.2, %v943_v26  ;;  %vm979_vm2 = vcmp.gt.f32.partialorder %v943_v26, 0.0 }
  0xfe   :  { %v898_v53 = vpop.f32.mrf.mxu0 }
  0xff   :  { %v847_v27 = vadd.f32 %v846_v24, %v798_v25  ;;  %v1011_v45 = vsel %vm979_vm2, %v943_v26, %v995_v32 }
 0x100   :  { %v947_v29 = vpop.f32.mrf.mxu1 }
 0x101   :  { %v896_v31 = vadd.f32 %v895_v18, %v847_v27 }
 0x103   :  { %v945_v36 = vadd.f32 %v944_v19, %v896_v31 }
 0x104   :  { %v800_v37 = vpop.f32.mrf.mxu2 }
 0x105   :  { %v849_v38 = vpop.f32.mrf.mxu3  ;;  %vm980_vm3 = vcmp.gt.f32.partialorder %v945_v36, 0.0  ;;  %v996_v40 = vmul.f32 0.2, %v945_v36  ;;  %v801_v41 = vadd.f32 %v800_v37, %v2047_v12 }
 0x106   :  { %v900_v47 = vpop.f32.mrf.mxu0 }
 0x107   :  { %v1012_v57 = vsel %vm980_vm3, %v945_v36, %v996_v40  ;;  %v850_v58 = vadd.f32 %v849_v38, %v801_v41 }
 0x108   :  { %v949_v49 = vpop.f32.mrf.mxu1  ;;  %v1549_v50 = vpack.c.bf16 %v1012_v57, %v1011_v45 }
 0x109   :  { %v899_v52 = vadd.f32 %v898_v53, %v850_v58 }
 0x10a   :  { %1581 = vst [vmem:[%s2137_s2 + $0x8] sm:$0xff] %v1549_v50  }
 0x10b   :  { %v948_v60 = vadd.f32 %v947_v29, %v899_v52 }
 0x10c   :  { %v802_v54 = vpop.f32.mrf.mxu2 }
 0x10d   :  { %v851_v55 = vpop.f32.mrf.mxu3  ;;  %v803_v59 = vadd.f32 %v802_v54, %v754_v51  ;;  %v997_v0 = vmul.f32 0.2, %v948_v60  ;;  %vm981_vm4 = vcmp.gt.f32.partialorder %v948_v60, 0.0 }
 0x10e   :  { %v903_v12 = vpop.f32.mrf.mxu0 }
 0x10f   :  { %v852_v61 = vadd.f32 %v851_v55, %v803_v59  ;;  %v1013_v7 = vsel %vm981_vm4, %v948_v60, %v997_v0 }
 0x110   :  { %v952_v62 = vpop.f32.mrf.mxu1 }
 0x111   :  { %v901_v63 = vadd.f32 %v900_v47, %v852_v61 }
 0x113   :  { %v950_v1 = vadd.f32 %v949_v49, %v901_v63 }
 0x114   :  { %v805_v2 = vpop.f32.mrf.mxu2 }
 0x115   :  { %v854_v3 = vpop.f32.mrf.mxu3  ;;  %vm982_vm5 = vcmp.gt.f32.partialorder %v950_v1, 0.0  ;;  %v998_v4 = vmul.f32 0.2, %v950_v1  ;;  %v806_v6 = vadd.f32 %v805_v2, %v2081_v39 }
 0x116   :  { %v905_v8 = vpop.f32.mrf.mxu0 }
 0x117   :  { %v1014_v16 = vsel %vm982_vm5, %v950_v1, %v998_v4  ;;  %v855_v17 = vadd.f32 %v854_v3, %v806_v6 }
 0x118   :  { %v954_v9 = vpop.f32.mrf.mxu1  ;;  %v1554_v10 = vpack.c.bf16 %v1014_v16, %v1013_v7 }
 0x119   :  { %v904_v11 = vadd.f32 %v903_v12, %v855_v17 }
 0x11a   :  { %1582 = vst [vmem:[%s2137_s2 + $0x10] sm:$0xff] %v1554_v10  }
 0x11b   :  { %v953_v35 = vadd.f32 %v952_v62, %v904_v11 }
 0x11c   :  { %v807_v13 = vpop.f32.mrf.mxu2 }
 0x11d   :  { %v856_v14 = vpop.f32.mrf.mxu3  ;;  %v808_v34 = vadd.f32 %v807_v13, %v759_v30  ;;  %v999_v21 = vmul.f32 0.2, %v953_v35  ;;  %vm983_vm6 = vcmp.gt.f32.partialorder %v953_v35, 0.0 }
 0x11e   :  { %v908_v39 = vpop.f32.mrf.mxu0 }
 0x11f   :  { %v857_v18 = vadd.f32 %v856_v14, %v808_v34  ;;  %v1015_v27 = vsel %vm983_vm6, %v953_v35, %v999_v21 }
 0x120   :  { %v957_v19 = vpop.f32.mrf.mxu1 }
 0x121   :  { %v906_v20 = vadd.f32 %v905_v8, %v857_v18 }
 0x123   :  { %v955_v22 = vadd.f32 %v954_v9, %v906_v20 }
 0x124   :  { %v810_v23 = vpop.f32.mrf.mxu2 }
 0x125   :  { %v859_v24 = vpop.f32.mrf.mxu3  ;;  %vm984_vm7 = vcmp.gt.f32.partialorder %v955_v22, 0.0  ;;  %v1000_v25 = vmul.f32 0.2, %v955_v22  ;;  %v811_v26 = vadd.f32 %v810_v23, %v1981_v33 }
 0x126   :  { %v910_v53 = vpop.f32.mrf.mxu0 }
 0x127   :  { %v1016_v43 = vsel %vm984_vm7, %v955_v22, %v1000_v25  ;;  %v860_v44 = vadd.f32 %v859_v24, %v811_v26 }
 0x128   :  { %v959_v29 = vpop.f32.mrf.mxu1  ;;  %v1559_v31 = vpack.c.bf16 %v1016_v43, %v1015_v27 }
 0x129   :  { %v909_v32 = vadd.f32 %v908_v39, %v860_v44 }
 0x12a   :  { %1583 = vst [vmem:[%s2137_s2 + $0x18] sm:$0xff] %v1559_v31  }
 0x12b   :  { %v958_v40 = vadd.f32 %v957_v19, %v909_v32 }
 0x12c   :  { %v812_v36 = vpop.f32.mrf.mxu2 }
 0x12d   :  { %v861_v37 = vpop.f32.mrf.mxu3  ;;  %v813_v38 = vadd.f32 %v812_v36, %v2011_v46  ;;  %v1001_v58 = vmul.f32 0.2, %v958_v40  ;;  %vm985_vm8 = vcmp.gt.f32.partialorder %v958_v40, 0.0 }
 0x12e   :  { %v913_v45 = vpop.f32.mrf.mxu0 }
 0x12f   :  { %v862_v41 = vadd.f32 %v861_v37, %v813_v38  ;;  %v1017_v54 = vsel %vm985_vm8, %v958_v40, %v1001_v58 }
 0x130   :  { %v962_v57 = vpop.f32.mrf.mxu1 }
 0x131   :  { %v911_v33 = vadd.f32 %v910_v53, %v862_v41 }
 0x133   :  { %v960_v47 = vadd.f32 %v959_v29, %v911_v33 }
 0x134   :  { %v815_v49 = vpop.f32.mrf.mxu2 }
 0x135   :  { %v864_v50 = vpop.f32.mrf.mxu3  ;;  %vm986_vm9 = vcmp.gt.f32.partialorder %v960_v47, 0.0  ;;  %v1002_v51 = vmul.f32 0.2, %v960_v47  ;;  %v816_v52 = vadd.f32 %v815_v49, %v2015_v56 }
 0x136   :  { %v915_v60 = vpop.f32.mrf.mxu0 }
 0x137   :  { %v1018_v55 = vsel %vm986_vm9, %v960_v47, %v1002_v51  ;;  %v865_v59 = vadd.f32 %v864_v50, %v816_v52 }
 0x138   :  { %v1564_v61 = vpack.c.bf16 %v1018_v55, %v1017_v54  ;;  %v964_v46 = vpop.f32.mrf.mxu1 }
 0x139   :  { %v914_v12 = vadd.f32 %v913_v45, %v865_v59 }
 0x13a   :  { %1584 = vst [vmem:[%s2137_s2 + $0x20] sm:$0xff] %v1564_v61  }
 0x13b   :  { %v963_v1 = vadd.f32 %v962_v57, %v914_v12 }
 0x13c   :  { %v817_v62 = vpop.f32.mrf.mxu2 }
 0x13d   :  { %v866_v63 = vpop.f32.mrf.mxu3  ;;  %v818_v0 = vadd.f32 %v817_v62, %v2045_v5  ;;  %v1003_v56 = vmul.f32 0.2, %v963_v1  ;;  %vm987_vm10 = vcmp.gt.f32.partialorder %v963_v1, 0.0 }
 0x13e   :  { %v918_v4 = vpop.f32.mrf.mxu0 }
 0x13f   :  { %v867_v2 = vadd.f32 %v866_v63, %v818_v0  ;;  %v1019_v10 = vsel %vm987_vm10, %v963_v1, %v1003_v56 }
 0x140   :  { %v967_v7 = vpop.f32.mrf.mxu1 }
 0x141   :  { %v916_v3 = vadd.f32 %v915_v60, %v867_v2 }
 0x143   :  { %v965_v6 = vadd.f32 %v964_v46, %v916_v3 }
 0x144   :  { %v820_v16 = vpop.f32.mrf.mxu2 }
 0x145   :  { %v869_v17 = vpop.f32.mrf.mxu3  ;;  %vm988_vm11 = vcmp.gt.f32.partialorder %v965_v6, 0.0  ;;  %v1004_v8 = vmul.f32 0.2, %v965_v6  ;;  %v821_v9 = vadd.f32 %v820_v16, %v2049_v15 }
 0x146   :  { %v920_v14 = vpop.f32.mrf.mxu0 }
 0x147   :  { %v1020_v30 = vsel %vm988_vm11, %v965_v6, %v1004_v8  ;;  %v870_v11 = vadd.f32 %v869_v17, %v821_v9 }
 0x148   :  { %v1569_v13 = vpack.c.bf16 %v1020_v30, %v1019_v10  ;;  %v969_v39 = vpop.f32.mrf.mxu1 }
 0x149   :  { %v919_v5 = vadd.f32 %v918_v4, %v870_v11 }
 0x14a   :  { %1585 = vst [vmem:[%s2137_s2 + $0x28] sm:$0xff] %v1569_v13  }
 0x14b   :  { %v968_v19 = vadd.f32 %v967_v7, %v919_v5 }
 0x14c   :  { %v822_v34 = vpop.f32.mrf.mxu2 }
 0x14d   :  { %v871_v35 = vpop.f32.mrf.mxu3  ;;  %v823_v18 = vadd.f32 %v822_v34, %v2079_v28  ;;  %v1005_v22 = vmul.f32 0.2, %v968_v19  ;;  %vm989_vm12 = vcmp.gt.f32.partialorder %v968_v19, 0.0 }
 0x14e   :  { %v923_v27 = vpop.f32.mrf.mxu0 }
 0x14f   :  { %v872_v20 = vadd.f32 %v871_v35, %v823_v18  ;;  %v1021_v43 = vsel %vm989_vm12, %v968_v19, %v1005_v22 }
 0x150   :  { %v972_v31 = vpop.f32.mrf.mxu1 }
 0x151   :  { %v921_v21 = vadd.f32 %v920_v14, %v872_v20 }
 0x153   :  { %v970_v15 = vadd.f32 %v969_v39, %v921_v21 }
 0x154   :  { %v825_v23 = vpop.f32.mrf.mxu2 }
 0x155   :  { %v874_v24 = vpop.f32.mrf.mxu3  ;;  %vm990_vm13 = vcmp.gt.f32.partialorder %v970_v15, 0.0  ;;  %v1006_v25 = vmul.f32 0.2, %v970_v15  ;;  %v826_v26 = vadd.f32 %v825_v23, %v2083_v42 }
 0x156   :  { %v925_v41 = vpop.f32.mrf.mxu0 }
 0x157   :  { %v1022_v44 = vsel %vm990_vm13, %v970_v15, %v1006_v25  ;;  %v875_v53 = vadd.f32 %v874_v24, %v826_v26 }
 0x158   :  { %v1574_v29 = vpack.c.bf16 %v1022_v44, %v1021_v43  ;;  %v974_v42 = vpop.f32.mrf.mxu1 }
 0x159   :  { %v924_v28 = vadd.f32 %v923_v27, %v875_v53 }
 0x15a   :  { %1586 = vst [vmem:[%s2137_s2 + $0x30] sm:$0xff] %v1574_v29  }
 0x15b   :  { %v973_v38 = vadd.f32 %v972_v31, %v924_v28 }
 0x15c   :  { %v827_v32 = vpop.f32.mrf.mxu2 }
 0x15d   :  { %v828_v36 = vadd.f32 %v827_v32, %v2089_v48  ;;  %v876_v37 = vpop.f32.mrf.mxu3  ;;  %v1007_v57 = vmul.f32 0.2, %v973_v38  ;;  %vm991_vm14 = vcmp.gt.f32.partialorder %v973_v38, 0.0 }
 0x15f   :  { %v877_v40 = vadd.f32 %v876_v37, %v828_v36  ;;  %v1023_v47 = vsel %vm991_vm14, %v973_v38, %v1007_v57 }
 0x161   :  { %v926_v45 = vadd.f32 %v925_v41, %v877_v40 }
 0x163   :  { %v975_v33 = vadd.f32 %v974_v42, %v926_v45 }
 0x165   :  { %vm992_vm15 = vcmp.gt.f32.partialorder %v975_v33, 0.0  ;;  %v1008_v58 = vmul.f32 0.2, %v975_v33 }
 0x167   :  { %v1024_v49 = vsel %vm992_vm15, %v975_v33, %v1008_v58 }
 0x168   :  { %v1579_v50 = vpack.c.bf16 %v1024_v49, %v1023_v47 }
 0x16a   :  { %1587 = vst [vmem:[%s2137_s2 + $0x38] sm:$0xff] %v1579_v50  }

// kernel: discriminator_forward.6
= control target key start
LH: loop header
LB: loop body
LE: loop exit
PB: predicated region body
PF: predicated region fallthrough
CT: control target
= control target key end

     0   :  { %s1961_s1 = inlined_call_operand.vmem [shape: bf16[1024,128], index: 1, kind: input, shape index: {}]   ;;  %s1962_s0 = inlined_call_operand.vmem [shape: bf16[64,1024], index: 0, kind: input, shape index: {}]   ;;  %s1963_s2 = inlined_call_operand.vmem [shape: bf16[64,128], index: 2, kind: output, shape index: {0}]   ;;  %s1964_s3 = inlined_call_operand.vmem [shape: f32[1,2,128], index: 3, kind: output, shape index: {1}]  }
   0x1   :  { %v1432_v0 = vld [vmem:[%s1961_s1 + $0x38] sm:$0xff]  ;;  %v1431_v4 = vld [vmem:[%s1961_s1 + $0x30] sm:$0xff]  ;;  %v1430_v8 = vld [vmem:[%s1961_s1 + $0x28] sm:$0xff] }
   0x2   :  { %v1440_v1 = vld [vmem:[%s1961_s1 + $0x78] sm:$0xff]  ;;  %717 = vmatpush.bf16.msra.mxu0 %v1432_v0  ;;  %v1439_v5 = vld [vmem:[%s1961_s1 + $0x70] sm:$0xff]  ;;  %v1438_v9 = vld [vmem:[%s1961_s1 + $0x68] sm:$0xff] }
   0x3   :  { %v1448_v2 = vld [vmem:[%s1961_s1 + $0xb8] sm:$0xff]  ;;  %746 = vmatpush.bf16.msra.mxu1 %v1440_v1  ;;  %v1447_v6 = vld [vmem:[%s1961_s1 + $0xb0] sm:$0xff]  ;;  %v1446_v10 = vld [vmem:[%s1961_s1 + $0xa8] sm:$0xff] }
   0x4   :  { %v1456_v3 = vld [vmem:[%s1961_s1 + $0xf8] sm:$0xff]  ;;  %775 = vmatpush.bf16.msra.mxu2 %v1448_v2  ;;  %v1455_v7 = vld [vmem:[%s1961_s1 + $0xf0] sm:$0xff]  ;;  %v1454_v11 = vld [vmem:[%s1961_s1 + $0xe8] sm:$0xff] }
   0x5   :  { %804 = vmatpush.bf16.msra.mxu3 %v1456_v3  ;;  %v1429_v12 = vld [vmem:[%s1961_s1 + $0x20] sm:$0xff]  ;;  %v1428_v16 = vld [vmem:[%s1961_s1 + $0x18] sm:$0xff]  ;;  %v1427_v20 = vld [vmem:[%s1961_s1 + $0x10] sm:$0xff] }
   0x6   :  { %718 = vmatpush.bf16.msra.mxu0 %v1431_v4  ;;  %v1437_v13 = vld [vmem:[%s1961_s1 + $0x60] sm:$0xff]  ;;  %v1436_v17 = vld [vmem:[%s1961_s1 + $0x58] sm:$0xff]  ;;  %v1435_v21 = vld [vmem:[%s1961_s1 + $0x50] sm:$0xff] }
   0x7   :  { %747 = vmatpush.bf16.msra.mxu1 %v1439_v5  ;;  %v1445_v14 = vld [vmem:[%s1961_s1 + $0xa0] sm:$0xff]  ;;  %v1444_v18 = vld [vmem:[%s1961_s1 + $0x98] sm:$0xff]  ;;  %v1443_v22 = vld [vmem:[%s1961_s1 + $0x90] sm:$0xff] }
   0x8   :  { %776 = vmatpush.bf16.msra.mxu2 %v1447_v6  ;;  %v1453_v15 = vld [vmem:[%s1961_s1 + $0xe0] sm:$0xff]  ;;  %v1452_v19 = vld [vmem:[%s1961_s1 + $0xd8] sm:$0xff]  ;;  %v1451_v23 = vld [vmem:[%s1961_s1 + $0xd0] sm:$0xff] }
   0x9   :  { %805 = vmatpush.bf16.msra.mxu3 %v1455_v7  ;;  %v1426_v24 = vld [vmem:[%s1961_s1 + $0x8] sm:$0xff]  ;;  %v1425_v28 = vld [vmem:[%s1961_s1] sm:$0xff]  ;;  %v1480_v40 = vld [vmem:[%s1961_s1 + $0x1b8] sm:$0xff] }
   0xa   :  { %719 = vmatpush.bf16.msra.mxu0 %v1430_v8  ;;  %v1434_v25 = vld [vmem:[%s1961_s1 + $0x48] sm:$0xff]  ;;  %v1433_v29 = vld [vmem:[%s1961_s1 + $0x40] sm:$0xff]  ;;  %v1464_v41 = vld [vmem:[%s1961_s1 + $0x138] sm:$0xff] }
   0xb   :  { %748 = vmatpush.bf16.msra.mxu1 %v1438_v9  ;;  %v1442_v26 = vld [vmem:[%s1961_s1 + $0x88] sm:$0xff]  ;;  %v1441_v30 = vld [vmem:[%s1961_s1 + $0x80] sm:$0xff]  ;;  %v1488_v46 = vld [vmem:[%s1961_s1 + $0x1f8] sm:$0xff] }
   0xc   :  { %777 = vmatpush.bf16.msra.mxu2 %v1446_v10  ;;  %v1450_v27 = vld [vmem:[%s1961_s1 + $0xc8] sm:$0xff]  ;;  %v1449_v31 = vld [vmem:[%s1961_s1 + $0xc0] sm:$0xff]  ;;  %v1472_v47 = vld [vmem:[%s1961_s1 + $0x178] sm:$0xff] }
   0xd   :  { %806 = vmatpush.bf16.msra.mxu3 %v1454_v11  ;;  %v1011_v32 = vld [vmem:[%s1962_s0] sm:$0xf]  ;;  %v1393_v34 = vld [vmem:[%s1962_s0 + $0x4] sm:$0xf]  ;;  %v1019_v36 = vld [vmem:[%s1962_s0 + $0x8] sm:$0xf] }
   0xe   :  { %720 = vmatpush.bf16.msra.mxu0 %v1429_v12  ;;  %v1397_v33 = vld [vmem:[%s1962_s0 + $0x1c] sm:$0xf0]  ;;  %v1013_v35 = vld [vmem:[%s1962_s0 + $0x20] sm:$0xf0]  ;;  %v1398_v37 = vld [vmem:[%s1962_s0 + $0x24] sm:$0xf0] }
   0xf   :  { %749 = vmatpush.bf16.msra.mxu1 %v1437_v13  ;;  %v1394_v38 = vld [vmem:[%s1962_s0 + $0xc] sm:$0xf]  ;;  %v1012_v42 = vor.u32 %v1397_v33, %v1011_v32  ;;  %v1016_v43 = vor.u32 %v1393_v34, %v1013_v35  ;;  %v1020_v44 = vor.u32 %v1398_v37, %v1019_v36  ;;  %v1479_v48 = vld [vmem:[%s1961_s1 + $0x1b0] sm:$0xff]  ;;  %v1043_v56 = vld [vmem:[%s1962_s0 + $0x40] sm:$0xf] }
  0x10   :  { %778 = vmatpush.bf16.msra.mxu2 %v1445_v14  ;;  %v1021_v39 = vld [vmem:[%s1962_s0 + $0x28] sm:$0xf0]  ;;  %v1463_v49 = vld [vmem:[%s1961_s1 + $0x130] sm:$0xff]  ;;  %v1477_v57 = vld [vmem:[%s1961_s1 + $0x1a0] sm:$0xff] }
  0x11   :  { %807 = vmatpush.bf16.msra.mxu3 %v1453_v15  ;;  %v1024_v45 = vor.u32 %v1394_v38, %v1021_v39  ;;  %v1487_v50 = vld [vmem:[%s1961_s1 + $0x1f0] sm:$0xff]  ;;  %v1478_v52 = vld [vmem:[%s1961_s1 + $0x1a8] sm:$0xff]  ;;  %v1461_v58 = vld [vmem:[%s1961_s1 + $0x120] sm:$0xff] }
  0x12   :  { %721 = vmatpush.bf16.msra.mxu0 %v1428_v16  ;;  %v1471_v51 = vld [vmem:[%s1961_s1 + $0x170] sm:$0xff]  ;;  %v1462_v53 = vld [vmem:[%s1961_s1 + $0x128] sm:$0xff]  ;;  %v1405_v59 = vld [vmem:[%s1962_s0 + $0x5c] sm:$0xf0] }
  0x13   :  { %750 = vmatpush.bf16.msra.mxu1 %v1436_v17  ;;  %v1486_v54 = vld [vmem:[%s1961_s1 + $0x1e8] sm:$0xff]  ;;  %v1401_v60 = vld [vmem:[%s1962_s0 + $0x44] sm:$0xf]  ;;  %v1476_v4 = vld [vmem:[%s1961_s1 + $0x198] sm:$0xff]  ;;  %v1044_v6 = vor.u32 %v1405_v59, %v1043_v56 }
  0x14   :  { %779 = vmatpush.bf16.msra.mxu2 %v1444_v18  ;;  %v1470_v55 = vld [vmem:[%s1961_s1 + $0x168] sm:$0xff]  ;;  %v1045_v61 = vld [vmem:[%s1962_s0 + $0x60] sm:$0xf0]  ;;  %v1460_v5 = vld [vmem:[%s1961_s1 + $0x118] sm:$0xff] }
  0x15   :  { %808 = vmatpush.bf16.msra.mxu3 %v1452_v19  ;;  %v1051_v62 = vld [vmem:[%s1962_s0 + $0x48] sm:$0xf]  ;;  %v1402_v0 = vld [vmem:[%s1962_s0 + $0x4c] sm:$0xf]  ;;  %v1485_v2 = vld [vmem:[%s1961_s1 + $0x1e0] sm:$0xff]  ;;  %v1048_v7 = vor.u32 %v1401_v60, %v1045_v61 }
  0x16   :  { %722 = vmatpush.bf16.msra.mxu0 %v1427_v20  ;;  %v1406_v63 = vld [vmem:[%s1962_s0 + $0x64] sm:$0xf0]  ;;  %v1053_v1 = vld [vmem:[%s1962_s0 + $0x68] sm:$0xf0]  ;;  %v1469_v3 = vld [vmem:[%s1961_s1 + $0x160] sm:$0xff] }
  0x17   :  { %751 = vmatpush.bf16.msra.mxu1 %v1435_v21  ;;  %v1052_v8 = vor.u32 %v1406_v63, %v1051_v62  ;;  %v1056_v9 = vor.u32 %v1402_v0, %v1053_v1  ;;  %v1484_v10 = vld [vmem:[%s1961_s1 + $0x1d8] sm:$0xff]  ;;  %v1475_v12 = vld [vmem:[%s1961_s1 + $0x190] sm:$0xff]  ;;  %v1474_v16 = vld [vmem:[%s1961_s1 + $0x188] sm:$0xff] }
  0x18   :  { %780 = vmatpush.bf16.msra.mxu2 %v1443_v22  ;;  %v1468_v11 = vld [vmem:[%s1961_s1 + $0x158] sm:$0xff]  ;;  %v1459_v13 = vld [vmem:[%s1961_s1 + $0x110] sm:$0xff]  ;;  %v1458_v17 = vld [vmem:[%s1961_s1 + $0x108] sm:$0xff] }
  0x19   :  { %809 = vmatpush.bf16.msra.mxu3 %v1451_v23  ;;  %v1483_v14 = vld [vmem:[%s1961_s1 + $0x1d0] sm:$0xff]  ;;  %v1482_v18 = vld [vmem:[%s1961_s1 + $0x1c8] sm:$0xff]  ;;  %v1075_v20 = vld [vmem:[%s1962_s0 + $0x80] sm:$0xf] }
  0x1a   :  { %723 = vmatpush.bf16.msra.mxu0 %v1426_v24  ;;  %v1467_v15 = vld [vmem:[%s1961_s1 + $0x150] sm:$0xff]  ;;  %v1466_v19 = vld [vmem:[%s1961_s1 + $0x148] sm:$0xff]  ;;  %v1473_v21 = vld [vmem:[%s1961_s1 + $0x180] sm:$0xff] }
  0x1b   :  { %752 = vmatpush.bf16.msra.mxu1 %v1434_v25  ;;  %v1457_v22 = vld [vmem:[%s1961_s1 + $0x100] sm:$0xff]  ;;  %v1059_v60 = vld [vmem:[%s1962_s0 + $0x50] sm:$0xf]  ;;  %v1403_v62 = vld [vmem:[%s1962_s0 + $0x54] sm:$0xf] }
  0x1c   :  { %781 = vmatpush.bf16.msra.mxu2 %v1442_v26  ;;  %v1413_v23 = vld [vmem:[%s1962_s0 + $0x9c] sm:$0xf0]  ;;  %v1409_v24 = vld [vmem:[%s1962_s0 + $0x84] sm:$0xf]  ;;  %v1083_v26 = vld [vmem:[%s1962_s0 + $0x88] sm:$0xf] }
  0x1d   :  { %810 = vmatpush.bf16.msra.mxu3 %v1450_v27  ;;  %v1077_v25 = vld [vmem:[%s1962_s0 + $0xa0] sm:$0xf0]  ;;  %v1414_v27 = vld [vmem:[%s1962_s0 + $0xa4] sm:$0xf0]  ;;  %v1076_v32 = vor.u32 %v1413_v23, %v1075_v20  ;;  %v1107_v36 = vld [vmem:[%s1962_s0 + $0xc0] sm:$0xf] }
  0x1e   :  { %724 = vmatpush.bf16.msra.mxu0 %v1425_v28  ;;  %v1410_v28 = vld [vmem:[%s1962_s0 + $0x8c] sm:$0xf]  ;;  %v1080_v33 = vor.u32 %v1409_v24, %v1077_v25  ;;  %v1084_v34 = vor.u32 %v1414_v27, %v1083_v26  ;;  %v1421_v37 = vld [vmem:[%s1962_s0 + $0xdc] sm:$0xf0]  ;;  %v1417_v38 = vld [vmem:[%s1962_s0 + $0xc4] sm:$0xf] }
  0x1f   :  { %753 = vmatpush.bf16.msra.mxu1 %v1433_v29  ;;  %v1085_v29 = vld [vmem:[%s1962_s0 + $0xa8] sm:$0xf0]  ;;  %v1109_v39 = vld [vmem:[%s1962_s0 + $0xe0] sm:$0xf0]  ;;  %v1407_v61 = vld [vmem:[%s1962_s0 + $0x6c] sm:$0xf0] }
  0x20   :  { %782 = vmatpush.bf16.msra.mxu2 %v1441_v30  ;;  %v1481_v30 = vld [vmem:[%s1961_s1 + $0x1c0] sm:$0xff]  ;;  %v1088_v35 = vor.u32 %v1410_v28, %v1085_v29  ;;  %v1061_v63 = vld [vmem:[%s1962_s0 + $0x70] sm:$0xf0]  ;;  %v1067_v0 = vld [vmem:[%s1962_s0 + $0x58] sm:$0xf] }
  0x21   :  { %811 = vmatpush.bf16.msra.mxu3 %v1449_v31  ;;  %725 = vmatmul.bf16.vlgmr.msra.gmra.mxu0 %v1012_v42  ;;  %v1465_v31 = vld [vmem:[%s1961_s1 + $0x140] sm:$0xff]  ;;  %v1418_v42 = vld [vmem:[%s1962_s0 + $0xcc] sm:$0xf]  ;;  %v1408_v1 = vld [vmem:[%s1962_s0 + $0x74] sm:$0xf0] }
  0x22   :  { %833 = vmatpush.bf16.msrb.mxu0 %v1464_v41  ;;  %754 = vmatmul.bf16.vlgmr.msra.gmra.mxu1 %v1016_v43  ;;  %v1422_v41 = vld [vmem:[%s1962_s0 + $0xe4] sm:$0xf0]  ;;  %v1117_v43 = vld [vmem:[%s1962_s0 + $0xe8] sm:$0xf0]  ;;  %v1123_v20 = vld [vmem:[%s1962_s0 + $0xd0] sm:$0xf] }
  0x23   :  { %783 = vmatmul.bf16.vlgmr.msra.gmra.mxu2 %v1020_v44  ;;  %862 = vmatpush.bf16.msrb.mxu1 %v1472_v47  ;;  %v1108_v44 = vor.u32 %v1421_v37, %v1107_v36  ;;  %v1120_v47 = vor.u32 %v1418_v42, %v1117_v43  ;;  %v1125_v23 = vld [vmem:[%s1962_s0 + $0xf0] sm:$0xf0]  ;;  %v1131_v24 = vld [vmem:[%s1962_s0 + $0xd8] sm:$0xf]  ;;  %v1420_v26 = vld [vmem:[%s1962_s0 + $0xdc] sm:$0xf] }
  0x24   :  { %891 = vmatpush.bf16.msrb.mxu2 %v1480_v40  ;;  %812 = vmatmul.bf16.vlgmr.msra.gmra.mxu3 %v1024_v45  ;;  %v1115_v40 = vld [vmem:[%s1962_s0 + $0xc8] sm:$0xf]  ;;  %v1112_v45 = vor.u32 %v1417_v38, %v1109_v39  ;;  %v1424_v25 = vld [vmem:[%s1962_s0 + $0xf4] sm:$0xf0]  ;;  %v1133_v27 = vld [vmem:[%s1962_s0 + $0xf8] sm:$0xf0] }
  0x25   :  { %920 = vmatpush.bf16.msrb.mxu3 %v1488_v46  ;;  %v1116_v46 = vor.u32 %v1422_v41, %v1115_v40 }
  0x26   :  { %834 = vmatpush.bf16.msrb.mxu0 %v1463_v49  ;;  %v1399_v49 = vld [vmem:[%s1962_s0 + $0x2c] sm:$0xf0] }
  0x27   :  { %863 = vmatpush.bf16.msrb.mxu1 %v1471_v51  ;;  %v1029_v51 = vld [vmem:[%s1962_s0 + $0x30] sm:$0xf0] }
  0x28   :  { %892 = vmatpush.bf16.msrb.mxu2 %v1479_v48  ;;  %v1027_v48 = vld [vmem:[%s1962_s0 + $0x10] sm:$0xf] }
  0x29   :  { %921 = vmatpush.bf16.msrb.mxu3 %v1487_v50  ;;  %v1395_v50 = vld [vmem:[%s1962_s0 + $0x14] sm:$0xf]  ;;  %v1028_v56 = vor.u32 %v1399_v49, %v1027_v48 }
  0x2a   :  { %835 = vmatpush.bf16.msrb.mxu0 %v1462_v53  ;;  %v1400_v53 = vld [vmem:[%s1962_s0 + $0x34] sm:$0xf0] }
  0x2b   :  { %864 = vmatpush.bf16.msrb.mxu1 %v1470_v55  ;;  %v1037_v55 = vld [vmem:[%s1962_s0 + $0x38] sm:$0xf0] }
  0x2c   :  { %893 = vmatpush.bf16.msrb.mxu2 %v1478_v52  ;;  %v1035_v52 = vld [vmem:[%s1962_s0 + $0x18] sm:$0xf] }
  0x2d   :  { %922 = vmatpush.bf16.msrb.mxu3 %v1486_v54  ;;  %v1396_v54 = vld [vmem:[%s1962_s0 + $0x1c] sm:$0xf] }
  0x2e   :  { %836 = vmatpush.bf16.msrb.mxu0 %v1461_v58  ;;  %v1036_v58 = vor.u32 %v1400_v53, %v1035_v52  ;;  %v1040_v59 = vor.u32 %v1396_v54, %v1037_v55 }
  0x2f   :  { %865 = vmatpush.bf16.msrb.mxu1 %v1469_v3  ;;  %v1069_v3 = vld [vmem:[%s1962_s0 + $0x78] sm:$0xf0] }
  0x30   :  { %894 = vmatpush.bf16.msrb.mxu2 %v1477_v57  ;;  %v1032_v57 = vor.u32 %v1395_v50, %v1029_v51 }
  0x31   :  { %923 = vmatpush.bf16.msrb.mxu3 %v1485_v2  ;;  %730 = vmatmul.bf16.gmra.mxu0 %v1044_v6  ;;  %v1404_v2 = vld [vmem:[%s1962_s0 + $0x5c] sm:$0xf]  ;;  %v1068_v6 = vor.u32 %v1408_v1, %v1067_v0 }
  0x32   :  { %837 = vmatpush.bf16.msrb.mxu0 %v1460_v5  ;;  %759 = vmatmul.bf16.gmra.mxu1 %v1048_v7  ;;  %v1064_v5 = vor.u32 %v1403_v62, %v1061_v63  ;;  %v1072_v7 = vor.u32 %v1404_v2, %v1069_v3 }
  0x33   :  { %788 = vmatmul.bf16.gmra.mxu2 %v1052_v8  ;;  %866 = vmatpush.bf16.msrb.mxu1 %v1468_v11  ;;  %v1091_v8 = vld [vmem:[%s1962_s0 + $0x90] sm:$0xf]  ;;  %v1093_v11 = vld [vmem:[%s1962_s0 + $0xb0] sm:$0xf0] }
  0x34   :  { %895 = vmatpush.bf16.msrb.mxu2 %v1476_v4  ;;  %817 = vmatmul.bf16.gmra.mxu3 %v1056_v9  ;;  %v1060_v4 = vor.u32 %v1407_v61, %v1059_v60  ;;  %v1415_v9 = vld [vmem:[%s1962_s0 + $0xac] sm:$0xf0] }
  0x35   :  { %924 = vmatpush.bf16.msrb.mxu3 %v1484_v10  ;;  %v1411_v10 = vld [vmem:[%s1962_s0 + $0x94] sm:$0xf] }
  0x36   :  { %838 = vmatpush.bf16.msrb.mxu0 %v1459_v13  ;;  %v1416_v13 = vld [vmem:[%s1962_s0 + $0xb4] sm:$0xf0] }
  0x37   :  { %867 = vmatpush.bf16.msrb.mxu1 %v1467_v15  ;;  %v1101_v15 = vld [vmem:[%s1962_s0 + $0xb8] sm:$0xf0] }
  0x38   :  { %896 = vmatpush.bf16.msrb.mxu2 %v1475_v12  ;;  %v1099_v12 = vld [vmem:[%s1962_s0 + $0x98] sm:$0xf] }
  0x39   :  { %925 = vmatpush.bf16.msrb.mxu3 %v1483_v14  ;;  %v1412_v14 = vld [vmem:[%s1962_s0 + $0x9c] sm:$0xf] }
  0x3a   :  { %839 = vmatpush.bf16.msrb.mxu0 %v1458_v17  ;;  %v1096_v17 = vor.u32 %v1411_v10, %v1093_v11 }
  0x3b   :  { %868 = vmatpush.bf16.msrb.mxu1 %v1466_v19  ;;  %v1104_v19 = vor.u32 %v1412_v14, %v1101_v15 }
  0x3c   :  { %897 = vmatpush.bf16.msrb.mxu2 %v1474_v16  ;;  %v1092_v16 = vor.u32 %v1415_v9, %v1091_v8 }
  0x3d   :  { %926 = vmatpush.bf16.msrb.mxu3 %v1482_v18  ;;  %v1100_v18 = vor.u32 %v1416_v13, %v1099_v12 }
  0x3e   :  { %840 = vmatpush.bf16.msrb.mxu0 %v1457_v22  ;;  %v1419_v22 = vld [vmem:[%s1962_s0 + $0xd4] sm:$0xf] }
  0x3f   :  { %869 = vmatpush.bf16.msrb.mxu1 %v1465_v31  ;;  %v1128_v29 = vor.u32 %v1419_v22, %v1125_v23  ;;  %v1136_v31 = vor.u32 %v1420_v26, %v1133_v27 }
  0x40   :  { %898 = vmatpush.bf16.msrb.mxu2 %v1473_v21  ;;  %v1423_v21 = vld [vmem:[%s1962_s0 + $0xec] sm:$0xf0] }
  0x41   :  { %927 = vmatpush.bf16.msrb.mxu3 %v1481_v30  ;;  %735 = vmatmul.bf16.gmra.mxu0 %v1076_v32  ;;  %v1124_v28 = vor.u32 %v1423_v21, %v1123_v20  ;;  %v1132_v30 = vor.u32 %v1424_v25, %v1131_v24 }
  0x42   :  { %764 = vmatmul.bf16.gmra.mxu1 %v1080_v33 }
  0x43   :  { %793 = vmatmul.bf16.gmra.mxu2 %v1084_v34 }
  0x44   :  { %822 = vmatmul.bf16.gmra.mxu3 %v1088_v35 }
  0x51   :  { %740 = vmatmul.bf16.gmra.mxu0 %v1108_v44 }
  0x52   :  { %769 = vmatmul.bf16.gmra.mxu1 %v1112_v45 }
  0x53   :  { %798 = vmatmul.bf16.gmra.mxu2 %v1116_v46 }
  0x54   :  { %827 = vmatmul.bf16.gmra.mxu3 %v1120_v47 }
  0x61   :  { %841 = vmatmul.bf16.vlgmr.msrb.gmra.mxu0 %v1028_v56 }
  0x62   :  { %870 = vmatmul.bf16.vlgmr.msrb.gmra.mxu1 %v1032_v57 }
  0x63   :  { %899 = vmatmul.bf16.vlgmr.msrb.gmra.mxu2 %v1036_v58 }
  0x64   :  { %928 = vmatmul.bf16.vlgmr.msrb.gmra.mxu3 %v1040_v59 }
  0x71   :  { %846 = vmatmul.bf16.gmra.mxu0 %v1060_v4 }
  0x72   :  { %875 = vmatmul.bf16.gmra.mxu1 %v1064_v5 }
  0x73   :  { %904 = vmatmul.bf16.gmra.mxu2 %v1068_v6 }
  0x74   :  { %933 = vmatmul.bf16.gmra.mxu3 %v1072_v7 }
  0x81   :  { %851 = vmatmul.bf16.gmra.mxu0 %v1092_v16 }
  0x82   :  { %880 = vmatmul.bf16.gmra.mxu1 %v1096_v17 }
  0x83   :  { %909 = vmatmul.bf16.gmra.mxu2 %v1100_v18 }
  0x84   :  { %938 = vmatmul.bf16.gmra.mxu3 %v1104_v19 }
  0x91   :  { %856 = vmatmul.bf16.gmra.mxu0 %v1124_v28 }
  0x92   :  { %885 = vmatmul.bf16.gmra.mxu1 %v1128_v29 }
  0x93   :  { %914 = vmatmul.bf16.gmra.mxu2 %v1132_v30 }
  0x94   :  { %943 = vmatmul.bf16.gmra.mxu3 %v1136_v31 }
  0x9e   :  { %v726_v32 = vpop.f32.mrf.mxu0 }
  0x9f   :  { %v755_v33 = vpop.f32.mrf.mxu1 }
  0xa0   :  { %v756_v34 = vadd.f32 %v755_v33, %v726_v32 }
  0xa6   :  { %v784_v35 = vpop.f32.mrf.mxu2  ;;  %v728_v38 = vpop.f32.mrf.mxu0 }
  0xa7   :  { %v813_v36 = vpop.f32.mrf.mxu3  ;;  %v785_v37 = vadd.f32 %v784_v35, %v756_v34  ;;  %v757_v39 = vpop.f32.mrf.mxu1 }
  0xa8   :  { %v758_v11 = vadd.f32 %v757_v39, %v728_v38 }
  0xa9   :  { %v814_v40 = vadd.f32 %v813_v36, %v785_v37 }
  0xae   :  { %v786_v41 = vpop.f32.mrf.mxu2  ;;  %v731_v43 = vpop.f32.mrf.mxu0 }
  0xaf   :  { %v815_v42 = vpop.f32.mrf.mxu3  ;;  %v760_v44 = vpop.f32.mrf.mxu1  ;;  %v787_v12 = vadd.f32 %v786_v41, %v758_v11 }
  0xb0   :  { %v761_v45 = vadd.f32 %v760_v44, %v731_v43 }
  0xb1   :  { %v816_v15 = vadd.f32 %v815_v42, %v787_v12 }
  0xb6   :  { %v789_v46 = vpop.f32.mrf.mxu2  ;;  %v733_v49 = vpop.f32.mrf.mxu0 }
  0xb7   :  { %v818_v47 = vpop.f32.mrf.mxu3  ;;  %v790_v48 = vadd.f32 %v789_v46, %v761_v45  ;;  %v762_v50 = vpop.f32.mrf.mxu1 }
  0xb8   :  { %v763_v28 = vadd.f32 %v762_v50, %v733_v49 }
  0xb9   :  { %v819_v51 = vadd.f32 %v818_v47, %v790_v48 }
  0xbe   :  { %v791_v52 = vpop.f32.mrf.mxu2  ;;  %v736_v54 = vpop.f32.mrf.mxu0 }
  0xbf   :  { %v820_v53 = vpop.f32.mrf.mxu3  ;;  %v765_v55 = vpop.f32.mrf.mxu1  ;;  %v792_v32 = vadd.f32 %v791_v52, %v763_v28 }
  0xc0   :  { %v766_v56 = vadd.f32 %v765_v55, %v736_v54 }
  0xc1   :  { %v821_v37 = vadd.f32 %v820_v53, %v792_v32 }
  0xc6   :  { %v794_v57 = vpop.f32.mrf.mxu2  ;;  %v738_v60 = vpop.f32.mrf.mxu0 }
  0xc7   :  { %v823_v58 = vpop.f32.mrf.mxu3  ;;  %v795_v59 = vadd.f32 %v794_v57, %v766_v56  ;;  %v767_v61 = vpop.f32.mrf.mxu1 }
  0xc8   :  { %v768_v57 = vadd.f32 %v767_v61, %v738_v60 }
  0xc9   :  { %v824_v62 = vadd.f32 %v823_v58, %v795_v59 }
  0xce   :  { %v796_v63 = vpop.f32.mrf.mxu2  ;;  %v1918_v1 = vpop.f32.mrf.mxu0 }
  0xcf   :  { %v1916_v0 = vpop.f32.mrf.mxu3  ;;  %v1920_v2 = vpop.f32.mrf.mxu1  ;;  %v797_v59 = vadd.f32 %v796_v63, %v768_v57 }
  0xd0   :  { %v771_v60 = vadd.f32 %v1920_v2, %v1918_v1 }
  0xd6   :  { %v1922_v3 = vpop.f32.mrf.mxu2  ;;  %v1926_v5 = vpop.f32.mrf.mxu0 }
  0xd7   :  { %v1924_v4 = vpop.f32.mrf.mxu3  ;;  %v1928_v6 = vpop.f32.mrf.mxu1 }
  0xd8   :  { %v773_v28 = vadd.f32 %v1928_v6, %v1926_v5 }
  0xde   :  { %v1930_v7 = vpop.f32.mrf.mxu2  ;;  %v842_v9 = vpop.f32.mrf.mxu0 }
  0xdf   :  { %v1932_v8 = vpop.f32.mrf.mxu3  ;;  %v871_v10 = vpop.f32.mrf.mxu1  ;;  %v843_v16 = vadd.f32 %v842_v9, %v814_v40 }
  0xe1   :  { %v872_v20 = vadd.f32 %v871_v10, %v843_v16 }
  0xe6   :  { %v900_v13 = vpop.f32.mrf.mxu2  ;;  %v844_v17 = vpop.f32.mrf.mxu0 }
  0xe7   :  { %v929_v14 = vpop.f32.mrf.mxu3  ;;  %v873_v18 = vpop.f32.mrf.mxu1  ;;  %v845_v19 = vadd.f32 %v844_v17, %v816_v15  ;;  %v901_v21 = vadd.f32 %v900_v13, %v872_v20  ;;  %v826_v13 = vadd.f32 %v1916_v0, %v797_v59 }
  0xe9   :  { %v874_v22 = vadd.f32 %v873_v18, %v845_v19  ;;  %v930_v29 = vadd.f32 %v929_v14, %v901_v21  ;;  %v800_v18 = vadd.f32 %v1922_v3, %v771_v60 }
  0xeb   :  { %v979_v42 = vmul.f32 %v930_v29, %v930_v29  ;;  %v829_v0 = vadd.f32 %v1924_v4, %v800_v18 }
  0xee   :  { %v902_v23 = vpop.f32.mrf.mxu2  ;;  %v847_v26 = vpop.f32.mrf.mxu0 }
  0xef   :  { %v931_v24 = vpop.f32.mrf.mxu3  ;;  %v903_v25 = vadd.f32 %v902_v23, %v874_v22  ;;  %v876_v27 = vpop.f32.mrf.mxu1  ;;  %v848_v31 = vadd.f32 %v847_v26, %v819_v51 }
  0xf1   :  { %v932_v30 = vadd.f32 %v931_v24, %v903_v25  ;;  %v877_v34 = vadd.f32 %v876_v27, %v848_v31 }
  0xf3   :  { %v1492_v33 = vpack.c.bf16 %v932_v30, %v930_v29  ;;  %v980_v38 = vmul.f32 %v932_v30, %v932_v30  ;;  %v965_v43 = vadd.f32 %v932_v30, %v930_v29  ;;  %v802_v30 = vadd.f32 %v1930_v7, %v773_v28 }
  0xf5   :  { %1493 = vst [vmem:[%s1963_s2] sm:$0xff] %v1492_v33   ;;  %v987_v46 = vadd.f32 %v980_v38, %v979_v42  ;;  %v831_v4 = vadd.f32 %v1932_v8, %v802_v30 }
  0xf6   :  { %v905_v35 = vpop.f32.mrf.mxu2  ;;  %v849_v40 = vpop.f32.mrf.mxu0 }
  0xf7   :  { %v934_v36 = vpop.f32.mrf.mxu3  ;;  %v906_v39 = vadd.f32 %v905_v35, %v877_v34  ;;  %v878_v41 = vpop.f32.mrf.mxu1  ;;  %v850_v45 = vadd.f32 %v849_v40, %v821_v37 }
  0xf9   :  { %v935_v44 = vadd.f32 %v934_v36, %v906_v39  ;;  %v879_v50 = vadd.f32 %v878_v41, %v850_v45 }
  0xfb   :  { %v966_v47 = vadd.f32 %v965_v43, %v935_v44  ;;  %v981_v48 = vmul.f32 %v935_v44, %v935_v44 }
  0xfd   :  { %v988_v49 = vadd.f32 %v987_v46, %v981_v48 }
  0xfe   :  { %v907_v51 = vpop.f32.mrf.mxu2  ;;  %v852_v55 = vpop.f32.mrf.mxu0 }
  0xff   :  { %v936_v52 = vpop.f32.mrf.mxu3  ;;  %v908_v54 = vadd.f32 %v907_v51, %v879_v50  ;;  %v881_v56 = vpop.f32.mrf.mxu1  ;;  %v853_v58 = vadd.f32 %v852_v55, %v824_v62 }
 0x101   :  { %v937_v53 = vadd.f32 %v936_v52, %v908_v54  ;;  %v882_v10 = vadd.f32 %v881_v56, %v853_v58 }
 0x103   :  { %v1497_v9 = vpack.c.bf16 %v937_v53, %v935_v44  ;;  %v982_v14 = vmul.f32 %v937_v53, %v937_v53  ;;  %v967_v61 = vadd.f32 %v966_v47, %v937_v53 }
 0x105   :  { %1509 = vst [vmem:[%s1963_s2 + $0x8] sm:$0xff] %v1497_v9   ;;  %v989_v19 = vadd.f32 %v988_v49, %v982_v14 }
 0x106   :  { %v910_v11 = vpop.f32.mrf.mxu2  ;;  %v854_v16 = vpop.f32.mrf.mxu0 }
 0x107   :  { %v939_v12 = vpop.f32.mrf.mxu3  ;;  %v911_v15 = vadd.f32 %v910_v11, %v882_v10  ;;  %v883_v17 = vpop.f32.mrf.mxu1  ;;  %v855_v63 = vadd.f32 %v854_v16, %v826_v13 }
 0x109   :  { %v940_v62 = vadd.f32 %v939_v12, %v911_v15  ;;  %v884_v23 = vadd.f32 %v883_v17, %v855_v63 }
 0x10b   :  { %v968_v20 = vadd.f32 %v967_v61, %v940_v62  ;;  %v983_v21 = vmul.f32 %v940_v62, %v940_v62 }
 0x10d   :  { %v990_v22 = vadd.f32 %v989_v19, %v983_v21 }
 0x10e   :  { %v912_v24 = vpop.f32.mrf.mxu2  ;;  %v857_v27 = vpop.f32.mrf.mxu0 }
 0x10f   :  { %v941_v25 = vpop.f32.mrf.mxu3  ;;  %v913_v26 = vadd.f32 %v912_v24, %v884_v23  ;;  %v858_v2 = vadd.f32 %v857_v27, %v829_v0  ;;  %v886_v29 = vpop.f32.mrf.mxu1 }
 0x111   :  { %v942_v1 = vadd.f32 %v941_v25, %v913_v26  ;;  %v887_v31 = vadd.f32 %v886_v29, %v858_v2 }
 0x113   :  { %v1502_v3 = vpack.c.bf16 %v942_v1, %v940_v62  ;;  %v984_v34 = vmul.f32 %v942_v1, %v942_v1  ;;  %v969_v37 = vadd.f32 %v968_v20, %v942_v1 }
 0x115   :  { %1510 = vst [vmem:[%s1963_s2 + $0x10] sm:$0xff] %v1502_v3   ;;  %v991_v38 = vadd.f32 %v990_v22, %v984_v34 }
 0x116   :  { %v915_v32 = vpop.f32.mrf.mxu2  ;;  %v859_v36 = vpop.f32.mrf.mxu0 }
 0x117   :  { %v944_v33 = vpop.f32.mrf.mxu3  ;;  %v916_v35 = vadd.f32 %v915_v32, %v887_v31  ;;  %v860_v6 = vadd.f32 %v859_v36, %v831_v4  ;;  %v888_v7 = vpop.f32.mrf.mxu1 }
 0x119   :  { %v945_v5 = vadd.f32 %v944_v33, %v916_v35  ;;  %v889_v42 = vadd.f32 %v888_v7, %v860_v6 }
 0x11b   :  { %v970_v39 = vadd.f32 %v969_v37, %v945_v5  ;;  %v985_v40 = vmul.f32 %v945_v5, %v945_v5 }
 0x11d   :  { %v992_v41 = vadd.f32 %v991_v38, %v985_v40 }
 0x11e   :  { %v917_v43 = vpop.f32.mrf.mxu2 }
 0x11f   :  { %v918_v44 = vadd.f32 %v917_v43, %v889_v42  ;;  %v946_v45 = vpop.f32.mrf.mxu3 }
 0x121   :  { %v947_v46 = vadd.f32 %v946_v45, %v918_v44 }
 0x123   :  { %v1507_v47 = vpack.c.bf16 %v947_v46, %v945_v5  ;;  %v971_v48 = vadd.f32 %v970_v39, %v947_v46  ;;  %v986_v49 = vmul.f32 %v947_v46, %v947_v46 }
 0x125   :  { %1511 = vst [vmem:[%s1963_s2 + $0x18] sm:$0xff] %v1507_v47   ;;  %v972_v8 = vrot.slane %v971_v48, 4  ;;  %v993_v50 = vadd.f32 %v992_v41, %v986_v49 }
 0x127   :  { %v973_v51 = vadd.f32 %v972_v8, %v971_v48  ;;  %v994_v52 = vrot.slane %v993_v50, 4 }
 0x129   :  { %v974_v54 = vrot.slane %v973_v51, 2  ;;  %v995_v55 = vadd.f32 %v994_v52, %v993_v50 }
 0x12b   :  { %v975_v56 = vadd.f32 %v974_v54, %v973_v51  ;;  %v996_v57 = vrot.slane %v995_v55, 2 }
 0x12d   :  { %v976_v53 = vrot.slane %v975_v56, 1  ;;  %v997_v58 = vadd.f32 %v996_v57, %v995_v55 }
 0x12f   :  { %v977_v59 = vadd.f32 %v976_v53, %v975_v56  ;;  %v998_v9 = vrot.slane %v997_v58, 1 }
 0x131   :  { %978 = vst [vmem:[%s1964_s3] sm:$0x1] %v977_v59  ;;  %v999_v10 = vadd.f32 %v998_v9, %v997_v58 }
 0x133   :  { %1000 = vst [vmem:[%s1964_s3 + $0x1] sm:$0x1] %v999_v10 }

// kernel: tile.57
= control target key start
LH: loop header
LB: loop body
LE: loop exit
PB: predicated region body
PF: predicated region fallthrough
CT: control target
= control target key end

     0   :  { %s28_s0 = inlined_call_operand.vmem [shape: f32[16], index: 0, kind: input, shape index: {}]   ;;  %s29_s1 = inlined_call_operand.vmem [shape: f32[16,16], index: 1, kind: output, shape index: {}]  }
   0x1   :  { %v4_v0 = vld [vmem:[%s28_s0] ss:$0 sm:$0xff] }
   0x2   :  { %5 = vst [vmem:[%s29_s1] sm:$0xff] %v4_v0 }
   0x3   :  { %8 = vst [vmem:[%s29_s1 + $0x8] sm:$0xff] %v4_v0 }

// kernel: tile.60
= control target key start
LH: loop header
LB: loop body
LE: loop exit
PB: predicated region body
PF: predicated region fallthrough
CT: control target
= control target key end

     0   :  { %s7_s6 = smov 3  ;;  %s21_s9 = smov 3  ;;  %vm4_vm0 = vcmask 130048   ;;  %vm11_vm1 = vcmask 1048448   ;;  %vm18_vm2 = vcmask 917248   ;;  %vm25_vm3 = vcmask 786048   ;;  %s119_s0 = inlined_call_operand.vmem [shape: f32[16,16], index: 0, kind: input, shape index: {}]   ;;  %s120_s1 = inlined_call_operand.vmem [shape: f32[256], index: 1, kind: output, shape index: {}]  }
   0x1   :  { %v61_v0 = vld [vmem:[%s119_s0 + $0x7] ss:$8 sm:%s7_s6]   ;;  %s75_s10 = smov 112   ;;  %v63_v1 = vld [vmem:[%s119_s0 + $0x5] ss:$8 sm:%s21_s9]   ;;  %s76_s13 = smov 80  }
   0x2   :  { %9 = vrot.lane.b32.xlu0 %v61_v0, %s75_s10  ;;  %23 = vrot.lane.b32.xlu1 %v63_v1, %s76_s13  ;;  %s14_s14 = smov 3  ;;  %s28_s15 = smov 3  ;;  %vm32_vm4 = vcmask 654848   ;;  %vm39_vm5 = vcmask 523648   ;;  %vm46_vm6 = vcmask 392448   ;;  %vm53_vm7 = vcmask 261248  }
   0x3   :  { %s35_s16 = smov 3  ;;  %v62_v3 = vld [vmem:[%s119_s0 + $0x6] ss:$8 sm:%s14_s14]   ;;  %s77_s21 = smov 48   ;;  %v64_v4 = vld [vmem:[%s119_s0 + $0x4] ss:$8 sm:%s28_s15]  }
   0x4   :  { %v65_v2 = vld [vmem:[%s119_s0 + $0x3] ss:$8 sm:%s35_s16]   ;;  %s42_s24 = smov 3  ;;  %s78_s25 = smov 96  }
   0x5   :  { %37 = vrot.lane.b32.xlu2 %v65_v2, %s77_s21  ;;  %s79_s26 = smov 64   ;;  %s49_s27 = smov 3  ;;  %v66_v5 = vld [vmem:[%s119_s0 + $0x2] ss:$8 sm:%s42_s24]  }
   0x6   :  { %v67_v6 = vld [vmem:[%s119_s0 + $0x1] ss:$8 sm:%s49_s27]   ;;  %s80_s3 = smov 32   ;;  %s81_s4 = smov 16  }
   0x7   :  { %s2_s5 = smov 3 }
   0x8   :  { %v3_v7 = vld [vmem:[%s119_s0] ss:$8 sm:%s2_s5]  }
   0x9   :  { %5 = vst.msk [vmem:[#allocation0] sm:$0x3] %vm4_vm0, %v3_v7  }
   0xa   :  { %16 = vrot.lane.b32.xlu0 %v62_v3, %s78_s25  ;;  %30 = vrot.lane.b32.xlu1 %v64_v4, %s79_s26 }
   0xd   :  { %44 = vrot.lane.b32.xlu2 %v66_v5, %s80_s3 }
  0x12   :  { %51 = vrot.lane.b32.xlu0 %v67_v6, %s81_s4 }
  0x5f   :  { %v38_v8 = vpop.permute.xlu2 %37  }
  0x67   :  { %v45_v9 = vpop.permute.xlu2 %44  }
  0x74   :  { %v10_v10 = vpop.permute.xlu0 %9   ;;  %v24_v11 = vpop.permute.xlu1 %23  }
  0x75   :  { %12 = vst.msk [vmem:[#allocation0] sm:$0x3] %vm11_vm1, %v10_v10  }
  0x7c   :  { %v17_v12 = vpop.permute.xlu0 %16   ;;  %v31_v13 = vpop.permute.xlu1 %30  }
  0x7d   :  { %19 = vst.msk [vmem:[#allocation0] sm:$0x3] %vm18_vm2, %v17_v12  }
  0x7e   :  { %26 = vst.msk [vmem:[#allocation0] sm:$0x3] %vm25_vm3, %v24_v11  }
  0x7f   :  { %33 = vst.msk [vmem:[#allocation0] sm:$0x3] %vm32_vm4, %v31_v13  }
  0x80   :  { %40 = vst.msk [vmem:[#allocation0] sm:$0x3] %vm39_vm5, %v38_v8  }
  0x81   :  { %47 = vst.msk [vmem:[#allocation0] sm:$0x3] %vm46_vm6, %v45_v9  }
  0x84   :  { %v52_v14 = vpop.permute.xlu0 %51  }
  0x85   :  { %54 = vst.msk [vmem:[#allocation0] sm:$0x3] %vm53_vm7, %v52_v14  }
  0x8c   :  { %v57_v15 = vld [vmem:[#allocation0] sm:$0x3] }
  0x8d   :  { %60 = vst [vmem:[%s120_s1] sm:$0x3] %v57_v15 }

// kernel: discriminator_forward.7
= control target key start
LH: loop header
LB: loop body
LE: loop exit
PB: predicated region body
PF: predicated region fallthrough
CT: control target
= control target key end

     0   :  { %s1767_s1 = inlined_call_operand.vmem [shape: bf16[1024,128], index: 1, kind: input, shape index: {}]   ;;  %s1768_s0 = inlined_call_operand.vmem [shape: bf16[32,1024], index: 0, kind: input, shape index: {}]   ;;  %s1769_s2 = inlined_call_operand.vmem [shape: f32[1,1024], index: 2, kind: input, shape index: {}]   ;;  %s1770_s3 = inlined_call_operand.vmem [shape: f32[1,1024], index: 3, kind: input, shape index: {}]   ;;  %s1771_s4 = inlined_call_operand.vmem [shape: bf16[32,128], index: 4, kind: output, shape index: {0}]   ;;  %s1772_s5 = inlined_call_operand.vmem [shape: f32[1,2,128], index: 5, kind: output, shape index: {1}]  }
   0x1   :  { %v1246_v0 = vld [vmem:[%s1767_s1 + $0x38] sm:$0xff]  ;;  %v1245_v4 = vld [vmem:[%s1767_s1 + $0x30] sm:$0xff]  ;;  %v1244_v8 = vld [vmem:[%s1767_s1 + $0x28] sm:$0xff] }
   0x2   :  { %v1254_v1 = vld [vmem:[%s1767_s1 + $0x78] sm:$0xff]  ;;  %791 = vmatpush.bf16.msra.mxu0 %v1246_v0  ;;  %v1253_v5 = vld [vmem:[%s1767_s1 + $0x70] sm:$0xff]  ;;  %v1252_v9 = vld [vmem:[%s1767_s1 + $0x68] sm:$0xff] }
   0x3   :  { %v1262_v2 = vld [vmem:[%s1767_s1 + $0xb8] sm:$0xff]  ;;  %810 = vmatpush.bf16.msra.mxu1 %v1254_v1  ;;  %v1261_v6 = vld [vmem:[%s1767_s1 + $0xb0] sm:$0xff]  ;;  %v1260_v10 = vld [vmem:[%s1767_s1 + $0xa8] sm:$0xff] }
   0x4   :  { %v1270_v3 = vld [vmem:[%s1767_s1 + $0xf8] sm:$0xff]  ;;  %829 = vmatpush.bf16.msra.mxu2 %v1262_v2  ;;  %v1269_v7 = vld [vmem:[%s1767_s1 + $0xf0] sm:$0xff]  ;;  %v1268_v11 = vld [vmem:[%s1767_s1 + $0xe8] sm:$0xff] }
   0x5   :  { %848 = vmatpush.bf16.msra.mxu3 %v1270_v3  ;;  %v1243_v12 = vld [vmem:[%s1767_s1 + $0x20] sm:$0xff]  ;;  %v20_v26 = vld [vmem:[%s1768_s0 + $0x8] sm:$0xff]  ;;  %v1242_v32 = vld [vmem:[%s1767_s1 + $0x18] sm:$0xff] }
   0x6   :  { %792 = vmatpush.bf16.msra.mxu0 %v1245_v4  ;;  %v1251_v13 = vld [vmem:[%s1767_s1 + $0x60] sm:$0xff]  ;;  %v1420_v27 = vld [vmem:[%s1768_s0 + $0x28] sm:$0xff]  ;;  %v37_v30 = vunpack.c.l.bf16 %v20_v26  ;;  %v1250_v33 = vld [vmem:[%s1767_s1 + $0x58] sm:$0xff]  ;;  %v38_v50 = vunpack.c.h.bf16 %v20_v26 }
   0x7   :  { %811 = vmatpush.bf16.msra.mxu1 %v1253_v5  ;;  %v1259_v14 = vld [vmem:[%s1767_s1 + $0xa0] sm:$0xff]  ;;  %v45_v31 = vunpack.c.l.bf16 %v1420_v27  ;;  %v1258_v37 = vld [vmem:[%s1767_s1 + $0x98] sm:$0xff]  ;;  %v1241_v46 = vld [vmem:[%s1767_s1 + $0x10] sm:$0xff]  ;;  %v46_v57 = vunpack.c.h.bf16 %v1420_v27 }
   0x8   :  { %830 = vmatpush.bf16.msra.mxu2 %v1261_v6  ;;  %v1267_v15 = vld [vmem:[%s1767_s1 + $0xe0] sm:$0xff]  ;;  %v1266_v38 = vld [vmem:[%s1767_s1 + $0xd8] sm:$0xff]  ;;  %v1249_v47 = vld [vmem:[%s1767_s1 + $0x50] sm:$0xff] }
   0x9   :  { %849 = vmatpush.bf16.msra.mxu3 %v1269_v7  ;;  %v19_v16 = vld [vmem:[%s1768_s0] sm:$0xff]  ;;  %v1257_v54 = vld [vmem:[%s1767_s1 + $0x90] sm:$0xff]  ;;  %v1240_v3 = vld [vmem:[%s1767_s1 + $0x8] sm:$0xff] }
   0xa   :  { %793 = vmatpush.bf16.msra.mxu0 %v1244_v8  ;;  %v23_v17 = vld [vmem:[%s1768_s0 + $0x20] sm:$0xff]  ;;  %v35_v18 = vunpack.c.l.bf16 %v19_v16  ;;  %v36_v21 = vunpack.c.h.bf16 %v19_v16  ;;  %v1265_v55 = vld [vmem:[%s1767_s1 + $0xd0] sm:$0xff]  ;;  %v1248_v4 = vld [vmem:[%s1767_s1 + $0x48] sm:$0xff] }
   0xb   :  { %812 = vmatpush.bf16.msra.mxu1 %v1252_v9  ;;  %v1401_v19 = vld [vmem:[%s1769_s2] sm:$0xff]  ;;  %v43_v22 = vunpack.c.l.bf16 %v23_v17  ;;  %v44_v25 = vunpack.c.h.bf16 %v23_v17  ;;  %v1256_v7 = vld [vmem:[%s1767_s1 + $0x88] sm:$0xff] }
   0xc   :  { %831 = vmatpush.bf16.msra.mxu2 %v1260_v10  ;;  %v1406_v20 = vld [vmem:[%s1770_s3] sm:$0xff]  ;;  %v1409_v23 = vperm.slane %v1401_v19, 0  ;;  %v1423_v28 = vperm.slane %v1401_v19, 1  ;;  %v1438_v36 = vperm.slane %v1401_v19, 2  ;;  %v1464_v51 = vperm.slane %v1401_v19, 3  ;;  %v1264_v8 = vld [vmem:[%s1767_s1 + $0xc8] sm:$0xff] }
   0xd   :  { %850 = vmatpush.bf16.msra.mxu3 %v1268_v11  ;;  %v1412_v24 = vperm.slane %v1406_v20, 0  ;;  %v1426_v29 = vperm.slane %v1406_v20, 1  ;;  %v1449_v41 = vperm.slane %v1406_v20, 2  ;;  %v1474_v58 = vperm.slane %v1406_v20, 3  ;;  %v27_v62 = vld [vmem:[%s1768_s0 + $0x40] sm:$0xff] }
   0xe   :  { %794 = vmatpush.bf16.msra.mxu0 %v1243_v12  ;;  %v85_v34 = vmul.f32 %v1409_v23, %v35_v18  ;;  %v93_v35 = vmul.f32 %v1409_v23, %v43_v22  ;;  %v86_v39 = vmul.f32 %v1423_v28, %v36_v21  ;;  %v94_v40 = vmul.f32 %v1423_v28, %v44_v25  ;;  %v31_v2 = vld [vmem:[%s1768_s0 + $0x60] sm:$0xff]  ;;  %v32_v25 = vld [vmem:[%s1768_s0 + $0x68] sm:$0xff] }
   0xf   :  { %813 = vmatpush.bf16.msra.mxu1 %v1251_v13  ;;  %v87_v44 = vmul.f32 %v1438_v36, %v37_v30  ;;  %v95_v45 = vmul.f32 %v1438_v36, %v45_v31  ;;  %v88_v1 = vmul.f32 %v1464_v51, %v38_v50  ;;  %v96_v10 = vmul.f32 %v1464_v51, %v46_v57  ;;  %v1511_v13 = vld [vmem:[%s1768_s0 + $0x48] sm:$0xff]  ;;  %v1239_v26 = vld [vmem:[%s1767_s1] sm:$0xff]  ;;  %v1277_v57 = vld [vmem:[%s1767_s1 + $0x130] sm:$0xff] }
  0x10   :  { %832 = vmatpush.bf16.msra.mxu2 %v1259_v14  ;;  %v135_v42 = vadd.f32 %v1412_v24, %v85_v34  ;;  %v143_v43 = vadd.f32 %v1412_v24, %v93_v35  ;;  %v136_v48 = vadd.f32 %v1426_v29, %v86_v39  ;;  %v144_v49 = vadd.f32 %v1426_v29, %v94_v40  ;;  %v1247_v27 = vld [vmem:[%s1767_s1 + $0x40] sm:$0xff]  ;;  %v1294_v40 = vld [vmem:[%s1767_s1 + $0x1b8] sm:$0xff] }
  0x11   :  { %851 = vmatpush.bf16.msra.mxu3 %v1267_v15  ;;  %v137_v60 = vadd.f32 %v1449_v41, %v87_v44  ;;  %v145_v61 = vadd.f32 %v1449_v41, %v95_v45  ;;  %v138_v11 = vadd.f32 %v1474_v58, %v88_v1  ;;  %v51_v12 = vunpack.c.l.bf16 %v27_v62  ;;  %v1255_v34 = vld [vmem:[%s1767_s1 + $0x80] sm:$0xff]  ;;  %v1292_v1 = vld [vmem:[%s1767_s1 + $0x1a8] sm:$0xff] }
  0x12   :  { %795 = vmatpush.bf16.msra.mxu0 %v1242_v32  ;;  %vm167_vm0 = vcmp.gt.f32.partialorder %v135_v42, 0.0  ;;  %vm175_vm1 = vcmp.gt.f32.partialorder %v143_v43, 0.0  ;;  %v199_v52 = vmul.f32 0.2, %v135_v42  ;;  %v207_v53 = vmul.f32 0.2, %v143_v43 }
  0x13   :  { %814 = vmatpush.bf16.msra.mxu1 %v1250_v33  ;;  %vm168_vm2 = vcmp.gt.f32.partialorder %v136_v48, 0.0  ;;  %v200_v56 = vmul.f32 0.2, %v136_v48  ;;  %v208_v59 = vmul.f32 0.2, %v144_v49  ;;  %vm176_vm3 = vcmp.gt.f32.partialorder %v144_v49, 0.0 }
  0x14   :  { %833 = vmatpush.bf16.msra.mxu2 %v1258_v37  ;;  %v1482_v63 = vsel %vm167_vm0, %v135_v42, %v199_v52  ;;  %v1485_v0 = vsel %vm175_vm1, %v143_v43, %v207_v53  ;;  %vm169_vm4 = vcmp.gt.f32.partialorder %v137_v60, 0.0  ;;  %vm177_vm5 = vcmp.gt.f32.partialorder %v145_v61, 0.0  ;;  %v1263_v35 = vld [vmem:[%s1767_s1 + $0xc0] sm:$0xff]  ;;  %v1278_v42 = vld [vmem:[%s1767_s1 + $0x138] sm:$0xff] }
  0x15   :  { %852 = vmatpush.bf16.msra.mxu3 %v1266_v38  ;;  %v1498_v5 = vsel %vm168_vm2, %v136_v48, %v200_v56  ;;  %v201_v6 = vmul.f32 0.2, %v137_v60  ;;  %v209_v9 = vmul.f32 0.2, %v145_v61  ;;  %v240_v14 = vsel %vm176_vm3, %v144_v49, %v208_v59  ;;  %v1302_v53 = vld [vmem:[%s1767_s1 + $0x1f8] sm:$0xff] }
  0x16   :  { %796 = vmatpush.bf16.msra.mxu0 %v1241_v46  ;;  %v59_v15 = vunpack.c.l.bf16 %v31_v2  ;;  %v52_v16 = vunpack.c.h.bf16 %v27_v62  ;;  %v60_v17 = vunpack.c.h.bf16 %v31_v2  ;;  %v146_v21 = vadd.f32 %v1474_v58, %v96_v10  ;;  %v1301_v62 = vld [vmem:[%s1767_s1 + $0x1f0] sm:$0xff]  ;;  %v1284_v10 = vld [vmem:[%s1767_s1 + $0x168] sm:$0xff] }
  0x17   :  { %815 = vmatpush.bf16.msra.mxu1 %v1249_v47  ;;  %v233_v18 = vsel %vm169_vm4, %v137_v60, %v201_v6  ;;  %vm170_vm6 = vcmp.gt.f32.partialorder %v138_v11, 0.0  ;;  %v202_v22 = vmul.f32 0.2, %v138_v11  ;;  %v241_v30 = vsel %vm177_vm5, %v145_v61, %v209_v9  ;;  %v21_v6 = vld [vmem:[%s1768_s0 + $0x10] sm:$0xff] }
  0x18   :  { %834 = vmatpush.bf16.msra.mxu2 %v1257_v54  ;;  %v101_v31 = vmul.f32 %v1409_v23, %v51_v12  ;;  %v109_v32 = vmul.f32 %v1409_v23, %v59_v15  ;;  %v53_v33 = vunpack.c.l.bf16 %v1511_v13  ;;  %vm178_vm7 = vcmp.gt.f32.partialorder %v146_v21, 0.0  ;;  %v25_v12 = vld [vmem:[%s1768_s0 + $0x30] sm:$0xff]  ;;  %v1291_v15 = vld [vmem:[%s1767_s1 + $0x1a0] sm:$0xff] }
  0x19   :  { %853 = vmatpush.bf16.msra.mxu3 %v1265_v55  ;;  %v210_v37 = vmul.f32 0.2, %v146_v21  ;;  %v234_v38 = vsel %vm170_vm6, %v138_v11, %v202_v22  ;;  %v102_v39 = vmul.f32 %v1423_v28, %v52_v16  ;;  %v263_v23 = vpack.c.bf16 %v1485_v0, %v1482_v63  ;;  %v1611_v22 = vld [vmem:[%s1768_s0 + $0x18] sm:$0xff] }
  0x1a   :  { %797 = vmatpush.bf16.msra.mxu0 %v1240_v3  ;;  %v110_v43 = vmul.f32 %v1423_v28, %v60_v17  ;;  %v61_v44 = vunpack.c.l.bf16 %v32_v25  ;;  %v264_v45 = vpack.c.bf16 %v240_v14, %v1498_v5  ;;  %v265_v46 = vpack.c.bf16 %v241_v30, %v233_v18  ;;  %v1286_v28 = vld [vmem:[%s1767_s1 + $0x178] sm:$0xff] }
  0x1b   :  { %816 = vmatpush.bf16.msra.mxu1 %v1248_v4  ;;  %v242_v47 = vsel %vm178_vm7, %v146_v21, %v210_v37  ;;  %v103_v48 = vmul.f32 %v1438_v36, %v53_v33  ;;  %v151_v50 = vadd.f32 %v1412_v24, %v101_v31  ;;  %v159_v52 = vadd.f32 %v1412_v24, %v109_v32  ;;  %v1293_v24 = vld [vmem:[%s1767_s1 + $0x1b0] sm:$0xff]  ;;  %v26_v30 = vld [vmem:[%s1768_s0 + $0x38] sm:$0xff] }
  0x1c   :  { %835 = vmatpush.bf16.msra.mxu2 %v1256_v7  ;;  %v266_v49 = vpack.c.bf16 %v242_v47, %v234_v38  ;;  %v152_v54 = vadd.f32 %v1426_v29, %v102_v39  ;;  %v160_v55 = vadd.f32 %v1426_v29, %v110_v43  ;;  %v54_v56 = vunpack.c.h.bf16 %v1511_v13  ;;  %v1285_v29 = vld [vmem:[%s1767_s1 + $0x170] sm:$0xff] }
  0x1d   :  { %854 = vmatpush.bf16.msra.mxu3 %v1264_v8  ;;  %v111_v59 = vmul.f32 %v1438_v36, %v61_v44  ;;  %v153_v60 = vadd.f32 %v1449_v41, %v103_v48  ;;  %v62_v61 = vunpack.c.h.bf16 %v32_v25  ;;  %vm183_vm8 = vcmp.gt.f32.partialorder %v151_v50, 0.0  ;;  %v1275_v25 = vld [vmem:[%s1767_s1 + $0x120] sm:$0xff]  ;;  %v1290_v48 = vld [vmem:[%s1767_s1 + $0x198] sm:$0xff] }
  0x1e   :  { %798 = vmatpush.bf16.msra.mxu0 %v1239_v26  ;;  %v215_v63 = vmul.f32 0.2, %v151_v50  ;;  %v223_v0 = vmul.f32 0.2, %v159_v52  ;;  %v216_v2 = vmul.f32 0.2, %v152_v54  ;;  %v104_v4 = vmul.f32 %v1464_v51, %v54_v56 }
  0x1f   :  { %817 = vmatpush.bf16.msra.mxu1 %v1247_v27  ;;  %v161_v36 = vadd.f32 %v1449_v41, %v111_v59  ;;  %v224_v3 = vmul.f32 0.2, %v160_v55  ;;  %v112_v5 = vmul.f32 %v1464_v51, %v62_v61  ;;  %v1276_v41 = vld [vmem:[%s1767_s1 + $0x128] sm:$0xff]  ;;  %vm191_vm9 = vcmp.gt.f32.partialorder %v159_v52, 0.0  ;;  %v1298_v59 = vld [vmem:[%s1767_s1 + $0x1d8] sm:$0xff] }
  0x20   :  { %836 = vmatpush.bf16.msra.mxu2 %v1255_v34  ;;  %vm184_vm10 = vcmp.gt.f32.partialorder %v152_v54, 0.0  ;;  %vm192_vm11 = vcmp.gt.f32.partialorder %v160_v55, 0.0  ;;  %v217_v7 = vmul.f32 0.2, %v153_v60  ;;  %vm185_vm12 = vcmp.gt.f32.partialorder %v153_v60, 0.0 }
  0x21   :  { %855 = vmatpush.bf16.msra.mxu3 %v1263_v35  ;;  %799 = vmatmul.bf16.vlgmr.msra.gmra.mxu0 %v263_v23  ;;  %v225_v8 = vmul.f32 0.2, %v161_v36  ;;  %v154_v9 = vadd.f32 %v1474_v58, %v104_v4  ;;  %v162_v51 = vadd.f32 %v1474_v58, %v112_v5  ;;  %v1591_v11 = vsel %vm183_vm8, %v151_v50, %v215_v63  ;;  %v1300_v58 = vld [vmem:[%s1767_s1 + $0x1e8] sm:$0xff]  ;;  %v1283_v23 = vld [vmem:[%s1767_s1 + $0x160] sm:$0xff]  ;;  %v1289_v63 = vld [vmem:[%s1767_s1 + $0x190] sm:$0xff] }
  0x22   :  { %867 = vmatpush.bf16.msrb.mxu0 %v1278_v42  ;;  %818 = vmatmul.bf16.vlgmr.msra.gmra.mxu1 %v264_v45  ;;  %vm193_vm13 = vcmp.gt.f32.partialorder %v161_v36, 0.0  ;;  %v39_v13 = vunpack.c.l.bf16 %v21_v6  ;;  %v1597_v14 = vperm.slane %v1401_v19, 4  ;;  %v255_v16 = vsel %vm191_vm9, %v159_v52, %v223_v0  ;;  %v1273_v0 = vld [vmem:[%s1767_s1 + $0x110] sm:$0xff] }
  0x23   :  { %837 = vmatmul.bf16.vlgmr.msra.gmra.mxu2 %v265_v46  ;;  %886 = vmatpush.bf16.msrb.mxu1 %v1286_v28  ;;  %v248_v17 = vsel %vm184_vm10, %v152_v54, %v216_v2  ;;  %v256_v18 = vsel %vm192_vm11, %v160_v55, %v224_v3  ;;  %v218_v21 = vmul.f32 0.2, %v154_v9  ;;  %v249_v26 = vsel %vm185_vm12, %v153_v60, %v217_v7 }
  0x24   :  { %905 = vmatpush.bf16.msrb.mxu2 %v1294_v40  ;;  %856 = vmatmul.bf16.vlgmr.msra.gmra.mxu3 %v266_v49  ;;  %vm186_vm14 = vcmp.gt.f32.partialorder %v154_v9, 0.0  ;;  %vm194_vm15 = vcmp.gt.f32.partialorder %v162_v51, 0.0  ;;  %v226_v27 = vmul.f32 0.2, %v162_v51  ;;  %v257_v31 = vsel %vm193_vm13, %v161_v36, %v225_v8  ;;  %v1299_v40 = vld [vmem:[%s1767_s1 + $0x1e0] sm:$0xff]  ;;  %v1274_v49 = vld [vmem:[%s1767_s1 + $0x118] sm:$0xff] }
  0x25   :  { %924 = vmatpush.bf16.msrb.mxu3 %v1302_v53  ;;  %v47_v32 = vunpack.c.l.bf16 %v25_v12  ;;  %v40_v33 = vunpack.c.h.bf16 %v21_v6  ;;  %v1622_v34 = vperm.slane %v1401_v19, 5  ;;  %v89_v35 = vmul.f32 %v1597_v14, %v39_v13  ;;  %v1297_v6 = vld [vmem:[%s1767_s1 + $0x1d0] sm:$0xff] }
  0x26   :  { %868 = vmatpush.bf16.msrb.mxu0 %v1277_v57  ;;  %v1626_v37 = vperm.slane %v1406_v20, 4  ;;  %v48_v38 = vunpack.c.h.bf16 %v25_v12  ;;  %v41_v39 = vunpack.c.l.bf16 %v1611_v22  ;;  %v250_v42 = vsel %vm186_vm14, %v154_v9, %v218_v21  ;;  %v1282_v57 = vld [vmem:[%s1767_s1 + $0x158] sm:$0xff]  ;;  %v1288_v9 = vld [vmem:[%s1767_s1 + $0x188] sm:$0xff] }
  0x27   :  { %887 = vmatpush.bf16.msrb.mxu1 %v1285_v29  ;;  %v258_v43 = vsel %vm194_vm15, %v162_v51, %v226_v27  ;;  %v49_v44 = vunpack.c.l.bf16 %v26_v30  ;;  %v1638_v45 = vperm.slane %v1401_v19, 6  ;;  %v271_v46 = vpack.c.bf16 %v255_v16, %v1591_v11  ;;  %v1272_v51 = vld [vmem:[%s1767_s1 + $0x108] sm:$0xff]  ;;  %v33_v16 = vld [vmem:[%s1768_s0 + $0x70] sm:$0xff] }
  0x28   :  { %906 = vmatpush.bf16.msrb.mxu2 %v1293_v24  ;;  %v272_v47 = vpack.c.bf16 %v256_v18, %v248_v17  ;;  %v273_v50 = vpack.c.bf16 %v257_v31, %v249_v26  ;;  %v97_v52 = vmul.f32 %v1597_v14, %v47_v32  ;;  %v90_v28 = vmul.f32 %v1622_v34, %v40_v33  ;;  %v1296_v11 = vld [vmem:[%s1767_s1 + $0x1c8] sm:$0xff]  ;;  %v1287_v17 = vld [vmem:[%s1767_s1 + $0x180] sm:$0xff]  ;;  %v30_v32 = vld [vmem:[%s1768_s0 + $0x58] sm:$0xff] }
  0x29   :  { %925 = vmatpush.bf16.msrb.mxu3 %v1301_v62  ;;  %v1650_v53 = vperm.slane %v1406_v20, 5  ;;  %v274_v54 = vpack.c.bf16 %v258_v43, %v250_v42  ;;  %v98_v55 = vmul.f32 %v1622_v34, %v48_v38  ;;  %v91_v56 = vmul.f32 %v1638_v45, %v41_v39  ;;  %v1271_v18 = vld [vmem:[%s1767_s1 + $0x100] sm:$0xff]  ;;  %v34_v39 = vld [vmem:[%s1768_s0 + $0x78] sm:$0xff] }
  0x2a   :  { %869 = vmatpush.bf16.msrb.mxu0 %v1276_v41  ;;  %v1655_v24 = vperm.slane %v1406_v20, 6  ;;  %v139_v60 = vadd.f32 %v1626_v37, %v89_v35  ;;  %v99_v61 = vmul.f32 %v1638_v45, %v49_v44  ;;  %v42_v29 = vunpack.c.h.bf16 %v1611_v22  ;;  %v1279_v44 = vld [vmem:[%s1767_s1 + $0x140] sm:$0xff] }
  0x2b   :  { %888 = vmatpush.bf16.msrb.mxu1 %v1284_v10  ;;  %v50_v62 = vunpack.c.h.bf16 %v26_v30  ;;  %v1673_v36 = vperm.slane %v1401_v19, 7  ;;  %v1677_v2 = vperm.slane %v1406_v20, 7  ;;  %v140_v3 = vadd.f32 %v1650_v53, %v90_v28  ;;  %v1281_v19 = vld [vmem:[%s1767_s1 + $0x150] sm:$0xff]  ;;  %v1280_v10 = vld [vmem:[%s1767_s1 + $0x148] sm:$0xff] }
  0x2c   :  { %907 = vmatpush.bf16.msrb.mxu2 %v1292_v1  ;;  %v147_v1 = vadd.f32 %v1626_v37, %v97_v52  ;;  %v148_v4 = vadd.f32 %v1650_v53, %v98_v55  ;;  %v141_v5 = vadd.f32 %v1655_v24, %v91_v56  ;;  %v203_v20 = vmul.f32 0.2, %v139_v60 }
  0x2d   :  { %926 = vmatpush.bf16.msrb.mxu3 %v1300_v58  ;;  %v149_v41 = vadd.f32 %v1655_v24, %v99_v61  ;;  %v92_v7 = vmul.f32 %v1673_v36, %v42_v29  ;;  %v100_v8 = vmul.f32 %v1673_v36, %v50_v62  ;;  %vm171_vm0 = vcmp.gt.f32.partialorder %v139_v60, 0.0 }
  0x2e   :  { %870 = vmatpush.bf16.msrb.mxu0 %v1275_v25  ;;  %vm179_vm1 = vcmp.gt.f32.partialorder %v147_v1, 0.0  ;;  %v211_v12 = vmul.f32 0.2, %v147_v1  ;;  %vm172_vm2 = vcmp.gt.f32.partialorder %v140_v3, 0.0  ;;  %vm180_vm3 = vcmp.gt.f32.partialorder %v148_v4, 0.0 }
  0x2f   :  { %889 = vmatpush.bf16.msrb.mxu1 %v1283_v23  ;;  %v142_v13 = vadd.f32 %v1677_v2, %v92_v7  ;;  %v150_v58 = vadd.f32 %v1677_v2, %v100_v8  ;;  %v204_v21 = vmul.f32 0.2, %v140_v3  ;;  %v212_v22 = vmul.f32 0.2, %v148_v4 }
  0x30   :  { %908 = vmatpush.bf16.msrb.mxu2 %v1291_v15  ;;  %v29_v15 = vld [vmem:[%s1768_s0 + $0x50] sm:$0xff]  ;;  %v235_v25 = vsel %vm171_vm0, %v139_v60, %v203_v20  ;;  %v205_v26 = vmul.f32 0.2, %v141_v5  ;;  %v213_v27 = vmul.f32 0.2, %v149_v41  ;;  %vm173_vm4 = vcmp.gt.f32.partialorder %v141_v5, 0.0 }
  0x31   :  { %927 = vmatpush.bf16.msrb.mxu3 %v1299_v40  ;;  %804 = vmatmul.bf16.gmra.mxu0 %v271_v46  ;;  %v206_v30 = vmul.f32 0.2, %v142_v13  ;;  %vm181_vm5 = vcmp.gt.f32.partialorder %v149_v41, 0.0  ;;  %vm174_vm6 = vcmp.gt.f32.partialorder %v142_v13, 0.0  ;;  %v214_v31 = vmul.f32 0.2, %v150_v58 }
  0x32   :  { %871 = vmatpush.bf16.msrb.mxu0 %v1274_v49  ;;  %823 = vmatmul.bf16.gmra.mxu1 %v272_v47  ;;  %v243_v33 = vsel %vm179_vm1, %v147_v1, %v211_v12  ;;  %vm182_vm7 = vcmp.gt.f32.partialorder %v150_v58, 0.0  ;;  %v55_v35 = vunpack.c.l.bf16 %v29_v15  ;;  %v63_v38 = vunpack.c.l.bf16 %v33_v16  ;;  %v1295_v46 = vld [vmem:[%s1767_s1 + $0x1c0] sm:$0xff] }
  0x33   :  { %842 = vmatmul.bf16.gmra.mxu2 %v273_v50  ;;  %890 = vmatpush.bf16.msrb.mxu1 %v1282_v57  ;;  %v236_v23 = vsel %vm172_vm2, %v140_v3, %v204_v21  ;;  %v244_v40 = vsel %vm180_vm3, %v148_v4, %v212_v22  ;;  %v56_v42 = vunpack.c.h.bf16 %v29_v15  ;;  %v64_v43 = vunpack.c.h.bf16 %v33_v16 }
  0x34   :  { %909 = vmatpush.bf16.msrb.mxu2 %v1290_v48  ;;  %861 = vmatmul.bf16.gmra.mxu3 %v274_v54  ;;  %v237_v47 = vsel %vm173_vm4, %v141_v5, %v205_v26  ;;  %v245_v48 = vsel %vm181_vm5, %v149_v41, %v213_v27  ;;  %v238_v49 = vsel %vm174_vm6, %v142_v13, %v206_v30  ;;  %v57_v50 = vunpack.c.l.bf16 %v30_v32 }
  0x35   :  { %928 = vmatpush.bf16.msrb.mxu3 %v1298_v59  ;;  %v246_v52 = vsel %vm182_vm7, %v150_v58, %v214_v31  ;;  %v65_v28 = vunpack.c.l.bf16 %v34_v39  ;;  %v58_v54 = vunpack.c.h.bf16 %v30_v32  ;;  %v66_v55 = vunpack.c.h.bf16 %v34_v39 }
  0x36   :  { %872 = vmatpush.bf16.msrb.mxu0 %v1273_v0  ;;  %v267_v56 = vpack.c.bf16 %v243_v33, %v235_v25  ;;  %v105_v57 = vmul.f32 %v1597_v14, %v55_v35  ;;  %v113_v59 = vmul.f32 %v1597_v14, %v63_v38  ;;  %v268_v60 = vpack.c.bf16 %v244_v40, %v236_v23 }
  0x37   :  { %891 = vmatpush.bf16.msrb.mxu1 %v1281_v19  ;;  %v269_v61 = vpack.c.bf16 %v245_v48, %v237_v47  ;;  %v106_v29 = vmul.f32 %v1622_v34, %v56_v42  ;;  %v114_v62 = vmul.f32 %v1622_v34, %v64_v43  ;;  %v107_v0 = vmul.f32 %v1638_v45, %v57_v50 }
  0x38   :  { %910 = vmatpush.bf16.msrb.mxu2 %v1289_v63  ;;  %v270_v63 = vpack.c.bf16 %v246_v52, %v238_v49  ;;  %v115_v1 = vmul.f32 %v1638_v45, %v65_v28  ;;  %v108_v3 = vmul.f32 %v1673_v36, %v58_v54  ;;  %v116_v4 = vmul.f32 %v1673_v36, %v66_v55 }
  0x39   :  { %929 = vmatpush.bf16.msrb.mxu3 %v1297_v6  ;;  %v155_v14 = vadd.f32 %v1626_v37, %v105_v57  ;;  %v163_v5 = vadd.f32 %v1626_v37, %v113_v59  ;;  %v156_v34 = vadd.f32 %v1650_v53, %v106_v29  ;;  %v164_v19 = vadd.f32 %v1650_v53, %v114_v62 }
  0x3a   :  { %873 = vmatpush.bf16.msrb.mxu0 %v1272_v51  ;;  %v157_v6 = vadd.f32 %v1655_v24, %v107_v0  ;;  %v165_v45 = vadd.f32 %v1655_v24, %v115_v1  ;;  %v158_v20 = vadd.f32 %v1677_v2, %v108_v3  ;;  %v166_v36 = vadd.f32 %v1677_v2, %v116_v4 }
  0x3b   :  { %892 = vmatpush.bf16.msrb.mxu1 %v1280_v10  ;;  %vm187_vm8 = vcmp.gt.f32.partialorder %v155_v14, 0.0  ;;  %vm195_vm9 = vcmp.gt.f32.partialorder %v163_v5, 0.0  ;;  %v219_v41 = vmul.f32 0.2, %v155_v14  ;;  %v227_v7 = vmul.f32 0.2, %v163_v5 }
  0x3c   :  { %911 = vmatpush.bf16.msrb.mxu2 %v1288_v9  ;;  %vm188_vm10 = vcmp.gt.f32.partialorder %v156_v34, 0.0  ;;  %vm196_vm11 = vcmp.gt.f32.partialorder %v164_v19, 0.0  ;;  %v220_v37 = vmul.f32 0.2, %v156_v34  ;;  %v228_v8 = vmul.f32 0.2, %v164_v19 }
  0x3d   :  { %930 = vmatpush.bf16.msrb.mxu3 %v1296_v11  ;;  %v221_v9 = vmul.f32 0.2, %v157_v6  ;;  %v229_v51 = vmul.f32 0.2, %v165_v45  ;;  %vm189_vm12 = vcmp.gt.f32.partialorder %v157_v6, 0.0  ;;  %vm197_vm13 = vcmp.gt.f32.partialorder %v165_v45, 0.0 }
  0x3e   :  { %874 = vmatpush.bf16.msrb.mxu0 %v1271_v18  ;;  %v222_v53 = vmul.f32 0.2, %v158_v20  ;;  %v230_v10 = vmul.f32 0.2, %v166_v36  ;;  %vm190_vm14 = vcmp.gt.f32.partialorder %v158_v20, 0.0  ;;  %vm198_vm15 = vcmp.gt.f32.partialorder %v166_v36, 0.0 }
  0x3f   :  { %893 = vmatpush.bf16.msrb.mxu1 %v1279_v44  ;;  %v251_v24 = vsel %vm187_vm8, %v155_v14, %v219_v41  ;;  %v259_v2 = vsel %vm195_vm9, %v163_v5, %v227_v7  ;;  %v252_v11 = vsel %vm188_vm10, %v156_v34, %v220_v37  ;;  %v260_v12 = vsel %vm196_vm11, %v164_v19, %v228_v8 }
  0x40   :  { %912 = vmatpush.bf16.msrb.mxu2 %v1287_v17  ;;  %v253_v13 = vsel %vm189_vm12, %v157_v6, %v221_v9  ;;  %v261_v58 = vsel %vm197_vm13, %v165_v45, %v229_v51  ;;  %v254_v15 = vsel %vm190_vm14, %v158_v20, %v222_v53  ;;  %v262_v16 = vsel %vm198_vm15, %v166_v36, %v230_v10 }
  0x41   :  { %931 = vmatpush.bf16.msrb.mxu3 %v1295_v46  ;;  %875 = vmatmul.bf16.vlgmr.msrb.gmra.mxu0 %v267_v56  ;;  %v275_v17 = vpack.c.bf16 %v259_v2, %v251_v24  ;;  %v276_v18 = vpack.c.bf16 %v260_v12, %v252_v11  ;;  %v277_v21 = vpack.c.bf16 %v261_v58, %v253_v13 }
  0x42   :  { %894 = vmatmul.bf16.vlgmr.msrb.gmra.mxu1 %v268_v60  ;;  %v278_v22 = vpack.c.bf16 %v262_v16, %v254_v15 }
  0x43   :  { %913 = vmatmul.bf16.vlgmr.msrb.gmra.mxu2 %v269_v61 }
  0x44   :  { %932 = vmatmul.bf16.vlgmr.msrb.gmra.mxu3 %v270_v63 }
  0x51   :  { %880 = vmatmul.bf16.gmra.mxu0 %v275_v17 }
  0x52   :  { %899 = vmatmul.bf16.gmra.mxu1 %v276_v18 }
  0x53   :  { %918 = vmatmul.bf16.gmra.mxu2 %v277_v21 }
  0x54   :  { %937 = vmatmul.bf16.gmra.mxu3 %v278_v22 }
  0x9e   :  { %v800_v25 = vpop.f32.mrf.mxu0 }
  0x9f   :  { %v819_v26 = vpop.f32.mrf.mxu1 }
  0xa0   :  { %v820_v47 = vadd.f32 %v819_v26, %v800_v25 }
  0xa6   :  { %v838_v27 = vpop.f32.mrf.mxu2  ;;  %v802_v31 = vpop.f32.mrf.mxu0 }
  0xa7   :  { %v857_v30 = vpop.f32.mrf.mxu3  ;;  %v821_v32 = vpop.f32.mrf.mxu1  ;;  %v839_v50 = vadd.f32 %v838_v27, %v820_v47 }
  0xa8   :  { %v822_v52 = vadd.f32 %v821_v32, %v802_v31 }
  0xa9   :  { %v858_v54 = vadd.f32 %v857_v30, %v839_v50 }
  0xae   :  { %v840_v33 = vpop.f32.mrf.mxu2  ;;  %v805_v38 = vpop.f32.mrf.mxu0 }
  0xaf   :  { %v859_v35 = vpop.f32.mrf.mxu3  ;;  %v824_v39 = vpop.f32.mrf.mxu1  ;;  %v841_v28 = vadd.f32 %v840_v33, %v822_v52 }
  0xb0   :  { %v825_v29 = vadd.f32 %v824_v39, %v805_v38 }
  0xb1   :  { %v860_v56 = vadd.f32 %v859_v35, %v841_v28 }
  0xb6   :  { %v843_v23 = vpop.f32.mrf.mxu2  ;;  %v807_v42 = vpop.f32.mrf.mxu0 }
  0xb7   :  { %v862_v40 = vpop.f32.mrf.mxu3  ;;  %v826_v43 = vpop.f32.mrf.mxu1  ;;  %v844_v63 = vadd.f32 %v843_v23, %v825_v29 }
  0xb8   :  { %v827_v6 = vadd.f32 %v826_v43, %v807_v42 }
  0xb9   :  { %v863_v14 = vadd.f32 %v862_v40, %v844_v63 }
  0xbe   :  { %v845_v44 = vpop.f32.mrf.mxu2  ;;  %v876_v48 = vpop.f32.mrf.mxu0 }
  0xbf   :  { %v864_v46 = vpop.f32.mrf.mxu3  ;;  %v895_v49 = vpop.f32.mrf.mxu1  ;;  %v877_v57 = vadd.f32 %v876_v48, %v858_v54  ;;  %v846_v7 = vadd.f32 %v845_v44, %v827_v6 }
  0xc1   :  { %v896_v0 = vadd.f32 %v895_v49, %v877_v57  ;;  %v865_v51 = vadd.f32 %v864_v46, %v846_v7 }
  0xc6   :  { %v914_v55 = vpop.f32.mrf.mxu2  ;;  %v878_v60 = vpop.f32.mrf.mxu0 }
  0xc7   :  { %v933_v59 = vpop.f32.mrf.mxu3  ;;  %v897_v61 = vpop.f32.mrf.mxu1  ;;  %v879_v62 = vadd.f32 %v878_v60, %v860_v56  ;;  %v915_v1 = vadd.f32 %v914_v55, %v896_v0 }
  0xc9   :  { %v898_v3 = vadd.f32 %v897_v61, %v879_v62  ;;  %v934_v45 = vadd.f32 %v933_v59, %v915_v1 }
  0xcb   :  { %v961_v16 = vmul.f32 %v934_v45, %v934_v45 }
  0xce   :  { %v916_v4 = vpop.f32.mrf.mxu2  ;;  %v881_v19 = vpop.f32.mrf.mxu0 }
  0xcf   :  { %v917_v5 = vadd.f32 %v916_v4, %v898_v3  ;;  %v935_v34 = vpop.f32.mrf.mxu3  ;;  %v882_v36 = vadd.f32 %v881_v19, %v863_v14  ;;  %v900_v41 = vpop.f32.mrf.mxu1 }
  0xd1   :  { %v936_v20 = vadd.f32 %v935_v34, %v917_v5  ;;  %v901_v8 = vadd.f32 %v900_v41, %v882_v36 }
  0xd3   :  { %v1306_v37 = vpack.c.bf16 %v936_v20, %v934_v45  ;;  %v962_v13 = vmul.f32 %v936_v20, %v936_v20  ;;  %v951_v17 = vadd.f32 %v936_v20, %v934_v45 }
  0xd5   :  { %1307 = vst [vmem:[%s1771_s4] sm:$0xff] %v1306_v37   ;;  %v965_v25 = vadd.f32 %v962_v13, %v961_v16 }
  0xd6   :  { %v919_v9 = vpop.f32.mrf.mxu2  ;;  %v883_v24 = vpop.f32.mrf.mxu0 }
  0xd7   :  { %v920_v53 = vadd.f32 %v919_v9, %v901_v8  ;;  %v938_v10 = vpop.f32.mrf.mxu3  ;;  %v884_v2 = vadd.f32 %v883_v24, %v865_v51  ;;  %v902_v12 = vpop.f32.mrf.mxu1 }
  0xd9   :  { %v939_v11 = vadd.f32 %v938_v10, %v920_v53  ;;  %v903_v58 = vadd.f32 %v902_v12, %v884_v2 }
  0xdb   :  { %v963_v18 = vmul.f32 %v939_v11, %v939_v11  ;;  %v952_v26 = vadd.f32 %v951_v17, %v939_v11 }
  0xdd   :  { %v966_v30 = vadd.f32 %v965_v25, %v963_v18 }
  0xde   :  { %v921_v15 = vpop.f32.mrf.mxu2 }
  0xdf   :  { %v922_v21 = vadd.f32 %v921_v15, %v903_v58  ;;  %v940_v22 = vpop.f32.mrf.mxu3 }
  0xe1   :  { %v941_v27 = vadd.f32 %v940_v22, %v922_v21 }
  0xe3   :  { %v1311_v31 = vpack.c.bf16 %v941_v27, %v939_v11  ;;  %v953_v32 = vadd.f32 %v952_v26, %v941_v27  ;;  %v964_v33 = vmul.f32 %v941_v27, %v941_v27 }
  0xe5   :  { %1313 = vst [vmem:[%s1771_s4 + $0x8] sm:$0xff] %v1311_v31   ;;  %v954_v35 = vrot.slane %v953_v32, 4  ;;  %v967_v38 = vadd.f32 %v966_v30, %v964_v33 }
  0xe7   :  { %v955_v39 = vadd.f32 %v954_v35, %v953_v32  ;;  %v968_v23 = vrot.slane %v967_v38, 4 }
  0xe9   :  { %v956_v40 = vrot.slane %v955_v39, 2  ;;  %v969_v42 = vadd.f32 %v968_v23, %v967_v38 }
  0xeb   :  { %v957_v43 = vadd.f32 %v956_v40, %v955_v39  ;;  %v970_v44 = vrot.slane %v969_v42, 2 }
  0xed   :  { %v958_v46 = vrot.slane %v957_v43, 1  ;;  %v971_v47 = vadd.f32 %v970_v44, %v969_v42 }
  0xef   :  { %v959_v48 = vadd.f32 %v958_v46, %v957_v43  ;;  %v972_v49 = vrot.slane %v971_v47, 1 }
  0xf1   :  { %960 = vst [vmem:[%s1772_s5] sm:$0x1] %v959_v48  ;;  %v973_v50 = vadd.f32 %v972_v49, %v971_v47 }
  0xf3   :  { %974 = vst [vmem:[%s1772_s5 + $0x1] sm:$0x1] %v973_v50 }

// kernel: tile.75
= control target key start
LH: loop header
LB: loop body
LE: loop exit
PB: predicated region body
PF: predicated region fallthrough
CT: control target
= control target key end

     0   :  { %s28_s0 = inlined_call_operand.vmem [shape: f32[32], index: 0, kind: input, shape index: {}]   ;;  %s29_s1 = inlined_call_operand.vmem [shape: f32[9,32], index: 1, kind: output, shape index: {}]  }
   0x1   :  { %v4_v0 = vld [vmem:[%s28_s0] ss:$0 sm:$0xff] }
   0x2   :  { %5 = vst [vmem:[%s29_s1] sm:$0xff] %v4_v0 }
   0x3   :  { %8 = vst [vmem:[%s29_s1 + $0x8] sm:$0xff] %v4_v0 }

// kernel: tile.78
= control target key start
LH: loop header
LB: loop body
LE: loop exit
PB: predicated region body
PF: predicated region fallthrough
CT: control target
= control target key end

     0   :  { %s6_s6 = smov 3  ;;  %s38_s9 = smov 96   ;;  %vm3_vm0 = vcmask 261120   ;;  %vm10_vm1 = vcmask 1048320   ;;  %vm17_vm2 = vcmask 785920   ;;  %vm24_vm3 = vcmask 523520   ;;  %s66_s0 = inlined_call_operand.vmem [shape: f32[9,32], index: 0, kind: input, shape index: {}]   ;;  %s67_s1 = inlined_call_operand.vmem [shape: f32[288], index: 1, kind: output, shape index: {}]  }
   0x1   :  { %v32_v0 = vld [vmem:[%s66_s0 + $0x3] ss:$4 sm:%s6_s6]   ;;  %s20_s10 = smov 3  ;;  %s13_s13 = smov 3 }
   0x2   :  { %8 = vrot.lane.b32.xlu0 %v32_v0, %s38_s9  ;;  %v34_v1 = vld [vmem:[%s66_s0 + $0x1] ss:$4 sm:%s20_s10]   ;;  %s39_s14 = smov 32   ;;  %s40_s17 = smov 64  }
   0x3   :  { %22 = vrot.lane.b32.xlu1 %v34_v1, %s39_s14  ;;  %v33_v2 = vld [vmem:[%s66_s0 + $0x2] ss:$4 sm:%s13_s13]   ;;  %v2_v3 = vld [vmem:[%s66_s0] ss:$4 sm:$0x7]  }
   0x4   :  { %4 = vst.msk [vmem:[#allocation0] sm:$0x7] %vm3_vm0, %v2_v3  }
   0xa   :  { %15 = vrot.lane.b32.xlu0 %v33_v2, %s40_s17 }
  0x74   :  { %v9_v4 = vpop.permute.xlu0 %8  }
  0x75   :  { %11 = vst.msk [vmem:[#allocation0] sm:$0x3] %vm10_vm1, %v9_v4   ;;  %v23_v5 = vpop.permute.xlu1 %22  }
  0x7c   :  { %v16_v6 = vpop.permute.xlu0 %15  }
  0x7d   :  { %18 = vst.msk [vmem:[#allocation0] sm:$0x3] %vm17_vm2, %v16_v6  }
  0x7e   :  { %25 = vst.msk [vmem:[#allocation0] sm:$0x3] %vm24_vm3, %v23_v5  }
  0x85   :  { %v28_v7 = vld [vmem:[#allocation0] sm:$0xf] }
  0x86   :  { %31 = vst [vmem:[%s67_s1] sm:$0xf] %v28_v7 }

// kernel: tile.79
= control target key start
LH: loop header
LB: loop body
LE: loop exit
PB: predicated region body
PF: predicated region fallthrough
CT: control target
= control target key end

     0   :  { %s46_s0 = inlined_call_operand.vmem [shape: f32[288], index: 0, kind: input, shape index: {}]   ;;  %s47_s1 = inlined_call_operand.vmem [shape: f32[2,288], index: 1, kind: output, shape index: {}]  }
   0x1   :  { %v4_v0 = vld [vmem:[%s46_s0] ss:$0 sm:$0xff]  ;;  %v14_v1 = vld [vmem:[%s46_s0 + $0x1] ss:$0 sm:$0xff]  ;;  %v16_v2 = vld [vmem:[%s46_s0 + $0x2] ss:$0 sm:$0xff] }
   0x2   :  { %5 = vst [vmem:[%s47_s1] sm:$0x3] %v4_v0 }
   0x3   :  { %15 = vst [vmem:[%s47_s1 + $0x2] sm:$0x3] %v14_v1 }
   0x4   :  { %17 = vst [vmem:[%s47_s1 + $0x4] sm:$0x3] %v16_v2 }

// kernel: tile.88
= control target key start
LH: loop header
LB: loop body
LE: loop exit
PB: predicated region body
PF: predicated region fallthrough
CT: control target
= control target key end

     0   :  { %s19_s12 = smov 3  ;;  %vm27_vm0 = vcmask 785408   ;;  %s82_s13 = smov 32   ;;  %vm16_vm1 = vcmask 261120   ;;  %vm34_vm2 = vcmask 523520   ;;  %vm42_vm3 = vcmask 1047808   ;;  %s117_s0 = inlined_call_operand.vmem [shape: f32[2,288], index: 0, kind: input, shape index: {}]   ;;  %s118_s1 = inlined_call_operand.vmem [shape: f32[1,576], index: 1, kind: output, shape index: {}]  }
   0x1   :  { %v75_v0 = vld [vmem:[%s117_s0 + $0x4] sm:$0x3]  ;;  %v76_v1 = vld [vmem:[%s117_s0 + $0x2] sm:$0x3]  ;;  %v12_v2 = vld [vmem:[%s117_s0] sm:$0x3] }
   0x2   :  { %7 = vst [vmem:[#allocation1 + $0x10] sm:$0x3] %v75_v0  ;;  %s23_s0 = smov 3  ;;  %s38_s14 = smov 3 }
   0x3   :  { %11 = vst [vmem:[#allocation1 + $0x8] sm:$0x3] %v76_v1 }
   0x4   :  { %13 = vst [vmem:[#allocation1] sm:$0x3] %v12_v2 }
   0x9   :  { %v26_v3 = vld [vmem:[#allocation1 + $0x11] sm:$0x1]   ;;  %v15_v10 = vld [vmem:[#allocation1 + $0x10] sm:$0x1]  }
   0xa   :  { %18 = vst.msk [vmem:[#allocation0 + $0x10] sm:$0x1] %vm16_vm1, %v15_v10  }
   0xb   :  { %v24_v4 = vld [vmem:[#allocation1 + $0x9] ss:$-8 sm:%s23_s0]   ;;  %v20_v5 = vld [vmem:[#allocation1] ss:$8 sm:%s19_s12]  }
   0xc   :  { %v28_v6 = vsel %vm27_vm0, %v26_v3, %v24_v4  ;;  %21 = vst [vmem:[#allocation0] ss:$8 sm:$0x3] %v20_v5   ;;  %v39_v7 = vld [vmem:[#allocation1 + $0x1] ss:$8 sm:%s38_s14]  }
   0xd   :  { %29 = vrot.lane.b32.xlu0 %v28_v6, %s82_s13 }
  0x13   :  { %v47_v8 = vld [vmem:[#allocation0] sm:$0x1]  ;;  %v52_v9 = vld [vmem:[#allocation0 + $0x8] sm:$0x1] }
  0x14   :  { %50 = vst [vmem:[%s118_s1] sm:$0x1] %v47_v8 }
  0x15   :  { %40 = vrot.lane.b32.xlu0 %v39_v7, %s82_s13  ;;  %77 = vst [vmem:[%s118_s1 + $0x1] sm:$0x1] %v52_v9 }
  0x7f   :  { %v30_v11 = vpop.permute.xlu0 %29  }
  0x80   :  { %33 = vst.msk [vmem:[#allocation0 + $0x20] ss:$-8 sm:$0x3] %vm16_vm1, %v30_v11  }
  0x81   :  { %36 = vst.msk [vmem:[#allocation0 + $0x20] sm:$0x1] %vm34_vm2, %v30_v11  }
  0x87   :  { %v41_v12 = vpop.permute.xlu0 %40  }
  0x88   :  { %v70_v13 = vld [vmem:[#allocation0 + $0x20] sm:$0x1]  ;;  %44 = vst.msk [vmem:[#allocation0 + $0x10] ss:$8 sm:$0x3] %vm42_vm3, %v41_v12  }
  0x89   :  { %80 = vst [vmem:[%s118_s1 + $0x4] sm:$0x1] %v70_v13 }
  0x8f   :  { %v58_v14 = vld [vmem:[#allocation0 + $0x10] sm:$0x1]  ;;  %v64_v15 = vld [vmem:[#allocation0 + $0x18] sm:$0x1] }
  0x90   :  { %78 = vst [vmem:[%s118_s1 + $0x2] sm:$0x1] %v58_v14 }
  0x91   :  { %79 = vst [vmem:[%s118_s1 + $0x3] sm:$0x1] %v64_v15 }

// kernel: discriminator_forward.8
= control target key start
LH: loop header
LB: loop body
LE: loop exit
PB: predicated region body
PF: predicated region fallthrough
CT: control target
= control target key end

     0   :  { %vm403_vm10 = vcmask 523264   ;;  %s885_s1 = inlined_call_operand.vmem [shape: bf16[576,128], index: 1, kind: input, shape index: {}]   ;;  %s886_s0 = inlined_call_operand.vmem [shape: bf16[16,576], index: 0, kind: input, shape index: {}]   ;;  %s887_s2 = inlined_call_operand.vmem [shape: f32[1,576], index: 2, kind: input, shape index: {}]   ;;  %s888_s3 = inlined_call_operand.vmem [shape: f32[1,576], index: 3, kind: input, shape index: {}]   ;;  %s889_s4 = inlined_call_operand.vmem [shape: bf16[16,128], index: 4, kind: output, shape index: {0}]   ;;  %s890_s5 = inlined_call_operand.vmem [shape: f32[1,2,128], index: 5, kind: output, shape index: {1}]  }
   0x1   :  { %v659_v0 = vld [vmem:[%s885_s1 + $0x38] sm:$0xff]  ;;  %v658_v4 = vld [vmem:[%s885_s1 + $0x30] sm:$0xff]  ;;  %v657_v8 = vld [vmem:[%s885_s1 + $0x28] sm:$0xff] }
   0x2   :  { %v667_v1 = vld [vmem:[%s885_s1 + $0x78] sm:$0xff]  ;;  %407 = vmatpush.bf16.msra.mxu0 %v659_v0  ;;  %v666_v5 = vld [vmem:[%s885_s1 + $0x70] sm:$0xff]  ;;  %v665_v9 = vld [vmem:[%s885_s1 + $0x68] sm:$0xff] }
   0x3   :  { %v675_v2 = vld [vmem:[%s885_s1 + $0xb8] sm:$0xff]  ;;  %421 = vmatpush.bf16.msra.mxu1 %v667_v1  ;;  %v674_v6 = vld [vmem:[%s885_s1 + $0xb0] sm:$0xff]  ;;  %v673_v10 = vld [vmem:[%s885_s1 + $0xa8] sm:$0xff] }
   0x4   :  { %v683_v3 = vld [vmem:[%s885_s1 + $0xf8] sm:$0xff]  ;;  %435 = vmatpush.bf16.msra.mxu2 %v675_v2  ;;  %v682_v7 = vld [vmem:[%s885_s1 + $0xf0] sm:$0xff]  ;;  %v681_v11 = vld [vmem:[%s885_s1 + $0xe8] sm:$0xff] }
   0x5   :  { %449 = vmatpush.bf16.msra.mxu3 %v683_v3  ;;  %v656_v12 = vld [vmem:[%s885_s1 + $0x20] sm:$0xff]  ;;  %v23_v17 = vld [vmem:[%s886_s0 + $0x14] sm:$0xff]  ;;  %v21_v26 = vld [vmem:[%s886_s0 + $0x8] sm:$0xff] }
   0x6   :  { %408 = vmatpush.bf16.msra.mxu0 %v658_v4  ;;  %v664_v13 = vld [vmem:[%s885_s1 + $0x60] sm:$0xff]  ;;  %v31_v22 = vunpack.c.l.bf16 %v23_v17  ;;  %v32_v25 = vunpack.c.h.bf16 %v23_v17  ;;  %v28_v30 = vunpack.c.l.bf16 %v21_v26  ;;  %v655_v32 = vld [vmem:[%s885_s1 + $0x18] sm:$0xff]  ;;  %v654_v46 = vld [vmem:[%s885_s1 + $0x10] sm:$0xff]  ;;  %v29_v49 = vunpack.c.h.bf16 %v21_v26 }
   0x7   :  { %422 = vmatpush.bf16.msra.mxu1 %v666_v5  ;;  %v672_v14 = vld [vmem:[%s885_s1 + $0xa0] sm:$0xff]  ;;  %v663_v33 = vld [vmem:[%s885_s1 + $0x58] sm:$0xff]  ;;  %v662_v51 = vld [vmem:[%s885_s1 + $0x50] sm:$0xff] }
   0x8   :  { %436 = vmatpush.bf16.msra.mxu2 %v674_v6  ;;  %v680_v15 = vld [vmem:[%s885_s1 + $0xe0] sm:$0xff]  ;;  %v671_v37 = vld [vmem:[%s885_s1 + $0x98] sm:$0xff]  ;;  %v670_v52 = vld [vmem:[%s885_s1 + $0x90] sm:$0xff] }
   0x9   :  { %450 = vmatpush.bf16.msra.mxu3 %v682_v7  ;;  %v20_v16 = vld [vmem:[%s886_s0] sm:$0xff]  ;;  %v679_v38 = vld [vmem:[%s885_s1 + $0xd8] sm:$0xff]  ;;  %v678_v53 = vld [vmem:[%s885_s1 + $0xd0] sm:$0xff] }
   0xa   :  { %409 = vmatpush.bf16.msra.mxu0 %v657_v8  ;;  %v26_v18 = vunpack.c.l.bf16 %v20_v16  ;;  %v780_v19 = vld [vmem:[%s887_s2] sm:$0x1f]  ;;  %v27_v21 = vunpack.c.h.bf16 %v20_v16  ;;  %v653_v62 = vld [vmem:[%s885_s1 + $0x8] sm:$0xff]  ;;  %v22_v3 = vld [vmem:[%s886_s0 + $0x10] sm:$0xf] }
   0xb   :  { %423 = vmatpush.bf16.msra.mxu1 %v665_v9  ;;  %v785_v20 = vld [vmem:[%s888_s3] sm:$0x1f]  ;;  %v38_v23 = vperm.slane %v780_v19, 0  ;;  %v39_v28 = vperm.slane %v780_v19, 1  ;;  %v40_v36 = vperm.slane %v780_v19, 2  ;;  %v41_v50 = vperm.slane %v780_v19, 3 }
   0xc   :  { %437 = vmatpush.bf16.msra.mxu2 %v673_v10  ;;  %v60_v24 = vperm.slane %v785_v20, 0  ;;  %v24_v27 = vld [vmem:[%s886_s0 + $0x1c] sm:$0xff]  ;;  %v61_v29 = vperm.slane %v785_v20, 1  ;;  %v62_v41 = vperm.slane %v785_v20, 2  ;;  %v63_v57 = vperm.slane %v785_v20, 3  ;;  %v661_v63 = vld [vmem:[%s885_s1 + $0x48] sm:$0xff] }
   0xd   :  { %451 = vmatpush.bf16.msra.mxu3 %v681_v11  ;;  %v33_v31 = vunpack.c.l.bf16 %v24_v27  ;;  %v48_v34 = vmul.f32 %v38_v23, %v26_v18  ;;  %v53_v35 = vmul.f32 %v38_v23, %v31_v22  ;;  %v49_v39 = vmul.f32 %v39_v28, %v27_v21  ;;  %v669_v1 = vld [vmem:[%s885_s1 + $0x88] sm:$0xff]  ;;  %v25_v8 = vld [vmem:[%s886_s0 + $0x24] sm:$0xf] }
   0xe   :  { %410 = vmatpush.bf16.msra.mxu0 %v656_v12  ;;  %v54_v40 = vmul.f32 %v39_v28, %v32_v25  ;;  %v50_v44 = vmul.f32 %v40_v36, %v28_v30  ;;  %v34_v54 = vunpack.c.h.bf16 %v24_v27  ;;  %v51_v0 = vmul.f32 %v41_v50, %v29_v49  ;;  %v677_v4 = vld [vmem:[%s885_s1 + $0xc8] sm:$0xff]  ;;  %v652_v16 = vld [vmem:[%s885_s1] sm:$0xff]  ;;  %v687_v28 = vld [vmem:[%s885_s1 + $0x118] sm:$0xff] }
   0xf   :  { %424 = vmatpush.bf16.msra.mxu1 %v664_v13  ;;  %v70_v42 = vadd.f32 %v60_v24, %v48_v34  ;;  %v75_v43 = vadd.f32 %v60_v24, %v53_v35  ;;  %v55_v45 = vmul.f32 %v40_v36, %v33_v31  ;;  %v71_v47 = vadd.f32 %v61_v29, %v49_v39  ;;  %v660_v17 = vld [vmem:[%s885_s1 + $0x40] sm:$0xff]  ;;  %v686_v36 = vld [vmem:[%s885_s1 + $0x110] sm:$0xff]  ;;  %v685_v39 = vld [vmem:[%s885_s1 + $0x108] sm:$0xff] }
  0x10   :  { %438 = vmatpush.bf16.msra.mxu2 %v672_v14  ;;  %v76_v48 = vadd.f32 %v61_v29, %v54_v40  ;;  %v72_v60 = vadd.f32 %v62_v41, %v50_v44  ;;  %v56_v6 = vmul.f32 %v41_v50, %v34_v54  ;;  %v73_v7 = vadd.f32 %v63_v57, %v51_v0  ;;  %v668_v24 = vld [vmem:[%s885_s1 + $0x80] sm:$0xff] }
  0x11   :  { %452 = vmatpush.bf16.msra.mxu3 %v680_v15  ;;  %vm80_vm0 = vcmp.gt.f32.partialorder %v70_v42, 0.0  ;;  %v90_v55 = vmul.f32 0.2, %v70_v42  ;;  %v95_v56 = vmul.f32 0.2, %v75_v43  ;;  %v77_v61 = vadd.f32 %v62_v41, %v55_v45  ;;  %v676_v25 = vld [vmem:[%s885_s1 + $0xc0] sm:$0xff] }
  0x12   :  { %411 = vmatpush.bf16.msra.mxu0 %v655_v32  ;;  %v91_v58 = vmul.f32 0.2, %v71_v47  ;;  %v96_v59 = vmul.f32 0.2, %v76_v48  ;;  %vm85_vm1 = vcmp.gt.f32.partialorder %v75_v43, 0.0  ;;  %vm81_vm2 = vcmp.gt.f32.partialorder %v71_v47, 0.0 }
  0x13   :  { %425 = vmatpush.bf16.msra.mxu1 %v663_v33  ;;  %vm86_vm3 = vcmp.gt.f32.partialorder %v76_v48, 0.0  ;;  %vm82_vm4 = vcmp.gt.f32.partialorder %v72_v60, 0.0  ;;  %v92_v2 = vmul.f32 0.2, %v72_v60  ;;  %vm87_vm5 = vcmp.gt.f32.partialorder %v77_v61, 0.0  ;;  %v684_v41 = vld [vmem:[%s885_s1 + $0x100] sm:$0xff] }
  0x14   :  { %439 = vmatpush.bf16.msra.mxu2 %v671_v37  ;;  %v97_v5 = vmul.f32 0.2, %v77_v61  ;;  %v100_v9 = vsel %vm80_vm0, %v70_v42, %v90_v55  ;;  %v105_v10 = vsel %vm85_vm1, %v75_v43, %v95_v56  ;;  %v101_v11 = vsel %vm81_vm2, %v71_v47, %v91_v58 }
  0x15   :  { %453 = vmatpush.bf16.msra.mxu3 %v679_v38  ;;  %v106_v12 = vsel %vm86_vm3, %v76_v48, %v96_v59  ;;  %v78_v13 = vadd.f32 %v63_v57, %v56_v6  ;;  %vm83_vm6 = vcmp.gt.f32.partialorder %v73_v7, 0.0  ;;  %v93_v14 = vmul.f32 0.2, %v73_v7 }
  0x16   :  { %412 = vmatpush.bf16.msra.mxu0 %v654_v46  ;;  %v30_v15 = vunpack.c.l.bf16 %v22_v3  ;;  %v102_v18 = vsel %vm82_vm4, %v72_v60, %v92_v2  ;;  %v107_v21 = vsel %vm87_vm5, %v77_v61, %v97_v5  ;;  %v35_v22 = vunpack.c.l.bf16 %v25_v8 }
  0x17   :  { %426 = vmatpush.bf16.msra.mxu1 %v662_v51  ;;  %v42_v23 = vperm.slane %v780_v19, 4  ;;  %vm88_vm7 = vcmp.gt.f32.partialorder %v78_v13, 0.0  ;;  %v98_v26 = vmul.f32 0.2, %v78_v13  ;;  %v103_v27 = vsel %vm83_vm6, %v73_v7, %v93_v14 }
  0x18   :  { %440 = vmatpush.bf16.msra.mxu2 %v670_v52  ;;  %v110_v29 = vpack.c.bf16 %v105_v10, %v100_v9  ;;  %v111_v19 = vpack.c.bf16 %v106_v12, %v101_v11  ;;  %v112_v30 = vpack.c.bf16 %v107_v21, %v102_v18  ;;  %v64_v35 = vperm.slane %v785_v20, 4 }
  0x19   :  { %454 = vmatpush.bf16.msra.mxu3 %v678_v53  ;;  %v108_v31 = vsel %vm88_vm7, %v78_v13, %v98_v26  ;;  %v52_v33 = vmul.f32 %v42_v23, %v30_v15  ;;  %v57_v34 = vmul.f32 %v42_v23, %v35_v22 }
  0x1a   :  { %413 = vmatpush.bf16.msra.mxu0 %v653_v62  ;;  %v113_v32 = vpack.c.bf16 %v108_v31, %v103_v27 }
  0x1b   :  { %427 = vmatpush.bf16.msra.mxu1 %v661_v63  ;;  %v74_v37 = vadd.f32 %v64_v35, %v52_v33  ;;  %v79_v38 = vadd.f32 %v64_v35, %v57_v34 }
  0x1c   :  { %441 = vmatpush.bf16.msra.mxu2 %v669_v1 }
  0x1d   :  { %455 = vmatpush.bf16.msra.mxu3 %v677_v4  ;;  %v94_v40 = vmul.f32 0.2, %v74_v37  ;;  %v99_v20 = vmul.f32 0.2, %v79_v38  ;;  %vm84_vm8 = vcmp.gt.f32.partialorder %v74_v37, 0.0  ;;  %vm89_vm9 = vcmp.gt.f32.partialorder %v79_v38, 0.0 }
  0x1e   :  { %414 = vmatpush.bf16.msra.mxu0 %v652_v16 }
  0x1f   :  { %428 = vmatpush.bf16.msra.mxu1 %v660_v17  ;;  %v104_v42 = vsel %vm84_vm8, %v74_v37, %v94_v40  ;;  %v109_v43 = vsel %vm89_vm9, %v79_v38, %v99_v20 }
  0x20   :  { %442 = vmatpush.bf16.msra.mxu2 %v668_v24  ;;  %v114_v44 = vpack.c.bf16 %v109_v43, %v104_v42 }
  0x21   :  { %456 = vmatpush.bf16.msra.mxu3 %v676_v25  ;;  %415 = vmatmul.bf16.vlgmr.msra.gmra.mxu0 %v110_v29 }
  0x22   :  { %467 = vmatpush.bf16.msrb.mxu0 %v687_v28  ;;  %429 = vmatmul.bf16.vlgmr.msra.gmra.mxu1 %v111_v19 }
  0x23   :  { %443 = vmatmul.bf16.vlgmr.msra.gmra.mxu2 %v112_v30 }
  0x24   :  { %457 = vmatmul.bf16.vlgmr.msra.gmra.mxu3 %v113_v32 }
  0x26   :  { %468 = vmatpush.bf16.msrb.mxu0 %v686_v36 }
  0x2a   :  { %469 = vmatpush.bf16.msrb.mxu0 %v685_v39 }
  0x2e   :  { %470 = vmatpush.bf16.msrb.mxu0 %v684_v41 }
  0x31   :  { %651 = vmatmul.msk.bf16.vlgmr.msrb.gmra.mxu0 %vm403_vm10, %v114_v44 }
  0x9e   :  { %v416_v45 = vpop.f32.mrf.mxu0 }
  0x9f   :  { %v430_v46 = vpop.f32.mrf.mxu1 }
  0xa0   :  { %v431_v51 = vadd.f32 %v430_v46, %v416_v45 }
  0xa6   :  { %v444_v47 = vpop.f32.mrf.mxu2  ;;  %v418_v48 = vpop.f32.mrf.mxu0 }
  0xa7   :  { %v458_v49 = vpop.f32.mrf.mxu3  ;;  %v432_v50 = vpop.f32.mrf.mxu1  ;;  %v445_v54 = vadd.f32 %v444_v47, %v431_v51 }
  0xa8   :  { %v433_v55 = vadd.f32 %v432_v50, %v418_v48 }
  0xa9   :  { %v459_v57 = vadd.f32 %v458_v49, %v445_v54 }
  0xae   :  { %v446_v52 = vpop.f32.mrf.mxu2  ;;  %v472_v53 = vpop.f32.mrf.mxu0 }
  0xaf   :  { %v447_v56 = vadd.f32 %v446_v52, %v433_v55  ;;  %v460_v58 = vpop.f32.mrf.mxu3  ;;  %v473_v60 = vadd.f32 %v472_v53, %v459_v57 }
  0xb1   :  { %v461_v59 = vadd.f32 %v460_v58, %v447_v56  ;;  %v489_v63 = vmul.f32 %v473_v60, %v473_v60 }
  0xb6   :  { %v474_v61 = vpop.f32.mrf.mxu0 }
  0xb7   :  { %v475_v62 = vadd.f32 %v474_v61, %v461_v59 }
  0xb9   :  { %v691_v0 = vpack.c.bf16 %v475_v62, %v473_v60  ;;  %v481_v1 = vadd.f32 %v475_v62, %v473_v60  ;;  %v490_v2 = vmul.f32 %v475_v62, %v475_v62 }
  0xbb   :  { %692 = vst [vmem:[%s889_s4] sm:$0xff] %v691_v0   ;;  %v482_v3 = vrot.slane %v481_v1, 4  ;;  %v491_v4 = vadd.f32 %v490_v2, %v489_v63 }
  0xbd   :  { %v483_v5 = vadd.f32 %v482_v3, %v481_v1  ;;  %v492_v6 = vrot.slane %v491_v4, 4 }
  0xbf   :  { %v484_v7 = vrot.slane %v483_v5, 2  ;;  %v493_v8 = vadd.f32 %v492_v6, %v491_v4 }
  0xc1   :  { %v485_v9 = vadd.f32 %v484_v7, %v483_v5  ;;  %v494_v10 = vrot.slane %v493_v8, 2 }
  0xc3   :  { %v486_v11 = vrot.slane %v485_v9, 1  ;;  %v495_v12 = vadd.f32 %v494_v10, %v493_v8 }
  0xc5   :  { %v487_v13 = vadd.f32 %v486_v11, %v485_v9  ;;  %v496_v14 = vrot.slane %v495_v12, 1 }
  0xc7   :  { %488 = vst [vmem:[%s890_s5] sm:$0x1] %v487_v13  ;;  %v497_v15 = vadd.f32 %v496_v14, %v495_v12 }
  0xc9   :  { %498 = vst [vmem:[%s890_s5 + $0x1] sm:$0x1] %v497_v15 }

// kernel: tile.93
= control target key start
LH: loop header
LB: loop body
LE: loop exit
PB: predicated region body
PF: predicated region fallthrough
CT: control target
= control target key end

     0   :  { %s28_s0 = inlined_call_operand.vmem [shape: f32[64], index: 0, kind: input, shape index: {}]   ;;  %s29_s1 = inlined_call_operand.vmem [shape: f32[16,64], index: 1, kind: output, shape index: {}]  }
   0x1   :  { %v4_v0 = vld [vmem:[%s28_s0] ss:$0 sm:$0xff] }
   0x2   :  { %5 = vst [vmem:[%s29_s1] sm:$0xff] %v4_v0 }
   0x3   :  { %8 = vst [vmem:[%s29_s1 + $0x8] sm:$0xff] %v4_v0 }

// kernel: tile.96
= control target key start
LH: loop header
LB: loop body
LE: loop exit
PB: predicated region body
PF: predicated region fallthrough
CT: control target
= control target key end

     0   :  { %vm3_vm0 = vcmask 523264   ;;  %s13_s11 = smov 64   ;;  %vm9_vm1 = vcmask 1048064   ;;  %s36_s0 = inlined_call_operand.vmem [shape: f32[16,64], index: 0, kind: input, shape index: {}]   ;;  %s37_s1 = inlined_call_operand.vmem [shape: f32[1024], index: 1, kind: output, shape index: {}]  }
   0x1   :  { %v2_v0 = vld [vmem:[%s36_s0] ss:$2 sm:$0xff]   ;;  %v11_v1 = vld [vmem:[%s36_s0 + $0x1] ss:$2 sm:$0xff]  }
   0x2   :  { %4 = vst.msk [vmem:[%s37_s1] sm:$0xff] %vm3_vm0, %v2_v0   ;;  %7 = vrot.lane.b32.xlu0 %v11_v1, %s13_s11 }
  0x74   :  { %v8_v2 = vpop.permute.xlu0 %7  }
  0x75   :  { %10 = vst.msk [vmem:[%s37_s1] sm:$0xff] %vm9_vm1, %v8_v2  }

// kernel: discriminator_forward.9
= control target key start
LH: loop header
LB: loop body
LE: loop exit
PB: predicated region body
PF: predicated region fallthrough
CT: control target
= control target key end

     0   :  { %s5113_s1 = inlined_call_operand.vmem [shape: bf16[4096,4], index: 1, kind: input, shape index: {}]   ;;  %s5114_s0 = inlined_call_operand.vmem [shape: bf16[8,4096], index: 0, kind: input, shape index: {}]   ;;  %s5115_s2 = inlined_call_operand.vmem [shape: f32[1,4096], index: 2, kind: input, shape index: {}]   ;;  %s5116_s3 = inlined_call_operand.vmem [shape: f32[1,4096], index: 3, kind: input, shape index: {}]   ;;  %s5117_s4 = inlined_call_operand.vmem [shape: f32[8,4], index: 4, kind: output, shape index: {}]  }
   0x1   :  { %v3906_v0 = vld [vmem:[%s5113_s1 + $0x38] sm:$0xff]  ;;  %v3905_v4 = vld [vmem:[%s5113_s1 + $0x30] sm:$0xff]  ;;  %v3904_v8 = vld [vmem:[%s5113_s1 + $0x28] sm:$0xff] }
   0x2   :  { %v3914_v1 = vld [vmem:[%s5113_s1 + $0x78] sm:$0xff]  ;;  %2449 = vmatpush.bf16.msra.mxu0 %v3906_v0  ;;  %v3913_v5 = vld [vmem:[%s5113_s1 + $0x70] sm:$0xff]  ;;  %v3912_v9 = vld [vmem:[%s5113_s1 + $0x68] sm:$0xff] }
   0x3   :  { %v3922_v2 = vld [vmem:[%s5113_s1 + $0xb8] sm:$0xff]  ;;  %2462 = vmatpush.bf16.msra.mxu1 %v3914_v1  ;;  %v3921_v6 = vld [vmem:[%s5113_s1 + $0xb0] sm:$0xff]  ;;  %v3920_v10 = vld [vmem:[%s5113_s1 + $0xa8] sm:$0xff] }
   0x4   :  { %v3930_v3 = vld [vmem:[%s5113_s1 + $0xf8] sm:$0xff]  ;;  %2475 = vmatpush.bf16.msra.mxu2 %v3922_v2  ;;  %v3929_v7 = vld [vmem:[%s5113_s1 + $0xf0] sm:$0xff]  ;;  %v3928_v11 = vld [vmem:[%s5113_s1 + $0xe8] sm:$0xff] }
   0x5   :  { %2488 = vmatpush.bf16.msra.mxu3 %v3930_v3  ;;  %v3903_v12 = vld [vmem:[%s5113_s1 + $0x20] sm:$0xff]  ;;  %v3902_v16 = vld [vmem:[%s5113_s1 + $0x18] sm:$0xff]  ;;  %v3901_v20 = vld [vmem:[%s5113_s1 + $0x10] sm:$0xff] }
   0x6   :  { %2450 = vmatpush.bf16.msra.mxu0 %v3905_v4  ;;  %v3911_v13 = vld [vmem:[%s5113_s1 + $0x60] sm:$0xff]  ;;  %v3910_v17 = vld [vmem:[%s5113_s1 + $0x58] sm:$0xff]  ;;  %v18_v21 = vld [vmem:[%s5114_s0 + $0x8] sm:$0xff] }
   0x7   :  { %2463 = vmatpush.bf16.msra.mxu1 %v3913_v5  ;;  %v3919_v14 = vld [vmem:[%s5113_s1 + $0xa0] sm:$0xff]  ;;  %v3918_v18 = vld [vmem:[%s5113_s1 + $0x98] sm:$0xff]  ;;  %v3909_v23 = vld [vmem:[%s5113_s1 + $0x50] sm:$0xff]  ;;  %v35_v24 = vunpack.c.l.bf16 %v18_v21  ;;  %v36_v29 = vunpack.c.h.bf16 %v18_v21 }
   0x8   :  { %2476 = vmatpush.bf16.msra.mxu2 %v3921_v6  ;;  %v3927_v15 = vld [vmem:[%s5113_s1 + $0xe0] sm:$0xff]  ;;  %v3926_v19 = vld [vmem:[%s5113_s1 + $0xd8] sm:$0xff]  ;;  %v3917_v30 = vld [vmem:[%s5113_s1 + $0x90] sm:$0xff] }
   0x9   :  { %2489 = vmatpush.bf16.msra.mxu3 %v3929_v7  ;;  %v4251_v22 = vld [vmem:[%s5115_s2] sm:$0xff]  ;;  %v3925_v31 = vld [vmem:[%s5113_s1 + $0xd0] sm:$0xff]  ;;  %v3900_v43 = vld [vmem:[%s5113_s1 + $0x8] sm:$0xff] }
   0xa   :  { %2451 = vmatpush.bf16.msra.mxu0 %v3904_v8  ;;  %v75_v25 = vperm.slane %v4251_v22, 2  ;;  %v4260_v26 = vld [vmem:[%s5116_s3] sm:$0xff]  ;;  %v73_v28 = vperm.slane %v4251_v22, 0  ;;  %v76_v35 = vperm.slane %v4251_v22, 3  ;;  %v74_v39 = vperm.slane %v4251_v22, 1  ;;  %v3908_v44 = vld [vmem:[%s5113_s1 + $0x48] sm:$0xff] }
   0xb   :  { %2464 = vmatpush.bf16.msra.mxu1 %v3912_v9  ;;  %v17_v27 = vld [vmem:[%s5114_s0] sm:$0xff]  ;;  %v179_v32 = vperm.slane %v4260_v26, 2  ;;  %v177_v34 = vperm.slane %v4260_v26, 0  ;;  %v180_v37 = vperm.slane %v4260_v26, 3  ;;  %v178_v42 = vperm.slane %v4260_v26, 1  ;;  %v3916_v47 = vld [vmem:[%s5113_s1 + $0x88] sm:$0xff] }
   0xc   :  { %2477 = vmatpush.bf16.msra.mxu2 %v3920_v10  ;;  %v33_v33 = vunpack.c.l.bf16 %v17_v27  ;;  %v139_v36 = vmul.f32 %v75_v25, %v35_v24  ;;  %v34_v38 = vunpack.c.h.bf16 %v17_v27  ;;  %v140_v41 = vmul.f32 %v76_v35, %v36_v29  ;;  %v3924_v48 = vld [vmem:[%s5113_s1 + $0xc8] sm:$0xff]  ;;  %v3899_v55 = vld [vmem:[%s5113_s1] sm:$0xff]  ;;  %v3938_v62 = vld [vmem:[%s5113_s1 + $0x138] sm:$0xff] }
   0xd   :  { %2490 = vmatpush.bf16.msra.mxu3 %v3928_v11  ;;  %v3907_v56 = vld [vmem:[%s5113_s1 + $0x40] sm:$0xff]  ;;  %v3946_v63 = vld [vmem:[%s5113_s1 + $0x178] sm:$0xff]  ;;  %v3937_v8 = vld [vmem:[%s5113_s1 + $0x130] sm:$0xff]  ;;  %v79_v24 = vperm.slane %v4251_v22, 6  ;;  %v77_v27 = vperm.slane %v4251_v22, 4  ;;  %v80_v29 = vperm.slane %v4251_v22, 7 }
   0xe   :  { %2452 = vmatpush.bf16.msra.mxu0 %v3903_v12  ;;  %v137_v40 = vmul.f32 %v73_v28, %v33_v33  ;;  %v243_v45 = vadd.f32 %v179_v32, %v139_v36  ;;  %v138_v46 = vmul.f32 %v74_v39, %v34_v38  ;;  %v244_v50 = vadd.f32 %v180_v37, %v140_v41  ;;  %v3915_v58 = vld [vmem:[%s5113_s1 + $0x80] sm:$0xff]  ;;  %v3954_v2 = vld [vmem:[%s5113_s1 + $0x1b8] sm:$0xff]  ;;  %v3945_v9 = vld [vmem:[%s5113_s1 + $0x170] sm:$0xff] }
   0xf   :  { %2465 = vmatpush.bf16.msra.mxu1 %v3911_v13  ;;  %v3923_v59 = vld [vmem:[%s5113_s1 + $0xc0] sm:$0xff]  ;;  %v3962_v3 = vld [vmem:[%s5113_s1 + $0x1f8] sm:$0xff]  ;;  %v3953_v10 = vld [vmem:[%s5113_s1 + $0x1b0] sm:$0xff]  ;;  %v183_v36 = vperm.slane %v4260_v26, 6  ;;  %v181_v38 = vperm.slane %v4260_v26, 4 }
  0x10   :  { %2478 = vmatpush.bf16.msra.mxu2 %v3919_v14  ;;  %v241_v49 = vadd.f32 %v177_v34, %v137_v40  ;;  %vm275_vm0 = vcmp.gt.f32.partialorder %v243_v45, 0.0  ;;  %v307_v51 = vmul.f32 0.2, %v243_v45  ;;  %v242_v52 = vadd.f32 %v178_v42, %v138_v46  ;;  %v3961_v11 = vld [vmem:[%s5113_s1 + $0x1f0] sm:$0xff]  ;;  %v3936_v12 = vld [vmem:[%s5113_s1 + $0x128] sm:$0xff]  ;;  %v3959_v21 = vld [vmem:[%s5113_s1 + $0x1e0] sm:$0xff] }
  0x11   :  { %2491 = vmatpush.bf16.msra.mxu3 %v3927_v15  ;;  %vm276_vm2 = vcmp.gt.f32.partialorder %v244_v50, 0.0  ;;  %v308_v54 = vmul.f32 0.2, %v244_v50  ;;  %v3944_v13 = vld [vmem:[%s5113_s1 + $0x168] sm:$0xff]  ;;  %v3934_v32 = vld [vmem:[%s5113_s1 + $0x118] sm:$0xff]  ;;  %v184_v40 = vperm.slane %v4260_v26, 7 }
  0x12   :  { %2453 = vmatpush.bf16.msra.mxu0 %v3902_v16  ;;  %vm273_vm1 = vcmp.gt.f32.partialorder %v241_v49, 0.0  ;;  %v305_v53 = vmul.f32 0.2, %v241_v49  ;;  %vm274_vm3 = vcmp.gt.f32.partialorder %v242_v52, 0.0  ;;  %v306_v57 = vmul.f32 0.2, %v242_v52 }
  0x13   :  { %2466 = vmatpush.bf16.msra.mxu1 %v3910_v17  ;;  %v339_v60 = vsel %vm275_vm0, %v243_v45, %v307_v51  ;;  %v340_v0 = vsel %vm276_vm2, %v244_v50, %v308_v54  ;;  %v3952_v14 = vld [vmem:[%s5113_s1 + $0x1a8] sm:$0xff]  ;;  %v20_v16 = vld [vmem:[%s5114_s0 + $0x18] sm:$0xff]  ;;  %v19_v17 = vld [vmem:[%s5114_s0 + $0x10] sm:$0xff]  ;;  %v182_v42 = vperm.slane %v4260_v26, 5 }
  0x14   :  { %2479 = vmatpush.bf16.msra.mxu2 %v3918_v18  ;;  %v337_v61 = vsel %vm273_vm1, %v241_v49, %v305_v53  ;;  %v338_v1 = vsel %vm274_vm3, %v242_v52, %v306_v57  ;;  %v371_v4 = vpack.c.bf16 %v339_v60, %v339_v60  ;;  %v372_v6 = vpack.c.bf16 %v340_v0, %v340_v0  ;;  %v3960_v15 = vld [vmem:[%s5113_s1 + $0x1e8] sm:$0xff]  ;;  %v3935_v18 = vld [vmem:[%s5113_s1 + $0x120] sm:$0xff]  ;;  %v3942_v33 = vld [vmem:[%s5113_s1 + $0x158] sm:$0xff] }
  0x15   :  { %2492 = vmatpush.bf16.msra.mxu3 %v3926_v19  ;;  %v369_v5 = vpack.c.bf16 %v337_v61, %v337_v61  ;;  %v370_v7 = vpack.c.bf16 %v338_v1, %v338_v1  ;;  %v3943_v19 = vld [vmem:[%s5113_s1 + $0x160] sm:$0xff]  ;;  %v37_v25 = vunpack.c.l.bf16 %v19_v17  ;;  %v40_v28 = vunpack.c.h.bf16 %v20_v16  ;;  %v3950_v34 = vld [vmem:[%s5113_s1 + $0x198] sm:$0xff]  ;;  %v3949_v45 = vld [vmem:[%s5113_s1 + $0x190] sm:$0xff] }
  0x16   :  { %2454 = vmatpush.bf16.msra.mxu0 %v3901_v20  ;;  %v3951_v20 = vld [vmem:[%s5113_s1 + $0x1a0] sm:$0xff]  ;;  %v3957_v26 = vld [vmem:[%s5113_s1 + $0x1d0] sm:$0xff]  ;;  %v3932_v50 = vld [vmem:[%s5113_s1 + $0x108] sm:$0xff] }
  0x17   :  { %2467 = vmatpush.bf16.msra.mxu1 %v3909_v23  ;;  %v39_v23 = vunpack.c.l.bf16 %v20_v16  ;;  %v141_v37 = vmul.f32 %v77_v27, %v37_v25  ;;  %v144_v39 = vmul.f32 %v80_v29, %v40_v28  ;;  %v3940_v51 = vld [vmem:[%s5113_s1 + $0x148] sm:$0xff]  ;;  %v3947_v60 = vld [vmem:[%s5113_s1 + $0x180] sm:$0xff]  ;;  %v3970_v0 = vld [vmem:[%s5113_s1 + $0x238] sm:$0xff] }
  0x18   :  { %2480 = vmatpush.bf16.msra.mxu2 %v3917_v30  ;;  %v38_v30 = vunpack.c.h.bf16 %v19_v17  ;;  %v3948_v52 = vld [vmem:[%s5113_s1 + $0x188] sm:$0xff]  ;;  %v3955_v61 = vld [vmem:[%s5113_s1 + $0x1c0] sm:$0xff]  ;;  %v3978_v1 = vld [vmem:[%s5113_s1 + $0x278] sm:$0xff] }
  0x19   :  { %2493 = vmatpush.bf16.msra.mxu3 %v3925_v31  ;;  %v78_v31 = vperm.slane %v4251_v22, 5  ;;  %v3958_v22 = vld [vmem:[%s5113_s1 + $0x1d8] sm:$0xff]  ;;  %v143_v35 = vmul.f32 %v79_v24, %v39_v23  ;;  %v3956_v53 = vld [vmem:[%s5113_s1 + $0x1c8] sm:$0xff]  ;;  %v3975_v23 = vld [vmem:[%s5113_s1 + $0x260] sm:$0xff] }
  0x1a   :  { %2455 = vmatpush.bf16.msra.mxu0 %v3900_v43  ;;  %v3933_v43 = vld [vmem:[%s5113_s1 + $0x110] sm:$0xff]  ;;  %v3984_v16 = vld [vmem:[%s5113_s1 + $0x2a8] sm:$0xff]  ;;  %v3983_v24 = vld [vmem:[%s5113_s1 + $0x2a0] sm:$0xff] }
  0x1b   :  { %2468 = vmatpush.bf16.msra.mxu1 %v3908_v44  ;;  %v142_v41 = vmul.f32 %v78_v31, %v38_v30  ;;  %v3941_v44 = vld [vmem:[%s5113_s1 + $0x150] sm:$0xff]  ;;  %v247_v46 = vadd.f32 %v183_v36, %v143_v35  ;;  %v3992_v17 = vld [vmem:[%s5113_s1 + $0x2e8] sm:$0xff]  ;;  %v3991_v25 = vld [vmem:[%s5113_s1 + $0x2e0] sm:$0xff] }
  0x1c   :  { %2481 = vmatpush.bf16.msra.mxu2 %v3916_v47  ;;  %v245_v47 = vadd.f32 %v181_v38, %v141_v37  ;;  %v4478_v31 = vld [vmem:[%s5116_s3 + $0x8] sm:$0xff]  ;;  %v3966_v35 = vld [vmem:[%s5113_s1 + $0x218] sm:$0xff] }
  0x1d   :  { %2494 = vmatpush.bf16.msra.mxu3 %v3924_v48  ;;  %v248_v48 = vadd.f32 %v184_v40, %v144_v39  ;;  %v246_v49 = vadd.f32 %v182_v42, %v142_v41  ;;  %v311_v54 = vmul.f32 0.2, %v247_v46  ;;  %vm279_vm4 = vcmp.gt.f32.partialorder %v247_v46, 0.0  ;;  %v3974_v36 = vld [vmem:[%s5113_s1 + $0x258] sm:$0xff] }
  0x1e   :  { %2456 = vmatpush.bf16.msra.mxu0 %v3899_v55  ;;  %v309_v55 = vmul.f32 0.2, %v245_v47  ;;  %vm277_vm5 = vcmp.gt.f32.partialorder %v245_v47, 0.0  ;;  %v3982_v37 = vld [vmem:[%s5113_s1 + $0x298] sm:$0xff]  ;;  %v185_v40 = vperm.slane %v4478_v31, 0  ;;  %v187_v42 = vperm.slane %v4478_v31, 2 }
  0x1f   :  { %2469 = vmatpush.bf16.msra.mxu1 %v3907_v56  ;;  %v312_v56 = vmul.f32 0.2, %v248_v48  ;;  %v310_v57 = vmul.f32 0.2, %v246_v49  ;;  %vm280_vm6 = vcmp.gt.f32.partialorder %v248_v48, 0.0  ;;  %vm278_vm7 = vcmp.gt.f32.partialorder %v246_v49, 0.0 }
  0x20   :  { %2482 = vmatpush.bf16.msra.mxu2 %v3915_v58  ;;  %v3931_v58 = vld [vmem:[%s5113_s1 + $0x100] sm:$0xff]  ;;  %v3990_v38 = vld [vmem:[%s5113_s1 + $0x2d8] sm:$0xff] }
  0x21   :  { %2495 = vmatpush.bf16.msra.mxu3 %v3923_v59  ;;  %2457 = vmatmul.bf16.vlgmr.msra.gmra.mxu0 %v369_v5  ;;  %v3939_v59 = vld [vmem:[%s5113_s1 + $0x140] sm:$0xff]  ;;  %v3994_v5 = vld [vmem:[%s5113_s1 + $0x2f8] sm:$0xff] }
  0x22   :  { %2501 = vmatpush.bf16.msrb.mxu0 %v3938_v62  ;;  %2470 = vmatmul.bf16.vlgmr.msra.gmra.mxu1 %v370_v7  ;;  %v343_v62 = vsel %vm279_vm4, %v247_v46, %v311_v54  ;;  %v3965_v46 = vld [vmem:[%s5113_s1 + $0x210] sm:$0xff]  ;;  %v3964_v54 = vld [vmem:[%s5113_s1 + $0x208] sm:$0xff] }
  0x23   :  { %2514 = vmatpush.bf16.msrb.mxu1 %v3946_v63  ;;  %2483 = vmatmul.bf16.vlgmr.msra.gmra.mxu2 %v371_v4  ;;  %v341_v63 = vsel %vm277_vm5, %v245_v47, %v309_v55  ;;  %v3986_v4 = vld [vmem:[%s5113_s1 + $0x2b8] sm:$0xff]  ;;  %v3973_v47 = vld [vmem:[%s5113_s1 + $0x250] sm:$0xff]  ;;  %v3972_v55 = vld [vmem:[%s5113_s1 + $0x248] sm:$0xff] }
  0x24   :  { %2527 = vmatpush.bf16.msrb.mxu2 %v3954_v2  ;;  %2496 = vmatmul.bf16.vlgmr.msra.gmra.mxu3 %v372_v6  ;;  %v344_v2 = vsel %vm280_vm6, %v248_v48, %v312_v56  ;;  %v375_v6 = vpack.c.bf16 %v343_v62, %v343_v62  ;;  %v373_v7 = vpack.c.bf16 %v341_v63, %v341_v63  ;;  %v3981_v48 = vld [vmem:[%s5113_s1 + $0x290] sm:$0xff]  ;;  %v3980_v56 = vld [vmem:[%s5113_s1 + $0x288] sm:$0xff]  ;;  %v3963_v62 = vld [vmem:[%s5113_s1 + $0x200] sm:$0xff] }
  0x25   :  { %2540 = vmatpush.bf16.msrb.mxu3 %v3962_v3  ;;  %v342_v3 = vsel %vm278_vm7, %v246_v49, %v310_v57  ;;  %v3989_v49 = vld [vmem:[%s5113_s1 + $0x2d0] sm:$0xff]  ;;  %v3988_v57 = vld [vmem:[%s5113_s1 + $0x2c8] sm:$0xff]  ;;  %v3971_v63 = vld [vmem:[%s5113_s1 + $0x240] sm:$0xff] }
  0x26   :  { %2502 = vmatpush.bf16.msrb.mxu0 %v3937_v8  ;;  %v376_v8 = vpack.c.bf16 %v344_v2, %v344_v2 }
  0x27   :  { %2515 = vmatpush.bf16.msrb.mxu1 %v3945_v9  ;;  %v374_v9 = vpack.c.bf16 %v342_v3, %v342_v3 }
  0x28   :  { %2528 = vmatpush.bf16.msrb.mxu2 %v3953_v10  ;;  %v3969_v10 = vld [vmem:[%s5113_s1 + $0x230] sm:$0xff] }
  0x29   :  { %2541 = vmatpush.bf16.msrb.mxu3 %v3961_v11  ;;  %v3977_v11 = vld [vmem:[%s5113_s1 + $0x270] sm:$0xff] }
  0x2a   :  { %2503 = vmatpush.bf16.msrb.mxu0 %v3936_v12  ;;  %v3985_v12 = vld [vmem:[%s5113_s1 + $0x2b0] sm:$0xff] }
  0x2b   :  { %2516 = vmatpush.bf16.msrb.mxu1 %v3944_v13  ;;  %v3993_v13 = vld [vmem:[%s5113_s1 + $0x2f0] sm:$0xff] }
  0x2c   :  { %2529 = vmatpush.bf16.msrb.mxu2 %v3952_v14  ;;  %v3968_v14 = vld [vmem:[%s5113_s1 + $0x228] sm:$0xff] }
  0x2d   :  { %2542 = vmatpush.bf16.msrb.mxu3 %v3960_v15  ;;  %v3976_v15 = vld [vmem:[%s5113_s1 + $0x268] sm:$0xff] }
  0x2e   :  { %2504 = vmatpush.bf16.msrb.mxu0 %v3935_v18  ;;  %v21_v18 = vld [vmem:[%s5114_s0 + $0x20] sm:$0xff] }
  0x2f   :  { %2517 = vmatpush.bf16.msrb.mxu1 %v3943_v19  ;;  %v4456_v19 = vld [vmem:[%s5115_s2 + $0x8] sm:$0xff]  ;;  %v41_v27 = vunpack.c.l.bf16 %v21_v18 }
  0x30   :  { %2530 = vmatpush.bf16.msrb.mxu2 %v3951_v20  ;;  %v22_v20 = vld [vmem:[%s5114_s0 + $0x28] sm:$0xff]  ;;  %v81_v28 = vperm.slane %v4456_v19, 0  ;;  %v83_v30 = vperm.slane %v4456_v19, 2 }
  0x31   :  { %2543 = vmatpush.bf16.msrb.mxu3 %v3959_v21  ;;  %v3967_v21 = vld [vmem:[%s5113_s1 + $0x220] sm:$0xff]  ;;  %v43_v29 = vunpack.c.l.bf16 %v22_v20 }
  0x32   :  { %2505 = vmatpush.bf16.msrb.mxu0 %v3934_v32  ;;  %v42_v32 = vunpack.c.h.bf16 %v21_v18  ;;  %v145_v39 = vmul.f32 %v81_v28, %v41_v27  ;;  %v4000_v18 = vld [vmem:[%s5113_s1 + $0x328] sm:$0xff]  ;;  %v3999_v27 = vld [vmem:[%s5113_s1 + $0x320] sm:$0xff] }
  0x33   :  { %2518 = vmatpush.bf16.msrb.mxu1 %v3942_v33  ;;  %v82_v33 = vperm.slane %v4456_v19, 1  ;;  %v147_v41 = vmul.f32 %v83_v30, %v43_v29  ;;  %v4007_v28 = vld [vmem:[%s5113_s1 + $0x360] sm:$0xff] }
  0x34   :  { %2531 = vmatpush.bf16.msrb.mxu2 %v3950_v34  ;;  %v44_v34 = vunpack.c.h.bf16 %v22_v20  ;;  %v4008_v20 = vld [vmem:[%s5113_s1 + $0x368] sm:$0xff]  ;;  %v4015_v29 = vld [vmem:[%s5113_s1 + $0x3a0] sm:$0xff] }
  0x35   :  { %2544 = vmatpush.bf16.msrb.mxu3 %v3958_v22  ;;  %v84_v22 = vperm.slane %v4456_v19, 3  ;;  %v4023_v30 = vld [vmem:[%s5113_s1 + $0x3e0] sm:$0xff] }
  0x36   :  { %2506 = vmatpush.bf16.msrb.mxu0 %v3933_v43  ;;  %v146_v43 = vmul.f32 %v82_v33, %v42_v32  ;;  %v85_v33 = vperm.slane %v4456_v19, 4 }
  0x37   :  { %2519 = vmatpush.bf16.msrb.mxu1 %v3941_v44  ;;  %v186_v44 = vperm.slane %v4478_v31, 1 }
  0x38   :  { %2532 = vmatpush.bf16.msrb.mxu2 %v3949_v45  ;;  %v148_v45 = vmul.f32 %v84_v22, %v44_v34  ;;  %v87_v22 = vperm.slane %v4456_v19, 6 }
  0x39   :  { %2545 = vmatpush.bf16.msrb.mxu3 %v3957_v26  ;;  %v188_v26 = vperm.slane %v4478_v31, 3 }
  0x3a   :  { %2507 = vmatpush.bf16.msrb.mxu0 %v3932_v50  ;;  %v249_v50 = vadd.f32 %v185_v40, %v145_v39  ;;  %v3998_v39 = vld [vmem:[%s5113_s1 + $0x318] sm:$0xff] }
  0x3b   :  { %2520 = vmatpush.bf16.msrb.mxu1 %v3940_v51  ;;  %v251_v51 = vadd.f32 %v187_v42, %v147_v41  ;;  %v4006_v40 = vld [vmem:[%s5113_s1 + $0x358] sm:$0xff] }
  0x3c   :  { %2533 = vmatpush.bf16.msrb.mxu2 %v3948_v52  ;;  %v250_v52 = vadd.f32 %v186_v44, %v146_v43  ;;  %vm281_vm8 = vcmp.gt.f32.partialorder %v249_v50, 0.0  ;;  %v4014_v41 = vld [vmem:[%s5113_s1 + $0x398] sm:$0xff]  ;;  %v189_v43 = vperm.slane %v4478_v31, 4 }
  0x3d   :  { %2546 = vmatpush.bf16.msrb.mxu3 %v3956_v53  ;;  %v252_v53 = vadd.f32 %v188_v26, %v148_v45  ;;  %vm283_vm9 = vcmp.gt.f32.partialorder %v251_v51, 0.0  ;;  %v191_v45 = vperm.slane %v4478_v31, 6 }
  0x3e   :  { %2508 = vmatpush.bf16.msrb.mxu0 %v3931_v58  ;;  %v313_v58 = vmul.f32 0.2, %v249_v50  ;;  %vm282_vm10 = vcmp.gt.f32.partialorder %v250_v52, 0.0 }
  0x3f   :  { %2521 = vmatpush.bf16.msrb.mxu1 %v3939_v59  ;;  %v315_v59 = vmul.f32 0.2, %v251_v51  ;;  %vm284_vm11 = vcmp.gt.f32.partialorder %v252_v53, 0.0 }
  0x40   :  { %2534 = vmatpush.bf16.msrb.mxu2 %v3947_v60  ;;  %v314_v60 = vmul.f32 0.2, %v250_v52  ;;  %v345_v2 = vsel %vm281_vm8, %v249_v50, %v313_v58  ;;  %v4005_v50 = vld [vmem:[%s5113_s1 + $0x350] sm:$0xff]  ;;  %v4012_v58 = vld [vmem:[%s5113_s1 + $0x388] sm:$0xff] }
  0x41   :  { %2547 = vmatpush.bf16.msrb.mxu3 %v3955_v61  ;;  %2509 = vmatmul.bf16.vlgmr.msrb.gmra.mxu0 %v373_v7  ;;  %v316_v61 = vmul.f32 0.2, %v252_v53  ;;  %v347_v3 = vsel %vm283_vm9, %v251_v51, %v315_v59  ;;  %v4013_v51 = vld [vmem:[%s5113_s1 + $0x390] sm:$0xff]  ;;  %v4020_v59 = vld [vmem:[%s5113_s1 + $0x3c8] sm:$0xff] }
  0x42   :  { %2553 = vmatpush.bf16.msra.mxu0 %v3970_v0  ;;  %2522 = vmatmul.bf16.vlgmr.msrb.gmra.mxu1 %v374_v9  ;;  %v3979_v0 = vld [vmem:[%s5113_s1 + $0x280] sm:$0xff]  ;;  %v4026_v9 = vld [vmem:[%s5113_s1 + $0x3f8] sm:$0xff] }
  0x43   :  { %2566 = vmatpush.bf16.msra.mxu1 %v3978_v1  ;;  %2535 = vmatmul.bf16.vlgmr.msrb.gmra.mxu2 %v375_v6  ;;  %v3987_v1 = vld [vmem:[%s5113_s1 + $0x2c0] sm:$0xff]  ;;  %v346_v6 = vsel %vm282_vm10, %v250_v52, %v314_v60  ;;  %v348_v7 = vsel %vm284_vm11, %v252_v53, %v316_v61 }
  0x44   :  { %2579 = vmatpush.bf16.msra.mxu2 %v3986_v4  ;;  %2548 = vmatmul.bf16.vlgmr.msrb.gmra.mxu3 %v376_v8  ;;  %v4002_v4 = vld [vmem:[%s5113_s1 + $0x338] sm:$0xff] }
  0x45   :  { %2592 = vmatpush.bf16.msra.mxu3 %v3994_v5  ;;  %v4010_v5 = vld [vmem:[%s5113_s1 + $0x378] sm:$0xff] }
  0x46   :  { %2554 = vmatpush.bf16.msra.mxu0 %v3969_v10  ;;  %v4018_v8 = vld [vmem:[%s5113_s1 + $0x3b8] sm:$0xff]  ;;  %v377_v10 = vpack.c.bf16 %v345_v2, %v345_v2  ;;  %v4011_v2 = vld [vmem:[%s5113_s1 + $0x380] sm:$0xff] }
  0x47   :  { %2567 = vmatpush.bf16.msra.mxu1 %v3977_v11  ;;  %v379_v11 = vpack.c.bf16 %v347_v3, %v347_v3  ;;  %v4019_v3 = vld [vmem:[%s5113_s1 + $0x3c0] sm:$0xff] }
  0x48   :  { %2580 = vmatpush.bf16.msra.mxu2 %v3985_v12  ;;  %v378_v12 = vpack.c.bf16 %v346_v6, %v346_v6  ;;  %v4034_v6 = vld [vmem:[%s5113_s1 + $0x438] sm:$0xff] }
  0x49   :  { %2593 = vmatpush.bf16.msra.mxu3 %v3993_v13  ;;  %v380_v13 = vpack.c.bf16 %v348_v7, %v348_v7  ;;  %v4042_v7 = vld [vmem:[%s5113_s1 + $0x478] sm:$0xff] }
  0x4a   :  { %2555 = vmatpush.bf16.msra.mxu0 %v3968_v14  ;;  %v4001_v14 = vld [vmem:[%s5113_s1 + $0x330] sm:$0xff] }
  0x4b   :  { %2568 = vmatpush.bf16.msra.mxu1 %v3976_v15  ;;  %v4009_v15 = vld [vmem:[%s5113_s1 + $0x370] sm:$0xff] }
  0x4c   :  { %2581 = vmatpush.bf16.msra.mxu2 %v3984_v16  ;;  %v4017_v16 = vld [vmem:[%s5113_s1 + $0x3b0] sm:$0xff] }
  0x4d   :  { %2594 = vmatpush.bf16.msra.mxu3 %v3992_v17  ;;  %v4025_v17 = vld [vmem:[%s5113_s1 + $0x3f0] sm:$0xff] }
  0x4e   :  { %2556 = vmatpush.bf16.msra.mxu0 %v3967_v21  ;;  %v4016_v21 = vld [vmem:[%s5113_s1 + $0x3a8] sm:$0xff] }
  0x4f   :  { %2569 = vmatpush.bf16.msra.mxu1 %v3975_v23  ;;  %v4024_v23 = vld [vmem:[%s5113_s1 + $0x3e8] sm:$0xff] }
  0x50   :  { %2582 = vmatpush.bf16.msra.mxu2 %v3983_v24  ;;  %v23_v24 = vld [vmem:[%s5114_s0 + $0x30] sm:$0xff] }
  0x51   :  { %2595 = vmatpush.bf16.msra.mxu3 %v3991_v25  ;;  %v24_v25 = vld [vmem:[%s5114_s0 + $0x38] sm:$0xff]  ;;  %v45_v32 = vunpack.c.l.bf16 %v23_v24 }
  0x52   :  { %2557 = vmatpush.bf16.msra.mxu0 %v3966_v35  ;;  %v47_v34 = vunpack.c.l.bf16 %v24_v25  ;;  %v46_v35 = vunpack.c.h.bf16 %v23_v24  ;;  %v4048_v24 = vld [vmem:[%s5113_s1 + $0x4a8] sm:$0xff] }
  0x53   :  { %2570 = vmatpush.bf16.msra.mxu1 %v3974_v36  ;;  %v86_v36 = vperm.slane %v4456_v19, 5  ;;  %v149_v42 = vmul.f32 %v85_v33, %v45_v32  ;;  %v4039_v32 = vld [vmem:[%s5113_s1 + $0x460] sm:$0xff] }
  0x54   :  { %2583 = vmatpush.bf16.msra.mxu2 %v3982_v37  ;;  %v48_v37 = vunpack.c.h.bf16 %v24_v25  ;;  %v151_v44 = vmul.f32 %v87_v22, %v47_v34  ;;  %v4056_v25 = vld [vmem:[%s5113_s1 + $0x4e8] sm:$0xff]  ;;  %v4047_v33 = vld [vmem:[%s5113_s1 + $0x4a0] sm:$0xff] }
  0x55   :  { %2596 = vmatpush.bf16.msra.mxu3 %v3990_v38  ;;  %v88_v38 = vperm.slane %v4456_v19, 7  ;;  %v4022_v19 = vld [vmem:[%s5113_s1 + $0x3d8] sm:$0xff]  ;;  %v150_v26 = vmul.f32 %v86_v36, %v46_v35  ;;  %v253_v52 = vadd.f32 %v189_v43, %v149_v42  ;;  %v4055_v34 = vld [vmem:[%s5113_s1 + $0x4e0] sm:$0xff] }
  0x56   :  { %2558 = vmatpush.bf16.msra.mxu0 %v3965_v46  ;;  %v190_v46 = vperm.slane %v4478_v31, 5  ;;  %v255_v53 = vadd.f32 %v191_v45, %v151_v44  ;;  %v4030_v42 = vld [vmem:[%s5113_s1 + $0x418] sm:$0xff] }
  0x57   :  { %2571 = vmatpush.bf16.msra.mxu1 %v3973_v47  ;;  %v152_v47 = vmul.f32 %v88_v38, %v48_v37  ;;  %v317_v60 = vmul.f32 0.2, %v253_v52  ;;  %vm285_vm12 = vcmp.gt.f32.partialorder %v253_v52, 0.0  ;;  %v4708_v38 = vld [vmem:[%s5116_s3 + $0x10] sm:$0xff]  ;;  %v4038_v43 = vld [vmem:[%s5113_s1 + $0x458] sm:$0xff] }
  0x58   :  { %2584 = vmatpush.bf16.msra.mxu2 %v3981_v48  ;;  %v192_v48 = vperm.slane %v4478_v31, 7  ;;  %v4021_v31 = vld [vmem:[%s5113_s1 + $0x3d0] sm:$0xff]  ;;  %v319_v61 = vmul.f32 0.2, %v255_v53  ;;  %vm287_vm13 = vcmp.gt.f32.partialorder %v255_v53, 0.0  ;;  %v4046_v44 = vld [vmem:[%s5113_s1 + $0x498] sm:$0xff] }
  0x59   :  { %2597 = vmatpush.bf16.msra.mxu3 %v3989_v49  ;;  %v3997_v49 = vld [vmem:[%s5113_s1 + $0x310] sm:$0xff]  ;;  %v4054_v45 = vld [vmem:[%s5113_s1 + $0x4d8] sm:$0xff] }
  0x5a   :  { %2559 = vmatpush.bf16.msra.mxu0 %v3964_v54  ;;  %v254_v54 = vadd.f32 %v190_v46, %v150_v26  ;;  %v193_v46 = vperm.slane %v4708_v38, 0 }
  0x5b   :  { %2572 = vmatpush.bf16.msra.mxu1 %v3972_v55  ;;  %v256_v55 = vadd.f32 %v192_v48, %v152_v47  ;;  %v195_v48 = vperm.slane %v4708_v38, 2 }
  0x5c   :  { %2585 = vmatpush.bf16.msra.mxu2 %v3980_v56  ;;  %v3996_v56 = vld [vmem:[%s5113_s1 + $0x308] sm:$0xff]  ;;  %vm286_vm14 = vcmp.gt.f32.partialorder %v254_v54, 0.0 }
  0x5d   :  { %2598 = vmatpush.bf16.msra.mxu3 %v3988_v57  ;;  %v4004_v57 = vld [vmem:[%s5113_s1 + $0x348] sm:$0xff]  ;;  %vm288_vm15 = vcmp.gt.f32.partialorder %v256_v55, 0.0 }
  0x5e   :  { %2560 = vmatpush.bf16.msra.mxu0 %v3963_v62  ;;  %v318_v62 = vmul.f32 0.2, %v254_v54 }
  0x5f   :  { %2573 = vmatpush.bf16.msra.mxu1 %v3971_v63  ;;  %v320_v63 = vmul.f32 0.2, %v256_v55 }
  0x60   :  { %2586 = vmatpush.bf16.msra.mxu2 %v3979_v0  ;;  %v3995_v0 = vld [vmem:[%s5113_s1 + $0x300] sm:$0xff] }
  0x61   :  { %2599 = vmatpush.bf16.msra.mxu3 %v3987_v1  ;;  %2561 = vmatmul.bf16.vlgmr.msra.gmra.mxu0 %v377_v10  ;;  %v4003_v1 = vld [vmem:[%s5113_s1 + $0x340] sm:$0xff]  ;;  %v4050_v10 = vld [vmem:[%s5113_s1 + $0x4b8] sm:$0xff] }
  0x62   :  { %2605 = vmatpush.bf16.msrb.mxu0 %v4002_v4  ;;  %2574 = vmatmul.bf16.vlgmr.msra.gmra.mxu1 %v378_v12  ;;  %v349_v4 = vsel %vm285_vm12, %v253_v52, %v317_v60  ;;  %v4029_v52 = vld [vmem:[%s5113_s1 + $0x410] sm:$0xff]  ;;  %v4028_v60 = vld [vmem:[%s5113_s1 + $0x408] sm:$0xff] }
  0x63   :  { %2618 = vmatpush.bf16.msrb.mxu1 %v4010_v5  ;;  %2587 = vmatmul.bf16.vlgmr.msra.gmra.mxu2 %v379_v11  ;;  %v351_v5 = vsel %vm287_vm13, %v255_v53, %v319_v61  ;;  %v4058_v11 = vld [vmem:[%s5113_s1 + $0x4f8] sm:$0xff]  ;;  %v381_v12 = vpack.c.bf16 %v349_v4, %v349_v4  ;;  %v4037_v53 = vld [vmem:[%s5113_s1 + $0x450] sm:$0xff]  ;;  %v4036_v61 = vld [vmem:[%s5113_s1 + $0x448] sm:$0xff] }
  0x64   :  { %2631 = vmatpush.bf16.msrb.mxu2 %v4018_v8  ;;  %2600 = vmatmul.bf16.vlgmr.msra.gmra.mxu3 %v380_v13  ;;  %v350_v8 = vsel %vm286_vm14, %v254_v54, %v318_v62  ;;  %v383_v13 = vpack.c.bf16 %v351_v5, %v351_v5  ;;  %v4045_v54 = vld [vmem:[%s5113_s1 + $0x490] sm:$0xff]  ;;  %v4044_v62 = vld [vmem:[%s5113_s1 + $0x488] sm:$0xff]  ;;  %v4027_v4 = vld [vmem:[%s5113_s1 + $0x400] sm:$0xff] }
  0x65   :  { %2644 = vmatpush.bf16.msrb.mxu3 %v4026_v9  ;;  %v352_v9 = vsel %vm288_vm15, %v256_v55, %v320_v63  ;;  %v4053_v55 = vld [vmem:[%s5113_s1 + $0x4d0] sm:$0xff]  ;;  %v4052_v63 = vld [vmem:[%s5113_s1 + $0x4c8] sm:$0xff]  ;;  %v4035_v5 = vld [vmem:[%s5113_s1 + $0x440] sm:$0xff] }
  0x66   :  { %2606 = vmatpush.bf16.msrb.mxu0 %v4001_v14  ;;  %v382_v14 = vpack.c.bf16 %v350_v8, %v350_v8 }
  0x67   :  { %2619 = vmatpush.bf16.msrb.mxu1 %v4009_v15  ;;  %v384_v15 = vpack.c.bf16 %v352_v9, %v352_v9 }
  0x68   :  { %2632 = vmatpush.bf16.msrb.mxu2 %v4017_v16  ;;  %v4033_v16 = vld [vmem:[%s5113_s1 + $0x430] sm:$0xff] }
  0x69   :  { %2645 = vmatpush.bf16.msrb.mxu3 %v4025_v17  ;;  %v4041_v17 = vld [vmem:[%s5113_s1 + $0x470] sm:$0xff] }
  0x6a   :  { %2607 = vmatpush.bf16.msrb.mxu0 %v4000_v18  ;;  %v4049_v18 = vld [vmem:[%s5113_s1 + $0x4b0] sm:$0xff] }
  0x6b   :  { %2620 = vmatpush.bf16.msrb.mxu1 %v4008_v20  ;;  %v4057_v20 = vld [vmem:[%s5113_s1 + $0x4f0] sm:$0xff] }
  0x6c   :  { %2633 = vmatpush.bf16.msrb.mxu2 %v4016_v21  ;;  %v4032_v21 = vld [vmem:[%s5113_s1 + $0x428] sm:$0xff] }
  0x6d   :  { %2646 = vmatpush.bf16.msrb.mxu3 %v4024_v23  ;;  %v4040_v23 = vld [vmem:[%s5113_s1 + $0x468] sm:$0xff] }
  0x6e   :  { %2608 = vmatpush.bf16.msrb.mxu0 %v3999_v27  ;;  %v25_v27 = vld [vmem:[%s5114_s0 + $0x40] sm:$0xff] }
  0x6f   :  { %2621 = vmatpush.bf16.msrb.mxu1 %v4007_v28  ;;  %v4686_v28 = vld [vmem:[%s5115_s2 + $0x10] sm:$0xff]  ;;  %v49_v22 = vunpack.c.l.bf16 %v25_v27 }
  0x70   :  { %2634 = vmatpush.bf16.msrb.mxu2 %v4015_v29  ;;  %v26_v29 = vld [vmem:[%s5114_s0 + $0x48] sm:$0xff]  ;;  %v89_v35 = vperm.slane %v4686_v28, 0  ;;  %v91_v37 = vperm.slane %v4686_v28, 2 }
  0x71   :  { %2647 = vmatpush.bf16.msrb.mxu3 %v4023_v30  ;;  %v4031_v30 = vld [vmem:[%s5113_s1 + $0x420] sm:$0xff]  ;;  %v51_v36 = vunpack.c.l.bf16 %v26_v29 }
  0x72   :  { %2609 = vmatpush.bf16.msrb.mxu0 %v3998_v39  ;;  %v50_v39 = vunpack.c.h.bf16 %v25_v27  ;;  %v153_v26 = vmul.f32 %v89_v35, %v49_v22  ;;  %v4064_v27 = vld [vmem:[%s5113_s1 + $0x528] sm:$0xff]  ;;  %v4063_v35 = vld [vmem:[%s5113_s1 + $0x520] sm:$0xff] }
  0x73   :  { %2622 = vmatpush.bf16.msrb.mxu1 %v4006_v40  ;;  %v90_v40 = vperm.slane %v4686_v28, 1  ;;  %v155_v47 = vmul.f32 %v91_v37, %v51_v36  ;;  %v4071_v36 = vld [vmem:[%s5113_s1 + $0x560] sm:$0xff] }
  0x74   :  { %2635 = vmatpush.bf16.msrb.mxu2 %v4014_v41  ;;  %v52_v41 = vunpack.c.h.bf16 %v26_v29  ;;  %v4072_v29 = vld [vmem:[%s5113_s1 + $0x568] sm:$0xff] }
  0x75   :  { %2648 = vmatpush.bf16.msrb.mxu3 %v4022_v19  ;;  %v92_v19 = vperm.slane %v4686_v28, 3 }
  0x76   :  { %2610 = vmatpush.bf16.msrb.mxu0 %v3997_v49  ;;  %v154_v49 = vmul.f32 %v90_v40, %v50_v39  ;;  %v93_v39 = vperm.slane %v4686_v28, 4 }
  0x77   :  { %2623 = vmatpush.bf16.msrb.mxu1 %v4005_v50  ;;  %v194_v50 = vperm.slane %v4708_v38, 1 }
  0x78   :  { %2636 = vmatpush.bf16.msrb.mxu2 %v4013_v51  ;;  %v156_v51 = vmul.f32 %v92_v19, %v52_v41  ;;  %v4079_v41 = vld [vmem:[%s5113_s1 + $0x5a0] sm:$0xff] }
  0x79   :  { %2649 = vmatpush.bf16.msrb.mxu3 %v4021_v31  ;;  %v196_v31 = vperm.slane %v4708_v38, 3  ;;  %v4087_v19 = vld [vmem:[%s5113_s1 + $0x5e0] sm:$0xff] }
  0x7a   :  { %2611 = vmatpush.bf16.msrb.mxu0 %v3996_v56  ;;  %v257_v56 = vadd.f32 %v193_v46, %v153_v26  ;;  %v94_v26 = vperm.slane %v4686_v28, 5 }
  0x7b   :  { %2624 = vmatpush.bf16.msrb.mxu1 %v4004_v57  ;;  %v259_v57 = vadd.f32 %v195_v48, %v155_v47  ;;  %v96_v47 = vperm.slane %v4686_v28, 7  ;;  %v4062_v48 = vld [vmem:[%s5113_s1 + $0x518] sm:$0xff] }
  0x7c   :  { %2637 = vmatpush.bf16.msrb.mxu2 %v4012_v58  ;;  %v258_v58 = vadd.f32 %v194_v50, %v154_v49  ;;  %vm289_vm0 = vcmp.gt.f32.partialorder %v257_v56, 0.0  ;;  %v4070_v49 = vld [vmem:[%s5113_s1 + $0x558] sm:$0xff] }
  0x7d   :  { %2650 = vmatpush.bf16.msrb.mxu3 %v4020_v59  ;;  %v260_v59 = vadd.f32 %v196_v31, %v156_v51  ;;  %vm291_vm1 = vcmp.gt.f32.partialorder %v259_v57, 0.0  ;;  %v4078_v51 = vld [vmem:[%s5113_s1 + $0x598] sm:$0xff]  ;;  %v197_v31 = vperm.slane %v4708_v38, 4 }
  0x7e   :  { %2612 = vmatpush.bf16.msrb.mxu0 %v3995_v0  ;;  %v321_v0 = vmul.f32 0.2, %v257_v56  ;;  %vm290_vm2 = vcmp.gt.f32.partialorder %v258_v58, 0.0 }
  0x7f   :  { %2625 = vmatpush.bf16.msrb.mxu1 %v4003_v1  ;;  %v323_v1 = vmul.f32 0.2, %v259_v57  ;;  %vm292_vm3 = vcmp.gt.f32.partialorder %v260_v59, 0.0 }
  0x80   :  { %2638 = vmatpush.bf16.msrb.mxu2 %v4011_v2  ;;  %v322_v2 = vmul.f32 0.2, %v258_v58  ;;  %v353_v8 = vsel %vm289_vm0, %v257_v56, %v321_v0  ;;  %vm2869_vm0 = vcmask 31744  }
  0x81   :  { %2651 = vmatpush.bf16.msrb.mxu3 %v4019_v3  ;;  %2613 = vmatmul.bf16.vlgmr.msrb.gmra.mxu0 %v381_v12  ;;  %v324_v3 = vmul.f32 0.2, %v260_v59  ;;  %v355_v9 = vsel %vm291_vm1, %v259_v57, %v323_v1 }
  0x82   :  { %2657 = vmatpush.bf16.msra.mxu0 %v4034_v6  ;;  %2626 = vmatmul.bf16.vlgmr.msrb.gmra.mxu1 %v382_v14  ;;  %v4043_v6 = vld [vmem:[%s5113_s1 + $0x480] sm:$0xff]  ;;  %v354_v12 = vsel %vm290_vm2, %v258_v58, %v322_v2  ;;  %v4082_v14 = vld [vmem:[%s5113_s1 + $0x5b8] sm:$0xff]  ;;  %v200_v58 = vperm.slane %v4708_v38, 7  ;;  %v4085_v2 = vld [vmem:[%s5113_s1 + $0x5d0] sm:$0xff] }
  0x83   :  { %2670 = vmatpush.bf16.msra.mxu1 %v4042_v7  ;;  %2639 = vmatmul.bf16.vlgmr.msrb.gmra.mxu2 %v383_v13  ;;  %v4051_v7 = vld [vmem:[%s5113_s1 + $0x4c0] sm:$0xff]  ;;  %v356_v13 = vsel %vm292_vm3, %v260_v59, %v324_v3 }
  0x84   :  { %2683 = vmatpush.bf16.msra.mxu2 %v4050_v10  ;;  %2652 = vmatmul.bf16.vlgmr.msrb.gmra.mxu3 %v384_v15  ;;  %v4066_v10 = vld [vmem:[%s5113_s1 + $0x538] sm:$0xff] }
  0x85   :  { %2696 = vmatpush.bf16.msra.mxu3 %v4058_v11  ;;  %v4074_v11 = vld [vmem:[%s5113_s1 + $0x578] sm:$0xff] }
  0x86   :  { %2658 = vmatpush.bf16.msra.mxu0 %v4033_v16  ;;  %v4090_v15 = vld [vmem:[%s5113_s1 + $0x5f8] sm:$0xff]  ;;  %v385_v16 = vpack.c.bf16 %v353_v8, %v353_v8  ;;  %v4068_v8 = vld [vmem:[%s5113_s1 + $0x548] sm:$0xff] }
  0x87   :  { %2671 = vmatpush.bf16.msra.mxu1 %v4041_v17  ;;  %v387_v17 = vpack.c.bf16 %v355_v9, %v355_v9  ;;  %v4076_v9 = vld [vmem:[%s5113_s1 + $0x588] sm:$0xff] }
  0x88   :  { %2684 = vmatpush.bf16.msra.mxu2 %v4049_v18  ;;  %v386_v18 = vpack.c.bf16 %v354_v12, %v354_v12 }
  0x89   :  { %2697 = vmatpush.bf16.msra.mxu3 %v4057_v20  ;;  %v388_v20 = vpack.c.bf16 %v356_v13, %v356_v13 }
  0x8a   :  { %2659 = vmatpush.bf16.msra.mxu0 %v4032_v21  ;;  %v4065_v21 = vld [vmem:[%s5113_s1 + $0x530] sm:$0xff] }
  0x8b   :  { %2672 = vmatpush.bf16.msra.mxu1 %v4040_v23  ;;  %v4073_v23 = vld [vmem:[%s5113_s1 + $0x570] sm:$0xff] }
  0x8c   :  { %2685 = vmatpush.bf16.msra.mxu2 %v4048_v24  ;;  %v4081_v24 = vld [vmem:[%s5113_s1 + $0x5b0] sm:$0xff] }
  0x8d   :  { %2698 = vmatpush.bf16.msra.mxu3 %v4056_v25  ;;  %v4089_v25 = vld [vmem:[%s5113_s1 + $0x5f0] sm:$0xff] }
  0x8e   :  { %2660 = vmatpush.bf16.msra.mxu0 %v4031_v30  ;;  %v4080_v30 = vld [vmem:[%s5113_s1 + $0x5a8] sm:$0xff] }
  0x8f   :  { %2673 = vmatpush.bf16.msra.mxu1 %v4039_v32  ;;  %v4088_v32 = vld [vmem:[%s5113_s1 + $0x5e8] sm:$0xff] }
  0x90   :  { %2686 = vmatpush.bf16.msra.mxu2 %v4047_v33  ;;  %v27_v33 = vld [vmem:[%s5114_s0 + $0x50] sm:$0xff] }
  0x91   :  { %2699 = vmatpush.bf16.msra.mxu3 %v4055_v34  ;;  %v28_v34 = vld [vmem:[%s5114_s0 + $0x58] sm:$0xff]  ;;  %v53_v37 = vunpack.c.l.bf16 %v27_v33 }
  0x92   :  { %2661 = vmatpush.bf16.msra.mxu0 %v4030_v42  ;;  %v55_v42 = vunpack.c.l.bf16 %v28_v34  ;;  %v56_v46 = vunpack.c.h.bf16 %v28_v34 }
  0x93   :  { %2674 = vmatpush.bf16.msra.mxu1 %v4038_v43  ;;  %v95_v43 = vperm.slane %v4686_v28, 6  ;;  %v157_v50 = vmul.f32 %v93_v39, %v53_v37  ;;  %v4086_v28 = vld [vmem:[%s5113_s1 + $0x5d8] sm:$0xff]  ;;  %v4097_v37 = vld [vmem:[%s5113_s1 + $0x630] sm:$0xff] }
  0x94   :  { %2687 = vmatpush.bf16.msra.mxu2 %v4046_v44  ;;  %v160_v57 = vmul.f32 %v96_v47, %v56_v46  ;;  %v4105_v39 = vld [vmem:[%s5113_s1 + $0x670] sm:$0xff]  ;;  %v30_v46 = vld [vmem:[%s5114_s0 + $0x68] sm:$0xff] }
  0x95   :  { %2700 = vmatpush.bf16.msra.mxu3 %v4054_v45  ;;  %v54_v45 = vunpack.c.h.bf16 %v27_v33  ;;  %v261_v3 = vadd.f32 %v197_v31, %v157_v50  ;;  %v4122_v33 = vld [vmem:[%s5113_s1 + $0x6f8] sm:$0xff] }
  0x96   :  { %2662 = vmatpush.bf16.msra.mxu0 %v4029_v52  ;;  %v159_v52 = vmul.f32 %v95_v43, %v55_v42  ;;  %v4104_v42 = vld [vmem:[%s5113_s1 + $0x668] sm:$0xff] }
  0x97   :  { %2675 = vmatpush.bf16.msra.mxu1 %v4037_v53  ;;  %v199_v53 = vperm.slane %v4708_v38, 6  ;;  %v158_v56 = vmul.f32 %v94_v26, %v54_v45  ;;  %vm293_vm4 = vcmp.gt.f32.partialorder %v261_v3, 0.0  ;;  %v4112_v43 = vld [vmem:[%s5113_s1 + $0x6a8] sm:$0xff]  ;;  %v29_v45 = vld [vmem:[%s5114_s0 + $0x60] sm:$0xff]  ;;  %v4918_v26 = vld [vmem:[%s5115_s2 + $0x18] sm:$0xff] }
  0x98   :  { %2688 = vmatpush.bf16.msra.mxu2 %v4045_v54  ;;  %v198_v54 = vperm.slane %v4708_v38, 5  ;;  %v4077_v38 = vld [vmem:[%s5113_s1 + $0x590] sm:$0xff]  ;;  %v97_v31 = vperm.slane %v4918_v26, 0 }
  0x99   :  { %2701 = vmatpush.bf16.msra.mxu3 %v4053_v55 }
  0x9a   :  { %2663 = vmatpush.bf16.msra.mxu0 %v4028_v60 }
  0x9b   :  { %2676 = vmatpush.bf16.msra.mxu1 %v4036_v61 }
  0x9c   :  { %2689 = vmatpush.bf16.msra.mxu2 %v4044_v62  ;;  %v4061_v62 = vld [vmem:[%s5113_s1 + $0x510] sm:$0xff] }
  0x9d   :  { %2702 = vmatpush.bf16.msra.mxu3 %v4052_v63  ;;  %v4069_v63 = vld [vmem:[%s5113_s1 + $0x550] sm:$0xff] }
  0x9e   :  { %2664 = vmatpush.bf16.msra.mxu0 %v4027_v4  ;;  %v2458_v22 = vpop.f32.mrf.mxu0  ;;  %v263_v4 = vadd.f32 %v199_v53, %v159_v52  ;;  %v4111_v52 = vld [vmem:[%s5113_s1 + $0x6a0] sm:$0xff] }
  0x9f   :  { %2677 = vmatpush.bf16.msra.mxu1 %v4035_v5  ;;  %v2471_v40 = vpop.f32.mrf.mxu1  ;;  %v262_v5 = vadd.f32 %v198_v54, %v158_v56  ;;  %v4119_v53 = vld [vmem:[%s5113_s1 + $0x6e0] sm:$0xff]  ;;  %v59_v54 = vunpack.c.l.bf16 %v30_v46  ;;  %v58_v56 = vunpack.c.h.bf16 %v29_v45 }
  0xa0   :  { %2690 = vmatpush.bf16.msra.mxu2 %v4043_v6  ;;  %v2472_v44 = vadd.f32 %v2471_v40, %v2458_v22  ;;  %v264_v6 = vadd.f32 %v200_v58, %v160_v57  ;;  %v327_v12 = vmul.f32 0.2, %v263_v4  ;;  %vm295_vm5 = vcmp.gt.f32.partialorder %v263_v4, 0.0  ;;  %v4113_v40 = vld [vmem:[%s5113_s1 + $0x6b0] sm:$0xff] }
  0xa1   :  { %2703 = vmatpush.bf16.msra.mxu3 %v4051_v7  ;;  %2665 = vmatmul.bf16.vlgmr.msra.gmra.mxu0 %v385_v16  ;;  %v4060_v7 = vld [vmem:[%s5113_s1 + $0x508] sm:$0xff]  ;;  %vm294_vm6 = vcmp.gt.f32.partialorder %v262_v5, 0.0  ;;  %v98_v57 = vperm.slane %v4918_v26, 1 }
  0xa2   :  { %2709 = vmatpush.bf16.msrb.mxu0 %v4066_v10  ;;  %2678 = vmatmul.bf16.vlgmr.msra.gmra.mxu1 %v386_v18  ;;  %v4084_v10 = vld [vmem:[%s5113_s1 + $0x5c8] sm:$0xff]  ;;  %vm296_vm7 = vcmp.gt.f32.partialorder %v264_v6, 0.0  ;;  %v4067_v18 = vld [vmem:[%s5113_s1 + $0x540] sm:$0xff] }
  0xa3   :  { %2722 = vmatpush.bf16.msrb.mxu1 %v4074_v11  ;;  %2691 = vmatmul.bf16.vlgmr.msra.gmra.mxu2 %v387_v17  ;;  %v325_v11 = vmul.f32 0.2, %v261_v3  ;;  %v4059_v17 = vld [vmem:[%s5113_s1 + $0x500] sm:$0xff] }
  0xa4   :  { %2735 = vmatpush.bf16.msrb.mxu2 %v4082_v14  ;;  %2704 = vmatmul.bf16.vlgmr.msra.gmra.mxu3 %v388_v20  ;;  %v326_v14 = vmul.f32 0.2, %v262_v5  ;;  %v4075_v20 = vld [vmem:[%s5113_s1 + $0x580] sm:$0xff] }
  0xa5   :  { %2748 = vmatpush.bf16.msrb.mxu3 %v4090_v15  ;;  %v328_v15 = vmul.f32 0.2, %v264_v6 }
  0xa6   :  { %2710 = vmatpush.bf16.msrb.mxu0 %v4065_v21  ;;  %v2484_v55 = vpop.f32.mrf.mxu2  ;;  %v2460_v61 = vpop.f32.mrf.mxu0  ;;  %v4083_v21 = vld [vmem:[%s5113_s1 + $0x5c0] sm:$0xff] }
  0xa7   :  { %2723 = vmatpush.bf16.msrb.mxu1 %v4073_v23  ;;  %v2485_v59 = vadd.f32 %v2484_v55, %v2472_v44  ;;  %v2497_v60 = vpop.f32.mrf.mxu3  ;;  %v2473_v1 = vpop.f32.mrf.mxu1  ;;  %v357_v23 = vsel %vm293_vm4, %v261_v3, %v325_v11  ;;  %v4120_v44 = vld [vmem:[%s5113_s1 + $0x6e8] sm:$0xff]  ;;  %v99_v55 = vperm.slane %v4918_v26, 2  ;;  %v100_v61 = vperm.slane %v4918_v26, 3 }
  0xa8   :  { %2736 = vmatpush.bf16.msrb.mxu2 %v4081_v24  ;;  %v359_v24 = vsel %vm295_vm5, %v263_v4, %v327_v12  ;;  %v389_v34 = vpack.c.bf16 %v357_v23, %v357_v23  ;;  %v4110_v1 = vld [vmem:[%s5113_s1 + $0x698] sm:$0xff] }
  0xa9   :  { %2749 = vmatpush.bf16.msrb.mxu3 %v4089_v25  ;;  %v4844_v0 = vadd.f32 %v2497_v60, %v2485_v59  ;;  %v4098_v25 = vld [vmem:[%s5113_s1 + $0x638] sm:$0xff]  ;;  %v391_v22 = vpack.c.bf16 %v359_v24, %v359_v24  ;;  %v60_v60 = vunpack.c.h.bf16 %v30_v46  ;;  %v163_v4 = vmul.f32 %v99_v55, %v59_v54  ;;  %v4153_v54 = vld [vmem:[%s5113_s1 + $0x7f0] sm:$0xff]  ;;  %v4128_v55 = vld [vmem:[%s5113_s1 + $0x728] sm:$0xff] }
  0xaa   :  { %2711 = vmatpush.bf16.msrb.mxu0 %v4064_v27  ;;  %v4106_v27 = vld [vmem:[%s5113_s1 + $0x678] sm:$0xff] }
  0xab   :  { %2724 = vmatpush.bf16.msrb.mxu1 %v4072_v29  ;;  %v358_v29 = vsel %vm294_vm6, %v262_v5, %v326_v14  ;;  %v4942_v59 = vld [vmem:[%s5116_s3 + $0x18] sm:$0xff]  ;;  %v4101_v14 = vld [vmem:[%s5113_s1 + $0x650] sm:$0xff] }
  0xac   :  { %2737 = vmatpush.bf16.msrb.mxu2 %v4080_v30  ;;  %v360_v30 = vsel %vm296_vm7, %v264_v6, %v328_v15  ;;  %v201_v3 = vperm.slane %v4942_v59, 0  ;;  %v203_v5 = vperm.slane %v4942_v59, 2  ;;  %v162_v6 = vmul.f32 %v98_v57, %v58_v56  ;;  %v4136_v56 = vld [vmem:[%s5113_s1 + $0x768] sm:$0xff]  ;;  %v31_v57 = vld [vmem:[%s5114_s0 + $0x70] sm:$0xff] }
  0xad   :  { %2750 = vmatpush.bf16.msrb.mxu3 %v4088_v32  ;;  %v4114_v32 = vld [vmem:[%s5113_s1 + $0x6b8] sm:$0xff]  ;;  %v204_v11 = vperm.slane %v4942_v59, 3 }
  0xae   :  { %2712 = vmatpush.bf16.msrb.mxu0 %v4063_v35  ;;  %v2486_v13 = vpop.f32.mrf.mxu2  ;;  %v390_v35 = vpack.c.bf16 %v358_v29, %v358_v29  ;;  %v4108_v29 = vld [vmem:[%s5113_s1 + $0x688] sm:$0xff] }
  0xaf   :  { %2725 = vmatpush.bf16.msrb.mxu1 %v4071_v36  ;;  %v2499_v16 = vpop.f32.mrf.mxu3  ;;  %v392_v36 = vpack.c.bf16 %v360_v30, %v360_v30  ;;  %v4093_v13 = vld [vmem:[%s5113_s1 + $0x610] sm:$0xff]  ;;  %v4116_v30 = vld [vmem:[%s5113_s1 + $0x6c8] sm:$0xff] }
  0xb0   :  { %2738 = vmatpush.bf16.msrb.mxu2 %v4079_v41  ;;  %v4121_v41 = vld [vmem:[%s5113_s1 + $0x6f0] sm:$0xff] }
  0xb1   :  { %2751 = vmatpush.bf16.msrb.mxu3 %v4087_v19  ;;  %v4096_v19 = vld [vmem:[%s5113_s1 + $0x628] sm:$0xff] }
  0xb2   :  { %2713 = vmatpush.bf16.msrb.mxu0 %v4062_v48  ;;  %v4095_v48 = vld [vmem:[%s5113_s1 + $0x620] sm:$0xff] }
  0xb3   :  { %2726 = vmatpush.bf16.msrb.mxu1 %v4070_v49  ;;  %v4103_v49 = vld [vmem:[%s5113_s1 + $0x660] sm:$0xff] }
  0xb4   :  { %2739 = vmatpush.bf16.msrb.mxu2 %v4078_v51 }
  0xb5   :  { %2752 = vmatpush.bf16.msrb.mxu3 %v4086_v28  ;;  %v57_v28 = vunpack.c.l.bf16 %v29_v45 }
  0xb6   :  { %2714 = vmatpush.bf16.msrb.mxu0 %v4061_v62  ;;  %v4094_v62 = vld [vmem:[%s5113_s1 + $0x618] sm:$0xff] }
  0xb7   :  { %2727 = vmatpush.bf16.msrb.mxu1 %v4069_v63  ;;  %v4102_v63 = vld [vmem:[%s5113_s1 + $0x658] sm:$0xff] }
  0xb8   :  { %2740 = vmatpush.bf16.msrb.mxu2 %v4077_v38  ;;  %v4118_v38 = vld [vmem:[%s5113_s1 + $0x6d8] sm:$0xff] }
  0xb9   :  { %2753 = vmatpush.bf16.msrb.mxu3 %v4085_v2 }
  0xba   :  { %2715 = vmatpush.bf16.msrb.mxu0 %v4060_v7 }
  0xbb   :  { %2728 = vmatpush.bf16.msrb.mxu1 %v4068_v8 }
  0xbc   :  { %2741 = vmatpush.bf16.msrb.mxu2 %v4076_v9  ;;  %v202_v9 = vperm.slane %v4942_v59, 1 }
  0xbd   :  { %2754 = vmatpush.bf16.msrb.mxu3 %v4084_v10  ;;  %v164_v10 = vmul.f32 %v100_v61, %v60_v60  ;;  %v4152_v60 = vld [vmem:[%s5113_s1 + $0x7e8] sm:$0xff]  ;;  %v32_v61 = vld [vmem:[%s5114_s0 + $0x78] sm:$0xff] }
  0xbe   :  { %2716 = vmatpush.bf16.msrb.mxu0 %v4059_v17  ;;  %v2510_v47 = vpop.f32.mrf.mxu0  ;;  %v4109_v17 = vld [vmem:[%s5113_s1 + $0x690] sm:$0xff]  ;;  %v266_v23 = vadd.f32 %v202_v9, %v162_v6  ;;  %v4143_v6 = vld [vmem:[%s5113_s1 + $0x7a0] sm:$0xff]  ;;  %v103_v9 = vperm.slane %v4918_v26, 6 }
  0xbf   :  { %2729 = vmatpush.bf16.msrb.mxu1 %v4067_v18  ;;  %v2511_v50 = vadd.f32 %v2510_v47, %v4844_v0  ;;  %v2523_v51 = vpop.f32.mrf.mxu1  ;;  %v161_v0 = vmul.f32 %v97_v31, %v57_v28  ;;  %v4117_v18 = vld [vmem:[%s5113_s1 + $0x6d0] sm:$0xff]  ;;  %v268_v24 = vadd.f32 %v204_v11, %v164_v10  ;;  %v4146_v47 = vld [vmem:[%s5113_s1 + $0x7b8] sm:$0xff]  ;;  %v64_v10 = vunpack.c.h.bf16 %v32_v61 }
  0xc0   :  { %2742 = vmatpush.bf16.msrb.mxu2 %v4075_v20  ;;  %vm298_vm10 = vcmp.gt.f32.partialorder %v266_v23, 0.0  ;;  %v4129_v31 = vld [vmem:[%s5113_s1 + $0x730] sm:$0xff]  ;;  %v104_v11 = vperm.slane %v4918_v26, 7 }
  0xc1   :  { %2755 = vmatpush.bf16.msrb.mxu3 %v4083_v21  ;;  %2717 = vmatmul.bf16.vlgmr.msrb.gmra.mxu0 %v389_v34  ;;  %v2524_v58 = vadd.f32 %v2523_v51, %v2511_v50  ;;  %v265_v20 = vadd.f32 %v201_v3, %v161_v0  ;;  %v267_v21 = vadd.f32 %v203_v5, %v163_v4  ;;  %vm300_vm11 = vcmp.gt.f32.partialorder %v268_v24, 0.0 }
  0xc2   :  { %2761 = vmatpush.bf16.msra.mxu0 %v4098_v25  ;;  %2730 = vmatmul.bf16.vlgmr.msrb.gmra.mxu1 %v390_v35  ;;  %v4092_v25 = vld [vmem:[%s5113_s1 + $0x608] sm:$0xff]  ;;  %v332_v35 = vmul.f32 0.2, %v268_v24  ;;  %v101_v3 = vperm.slane %v4918_v26, 4  ;;  %v62_v4 = vunpack.c.h.bf16 %v31_v57  ;;  %v102_v5 = vperm.slane %v4918_v26, 5  ;;  %v4142_v26 = vld [vmem:[%s5113_s1 + $0x798] sm:$0xff] }
  0xc3   :  { %2774 = vmatpush.bf16.msra.mxu1 %v4106_v27  ;;  %2743 = vmatmul.bf16.vlgmr.msrb.gmra.mxu2 %v391_v22  ;;  %v4100_v27 = vld [vmem:[%s5113_s1 + $0x648] sm:$0xff]  ;;  %vm297_vm8 = vcmp.gt.f32.partialorder %v265_v20, 0.0  ;;  %vm299_vm9 = vcmp.gt.f32.partialorder %v267_v21, 0.0  ;;  %v330_v22 = vmul.f32 0.2, %v266_v23 }
  0xc4   :  { %2787 = vmatpush.bf16.msra.mxu2 %v4114_v32  ;;  %2756 = vmatmul.bf16.vlgmr.msrb.gmra.mxu3 %v392_v36  ;;  %v329_v32 = vmul.f32 0.2, %v265_v20  ;;  %v364_v46 = vsel %vm300_vm11, %v268_v24, %v332_v35  ;;  %v207_v24 = vperm.slane %v4942_v59, 6 }
  0xc5   :  { %2800 = vmatpush.bf16.msra.mxu3 %v4122_v33  ;;  %v331_v33 = vmul.f32 0.2, %v267_v21  ;;  %v362_v45 = vsel %vm298_vm10, %v266_v23, %v330_v22  ;;  %v396_v28 = vpack.c.bf16 %v364_v46, %v364_v46  ;;  %v4133_v22 = vld [vmem:[%s5113_s1 + $0x750] sm:$0xff] }
  0xc6   :  { %2762 = vmatpush.bf16.msra.mxu0 %v4097_v37  ;;  %v2536_v2 = vpop.f32.mrf.mxu2  ;;  %v2512_v12 = vpop.f32.mrf.mxu0  ;;  %v4091_v37 = vld [vmem:[%s5113_s1 + $0x600] sm:$0xff]  ;;  %v394_v51 = vpack.c.bf16 %v362_v45, %v362_v45 }
  0xc7   :  { %2775 = vmatpush.bf16.msra.mxu1 %v4105_v39  ;;  %v2537_v7 = vadd.f32 %v2536_v2, %v2524_v58  ;;  %v2549_v8 = vpop.f32.mrf.mxu3  ;;  %v2525_v16 = vpop.f32.mrf.mxu1  ;;  %v4099_v39 = vld [vmem:[%s5113_s1 + $0x640] sm:$0xff]  ;;  %v4144_v58 = vld [vmem:[%s5113_s1 + $0x7a8] sm:$0xff] }
  0xc8   :  { %2788 = vmatpush.bf16.msra.mxu2 %v4113_v40  ;;  %v4107_v40 = vld [vmem:[%s5113_s1 + $0x680] sm:$0xff]  ;;  %v205_v16 = vperm.slane %v4942_v59, 4 }
  0xc9   :  { %2801 = vmatpush.bf16.msra.mxu3 %v4121_v41  ;;  %v4967_v15 = vadd.f32 %v2549_v8, %v2537_v7  ;;  %v4115_v41 = vld [vmem:[%s5113_s1 + $0x6c0] sm:$0xff]  ;;  %v63_v8 = vunpack.c.l.bf16 %v32_v61 }
  0xca   :  { %2763 = vmatpush.bf16.msra.mxu0 %v4096_v19  ;;  %v361_v19 = vsel %vm297_vm8, %v265_v20, %v329_v32  ;;  %v4151_v7 = vld [vmem:[%s5113_s1 + $0x7e0] sm:$0xff]  ;;  %v4150_v20 = vld [vmem:[%s5113_s1 + $0x7d8] sm:$0xff] }
  0xcb   :  { %2776 = vmatpush.bf16.msra.mxu1 %v4104_v42  ;;  %v363_v42 = vsel %vm299_vm9, %v267_v21, %v331_v33  ;;  %v167_v23 = vmul.f32 %v103_v9, %v63_v8 }
  0xcc   :  { %2789 = vmatpush.bf16.msra.mxu2 %v4112_v43  ;;  %v4130_v43 = vld [vmem:[%s5113_s1 + $0x738] sm:$0xff]  ;;  %v395_v50 = vpack.c.bf16 %v363_v42, %v363_v42  ;;  %v4132_v42 = vld [vmem:[%s5113_s1 + $0x748] sm:$0xff] }
  0xcd   :  { %2802 = vmatpush.bf16.msra.mxu3 %v4120_v44  ;;  %v4138_v44 = vld [vmem:[%s5113_s1 + $0x778] sm:$0xff] }
  0xce   :  { %2764 = vmatpush.bf16.msra.mxu0 %v4095_v48  ;;  %v2538_v34 = vpop.f32.mrf.mxu2  ;;  %v4154_v48 = vld [vmem:[%s5113_s1 + $0x7f8] sm:$0xff] }
  0xcf   :  { %2777 = vmatpush.bf16.msra.mxu1 %v4103_v49  ;;  %v2551_v36 = vpop.f32.mrf.mxu3  ;;  %v393_v49 = vpack.c.bf16 %v361_v19, %v361_v19  ;;  %v4125_v34 = vld [vmem:[%s5113_s1 + $0x710] sm:$0xff]  ;;  %v4124_v19 = vld [vmem:[%s5113_s1 + $0x708] sm:$0xff] }
  0xd0   :  { %2790 = vmatpush.bf16.msra.mxu2 %v4111_v52  ;;  %v4137_v52 = vld [vmem:[%s5113_s1 + $0x770] sm:$0xff] }
  0xd1   :  { %2803 = vmatpush.bf16.msra.mxu3 %v4119_v53  ;;  %v4145_v53 = vld [vmem:[%s5113_s1 + $0x7b0] sm:$0xff] }
  0xd2   :  { %2765 = vmatpush.bf16.msra.mxu0 %v4094_v62 }
  0xd3   :  { %2778 = vmatpush.bf16.msra.mxu1 %v4102_v63  ;;  %v61_v63 = vunpack.c.l.bf16 %v31_v57 }
  0xd4   :  { %2791 = vmatpush.bf16.msra.mxu2 %v4110_v1  ;;  %v4127_v1 = vld [vmem:[%s5113_s1 + $0x720] sm:$0xff] }
  0xd5   :  { %2804 = vmatpush.bf16.msra.mxu3 %v4118_v38  ;;  %v4135_v38 = vld [vmem:[%s5113_s1 + $0x760] sm:$0xff] }
  0xd6   :  { %2766 = vmatpush.bf16.msra.mxu0 %v4093_v13  ;;  %v4126_v13 = vld [vmem:[%s5113_s1 + $0x718] sm:$0xff] }
  0xd7   :  { %2779 = vmatpush.bf16.msra.mxu1 %v4101_v14  ;;  %v4134_v14 = vld [vmem:[%s5113_s1 + $0x758] sm:$0xff] }
  0xd8   :  { %2792 = vmatpush.bf16.msra.mxu2 %v4109_v17  ;;  %v166_v17 = vmul.f32 %v102_v5, %v62_v4 }
  0xd9   :  { %2805 = vmatpush.bf16.msra.mxu3 %v4117_v18  ;;  %v206_v18 = vperm.slane %v4942_v59, 5 }
  0xda   :  { %2767 = vmatpush.bf16.msra.mxu0 %v4092_v25  ;;  %v168_v25 = vmul.f32 %v104_v11, %v64_v10 }
  0xdb   :  { %2780 = vmatpush.bf16.msra.mxu1 %v4100_v27  ;;  %v208_v27 = vperm.slane %v4942_v59, 7  ;;  %v270_v36 = vadd.f32 %v206_v18, %v166_v17  ;;  %v4141_v59 = vld [vmem:[%s5113_s1 + $0x790] sm:$0xff] }
  0xdc   :  { %2793 = vmatpush.bf16.msra.mxu2 %v4108_v29 }
  0xdd   :  { %2806 = vmatpush.bf16.msra.mxu3 %v4116_v30  ;;  %v334_v46 = vmul.f32 0.2, %v270_v36  ;;  %vm302_vm13 = vcmp.gt.f32.partialorder %v270_v36, 0.0 }
  0xde   :  { %2768 = vmatpush.bf16.msra.mxu0 %v4091_v37  ;;  %v2562_v62 = vpop.f32.mrf.mxu0 }
  0xdf   :  { %2781 = vmatpush.bf16.msra.mxu1 %v4099_v39  ;;  %v2563_v0 = vadd.f32 %v2562_v62, %v4967_v15  ;;  %v2575_v2 = vpop.f32.mrf.mxu1  ;;  %v165_v15 = vmul.f32 %v101_v3, %v61_v63  ;;  %v4149_v39 = vld [vmem:[%s5113_s1 + $0x7d0] sm:$0xff] }
  0xe0   :  { %2794 = vmatpush.bf16.msra.mxu2 %v4107_v40  ;;  %v271_v40 = vadd.f32 %v207_v24, %v167_v23 }
  0xe1   :  { %2807 = vmatpush.bf16.msra.mxu3 %v4115_v41  ;;  %2769 = vmatmul.bf16.vlgmr.msra.gmra.mxu0 %v393_v49  ;;  %v2576_v12 = vadd.f32 %v2575_v2, %v2563_v0  ;;  %v269_v35 = vadd.f32 %v205_v16, %v165_v15  ;;  %v272_v41 = vadd.f32 %v208_v27, %v168_v25 }
  0xe2   :  { %2813 = vmatpush.bf16.msrb.mxu0 %v4130_v43  ;;  %2782 = vmatmul.bf16.vlgmr.msra.gmra.mxu1 %v394_v51  ;;  %v4140_v43 = vld [vmem:[%s5113_s1 + $0x788] sm:$0xff]  ;;  %vm303_vm14 = vcmp.gt.f32.partialorder %v271_v40, 0.0  ;;  %v4123_v51 = vld [vmem:[%s5113_s1 + $0x700] sm:$0xff] }
  0xe3   :  { %2826 = vmatpush.bf16.msrb.mxu1 %v4138_v44  ;;  %2795 = vmatmul.bf16.vlgmr.msra.gmra.mxu2 %v395_v50  ;;  %v4148_v44 = vld [vmem:[%s5113_s1 + $0x7c8] sm:$0xff]  ;;  %v333_v45 = vmul.f32 0.2, %v269_v35  ;;  %vm301_vm12 = vcmp.gt.f32.partialorder %v269_v35, 0.0  ;;  %vm304_vm15 = vcmp.gt.f32.partialorder %v272_v41, 0.0 }
  0xe4   :  { %2839 = vmatpush.bf16.msrb.mxu2 %v4146_v47  ;;  %2808 = vmatmul.bf16.vlgmr.msra.gmra.mxu3 %v396_v28  ;;  %v335_v47 = vmul.f32 0.2, %v271_v40  ;;  %v4131_v28 = vld [vmem:[%s5113_s1 + $0x740] sm:$0xff] }
  0xe5   :  { %2852 = vmatpush.bf16.msrb.mxu3 %v4154_v48  ;;  %v336_v48 = vmul.f32 0.2, %v272_v41 }
  0xe6   :  { %2814 = vmatpush.bf16.msrb.mxu0 %v4129_v31  ;;  %v2588_v21 = vpop.f32.mrf.mxu2  ;;  %v2564_v32 = vpop.f32.mrf.mxu0  ;;  %v365_v31 = vsel %vm301_vm12, %v269_v35, %v333_v45 }
  0xe7   :  { %2827 = vmatpush.bf16.msrb.mxu1 %v4137_v52  ;;  %v2589_v29 = vadd.f32 %v2588_v21, %v2576_v12  ;;  %v2601_v30 = vpop.f32.mrf.mxu3  ;;  %v2577_v37 = vpop.f32.mrf.mxu1  ;;  %v366_v52 = vsel %vm302_vm13, %v270_v36, %v334_v46  ;;  %v397_v57 = vpack.c.bf16 %v365_v31, %v365_v31 }
  0xe8   :  { %2840 = vmatpush.bf16.msrb.mxu2 %v4145_v53  ;;  %v4139_v53 = vld [vmem:[%s5113_s1 + $0x780] sm:$0xff] }
  0xe9   :  { %2853 = vmatpush.bf16.msrb.mxu3 %v4153_v54  ;;  %v2602_v33 = vadd.f32 %v2601_v30, %v2589_v29  ;;  %v4147_v54 = vld [vmem:[%s5113_s1 + $0x7c0] sm:$0xff] }
  0xea   :  { %2815 = vmatpush.bf16.msrb.mxu0 %v4128_v55  ;;  %v367_v55 = vsel %vm303_vm14, %v271_v40, %v335_v47 }
  0xeb   :  { %2828 = vmatpush.bf16.msrb.mxu1 %v4136_v56  ;;  %v368_v56 = vsel %vm304_vm15, %v272_v41, %v336_v48 }
  0xec   :  { %2841 = vmatpush.bf16.msrb.mxu2 %v4144_v58  ;;  %v398_v58 = vpack.c.bf16 %v366_v52, %v366_v52  ;;  %v400_v61 = vpack.c.bf16 %v368_v56, %v368_v56 }
  0xed   :  { %2854 = vmatpush.bf16.msrb.mxu3 %v4152_v60  ;;  %v399_v60 = vpack.c.bf16 %v367_v55, %v367_v55 }
  0xee   :  { %2816 = vmatpush.bf16.msrb.mxu0 %v4127_v1  ;;  %v2590_v49 = vpop.f32.mrf.mxu2 }
  0xef   :  { %2829 = vmatpush.bf16.msrb.mxu1 %v4135_v38  ;;  %v2603_v50 = vpop.f32.mrf.mxu3 }
  0xf0   :  { %2842 = vmatpush.bf16.msrb.mxu2 %v4143_v6 }
  0xf1   :  { %2855 = vmatpush.bf16.msrb.mxu3 %v4151_v7 }
  0xf2   :  { %2817 = vmatpush.bf16.msrb.mxu0 %v4126_v13 }
  0xf3   :  { %2830 = vmatpush.bf16.msrb.mxu1 %v4134_v14 }
  0xf4   :  { %2843 = vmatpush.bf16.msrb.mxu2 %v4142_v26 }
  0xf5   :  { %2856 = vmatpush.bf16.msrb.mxu3 %v4150_v20 }
  0xf6   :  { %2818 = vmatpush.bf16.msrb.mxu0 %v4125_v34 }
  0xf7   :  { %2831 = vmatpush.bf16.msrb.mxu1 %v4133_v22 }
  0xf8   :  { %2844 = vmatpush.bf16.msrb.mxu2 %v4141_v59 }
  0xf9   :  { %2857 = vmatpush.bf16.msrb.mxu3 %v4149_v39 }
  0xfa   :  { %2819 = vmatpush.bf16.msrb.mxu0 %v4124_v19 }
  0xfb   :  { %2832 = vmatpush.bf16.msrb.mxu1 %v4132_v42 }
  0xfc   :  { %2845 = vmatpush.bf16.msrb.mxu2 %v4140_v43 }
  0xfd   :  { %2858 = vmatpush.bf16.msrb.mxu3 %v4148_v44 }
  0xfe   :  { %2820 = vmatpush.bf16.msrb.mxu0 %v4123_v51  ;;  %v2614_v62 = vpop.f32.mrf.mxu0 }
  0xff   :  { %2833 = vmatpush.bf16.msrb.mxu1 %v4131_v28  ;;  %v2615_v63 = vadd.f32 %v2614_v62, %v2602_v33  ;;  %v2627_v0 = vpop.f32.mrf.mxu1 }
 0x100   :  { %2846 = vmatpush.bf16.msrb.mxu2 %v4139_v53 }
 0x101   :  { %2859 = vmatpush.bf16.msrb.mxu3 %v4147_v54  ;;  %2821 = vmatmul.bf16.vlgmr.msrb.gmra.mxu0 %v397_v57  ;;  %v2628_v1 = vadd.f32 %v2627_v0, %v2615_v63 }
 0x102   :  { %2834 = vmatmul.bf16.vlgmr.msrb.gmra.mxu1 %v398_v58 }
 0x103   :  { %2847 = vmatmul.bf16.vlgmr.msrb.gmra.mxu2 %v399_v60 }
 0x104   :  { %2860 = vmatmul.bf16.vlgmr.msrb.gmra.mxu3 %v400_v61 }
 0x106   :  { %v2640_v38 = vpop.f32.mrf.mxu2  ;;  %v2616_v4 = vpop.f32.mrf.mxu0 }
 0x107   :  { %v2641_v2 = vadd.f32 %v2640_v38, %v2628_v1  ;;  %v2653_v3 = vpop.f32.mrf.mxu3  ;;  %v2629_v6 = vpop.f32.mrf.mxu1 }
 0x109   :  { %v2654_v5 = vadd.f32 %v2653_v3, %v2641_v2 }
 0x10e   :  { %v2642_v7 = vpop.f32.mrf.mxu2 }
 0x10f   :  { %v2655_v8 = vpop.f32.mrf.mxu3 }
 0x11e   :  { %v2666_v9 = vpop.f32.mrf.mxu0 }
 0x11f   :  { %v2667_v10 = vadd.f32 %v2666_v9, %v2654_v5  ;;  %v2679_v11 = vpop.f32.mrf.mxu1 }
 0x121   :  { %v2680_v12 = vadd.f32 %v2679_v11, %v2667_v10 }
 0x126   :  { %v2692_v13 = vpop.f32.mrf.mxu2  ;;  %v2668_v16 = vpop.f32.mrf.mxu0 }
 0x127   :  { %v2693_v14 = vadd.f32 %v2692_v13, %v2680_v12  ;;  %v2705_v15 = vpop.f32.mrf.mxu3  ;;  %v2681_v18 = vpop.f32.mrf.mxu1 }
 0x129   :  { %v2706_v17 = vadd.f32 %v2705_v15, %v2693_v14 }
 0x12e   :  { %v2694_v26 = vpop.f32.mrf.mxu2 }
 0x12f   :  { %v2707_v20 = vpop.f32.mrf.mxu3 }
 0x13e   :  { %v2718_v21 = vpop.f32.mrf.mxu0 }
 0x13f   :  { %v2731_v23 = vpop.f32.mrf.mxu1  ;;  %v2719_v35 = vadd.f32 %v2718_v21, %v2706_v17 }
 0x141   :  { %v2732_v39 = vadd.f32 %v2731_v23, %v2719_v35 }
 0x146   :  { %v2744_v24 = vpop.f32.mrf.mxu2  ;;  %v2720_v27 = vpop.f32.mrf.mxu0 }
 0x147   :  { %v2757_v25 = vpop.f32.mrf.mxu3  ;;  %v2733_v29 = vpop.f32.mrf.mxu1  ;;  %v2745_v40 = vadd.f32 %v2744_v24, %v2732_v39 }
 0x149   :  { %v2758_v42 = vadd.f32 %v2757_v25, %v2745_v40 }
 0x14e   :  { %v2746_v30 = vpop.f32.mrf.mxu2 }
 0x14f   :  { %v2759_v32 = vpop.f32.mrf.mxu3 }
 0x15e   :  { %v2770_v33 = vpop.f32.mrf.mxu0 }
 0x15f   :  { %v2783_v34 = vpop.f32.mrf.mxu1  ;;  %v2771_v43 = vadd.f32 %v2770_v33, %v2758_v42 }
 0x161   :  { %v2784_v44 = vadd.f32 %v2783_v34, %v2771_v43 }
 0x166   :  { %v2796_v22 = vpop.f32.mrf.mxu2  ;;  %v2772_v37 = vpop.f32.mrf.mxu0 }
 0x167   :  { %v2809_v36 = vpop.f32.mrf.mxu3  ;;  %v2785_v59 = vpop.f32.mrf.mxu1  ;;  %v2797_v45 = vadd.f32 %v2796_v22, %v2784_v44 }
 0x169   :  { %v2810_v46 = vadd.f32 %v2809_v36, %v2797_v45 }
 0x16e   :  { %v2798_v41 = vpop.f32.mrf.mxu2 }
 0x16f   :  { %v2811_v19 = vpop.f32.mrf.mxu3 }
 0x17e   :  { %v2822_v47 = vpop.f32.mrf.mxu0 }
 0x17f   :  { %v2835_v48 = vpop.f32.mrf.mxu1  ;;  %v2823_v49 = vadd.f32 %v2822_v47, %v2810_v46 }
 0x181   :  { %v2836_v50 = vadd.f32 %v2835_v48, %v2823_v49 }
 0x186   :  { %v2848_v51 = vpop.f32.mrf.mxu2  ;;  %v2824_v52 = vpop.f32.mrf.mxu0 }
 0x187   :  { %v2861_v28 = vpop.f32.mrf.mxu3  ;;  %v2849_v31 = vadd.f32 %v2848_v51, %v2836_v50  ;;  %v2837_v53 = vpop.f32.mrf.mxu1 }
 0x189   :  { %v2862_v54 = vadd.f32 %v2861_v28, %v2849_v31 }
 0x18b   :  { %v2865_v55 = vmul.f32 0.5, %v2862_v54 }
 0x18d   :  { %4155 = vtanh.f32 %v2865_v55 }
 0x18e   :  { %v2850_v56 = vpop.f32.mrf.mxu2 }
 0x18f   :  { %v2863_v57 = vpop.f32.mrf.mxu3 }
 0x193   :  { %v4156_v58 = vpop.eup %4155 }
 0x194   :  { %v2867_v60 = vadd.f32 1.0, %v4156_v58 }
 0x196   :  { %v2868_v61 = vmul.f32 0.5, %v2867_v60 }
 0x198   :  { %2870 = vst.msk [vmem:[%s5117_s4] sm:$0xff] %vm2869_vm0, %v2868_v61 }

</bundles_post_ra>
